<compile_context>
chip_gen: v7x
topology: tpu7x:2x2x1
jax: 0.10.0
libtpu: 0.0.40
codegen_flags: <defaults>
</compile_context>

<pallas_src>
import jax
import jax.numpy as jnp
from jax.experimental import pallas as pl
from jax.experimental.pallas import tpu as pltpu

H = 768            # hidden size fixed by the module (classifier = Linear(768*3, 2))
NUM_CLASSES = 2
N_PAD = 128        # classifier output lane-padded to one full 128-lane tile


def _accumulate_masked_sum(emb_ref, mask, acc_ref):
    """acc_ref[b, :] += sum_s mask[b, s] * emb[b, s, :]  (MXU, f32 accumulate).

    emb_ref: (bB, bS, H) Ref (bf16 or f32); mask: (bB, bS) array in emb dtype;
    acc_ref: (bB, H) f32 VMEM scratch.  Unrolled over the (small) bB rows so
    every dot is a plain 2-D matmul, which lowers robustly on the MXU.
    """
    for row in range(mask.shape[0]):
        acc_ref[pl.ds(row, 1), :] += jnp.dot(
            mask[row:row + 1, :], emb_ref[row],
            preferred_element_type=jnp.float32)


def biencoder_kernel(q_emb_ref, t_emb_ref, q_mask_ref, t_mask_ref,
                     wq_ref, wt_ref, wa_ref, b_ref, out_ref,
                     q_sum, t_sum, qm_sum, tm_sum):
    k = pl.program_id(1)

    @pl.when(k == 0)
    def _init():
        q_sum[...] = jnp.zeros_like(q_sum)
        t_sum[...] = jnp.zeros_like(t_sum)
        qm_sum[...] = jnp.zeros_like(qm_sum)
        tm_sum[...] = jnp.zeros_like(tm_sum)

    q_mask = q_mask_ref[...]                               # (bB, bS) f32
    t_mask = t_mask_ref[...]

    # Masked sums of this sequence block on the (otherwise idle) MXU.
    _accumulate_masked_sum(q_emb_ref, q_mask.astype(q_emb_ref.dtype), q_sum)
    _accumulate_masked_sum(t_emb_ref, t_mask.astype(t_emb_ref.dtype), t_sum)
    qm_sum[...] += jnp.sum(q_mask, axis=1, keepdims=True)  # (bB, 1)
    tm_sum[...] += jnp.sum(t_mask, axis=1, keepdims=True)

    @pl.when(k == pl.num_programs(1) - 1)
    def _finalize():
        # torch.clamp(sum_mask, min=-1e-9), kept verbatim.
        # TODO(synk): a fully-masked row yields 0 -> inf/nan, exactly like the
        # PyTorch module (clamp floor is negative); kept for fidelity.
        q_inv = pl.reciprocal(jnp.maximum(qm_sum[...], -1e-9), approx=True)
        t_inv = pl.reciprocal(jnp.maximum(tm_sum[...], -1e-9), approx=True)
        q_pool = q_sum[...] * q_inv                        # (bB, H)
        t_pool = t_sum[...] * t_inv
        a_pool = jnp.abs(q_pool - t_pool)
        # concat([q, t, |q-t|], -1) @ W + b, with W pre-split into three H blocks.
        y = (jnp.dot(q_pool, wq_ref[...], preferred_element_type=jnp.float32)
             + jnp.dot(t_pool, wt_ref[...], preferred_element_type=jnp.float32)
             + jnp.dot(a_pool, wa_ref[...], preferred_element_type=jnp.float32)
             + b_ref[...])                                 # (bB, N_PAD)
        out_ref[...] = y.astype(out_ref.dtype)


def biencoder_classifier_pallas(query_emb, target_emb, query_mask, target_mask,
                                w, b, *, block_b=8, block_s=512):
    """query_emb/target_emb: (B, S, 768), preferably bf16; masks: (B, S);
    w: (3*768, 2) f32 (transposed torch Linear weight); b: (2,) f32."""
    B, S, h = query_emb.shape
    assert h == H and w.shape == (3 * H, NUM_CLASSES)

    # Block sizes: fall back to the full dimension when the requested block does
    # not tile it (the "== full dim" escape of the (8, 128) rule).  Keep bB small
    # (8-16): the masked-sum matmuls are unrolled over it.
    bB = block_b if (B % block_b == 0 and block_b % 8 == 0) else B
    bS = block_s if (S % block_s == 0 and block_s % 128 == 0) else S
    grid = (B // bB, S // bS)

    # VMEM budget: 2 embedding + 2 mask streams double-buffered, plus resident
    # weights/bias/output/scratch.  Clamp to [32 MiB, 64 MiB] so the limit is
    # raised above the v5e default yet never exceeds v7x physical VMEM.
    elem = jnp.dtype(query_emb.dtype).itemsize
    est = (2 * 2 * (bB * bS * H * elem + bB * bS * 4)
           + 2 * (3 * H * N_PAD * 4 + N_PAD * 4 + bB * N_PAD * 4)
           + 2 * bB * (H + 1) * 4)
    vmem_limit = min(max(2 * est, 32 * 1024 * 1024), 64 * 1024 * 1024)

    # Lane-pad the classifier to a full 128-lane tile and split into H blocks.
    w_pad = jnp.zeros((3 * H, N_PAD), jnp.float32).at[:, :NUM_CLASSES].set(
        w.astype(jnp.float32))
    b_pad = jnp.zeros((1, N_PAD), jnp.float32).at[0, :NUM_CLASSES].set(
        b.astype(jnp.float32))
    wq, wt, wa = w_pad[:H], w_pad[H:2 * H], w_pad[2 * H:]

    qm = query_mask.astype(jnp.float32)
    tm = target_mask.astype(jnp.float32)

    emb_spec = pl.BlockSpec((bB, bS, H), lambda i, k: (i, k, 0))
    mask_spec = pl.BlockSpec((bB, bS), lambda i, k: (i, k))
    w_spec = pl.BlockSpec((H, N_PAD), lambda i, k: (0, 0))    # resident in VMEM
    b_spec = pl.BlockSpec((1, N_PAD), lambda i, k: (0, 0))
    out_spec = pl.BlockSpec((bB, N_PAD), lambda i, k: (i, 0))

    out_padded = pl.pallas_call(
        biencoder_kernel,
        out_shape=jax.ShapeDtypeStruct((B, N_PAD), jnp.float32),
        grid_spec=pltpu.PrefetchScalarGridSpec(
            num_scalar_prefetch=0,
            grid=grid,
            in_specs=[emb_spec, emb_spec, mask_spec, mask_spec,
                      w_spec, w_spec, w_spec, b_spec],
            out_specs=out_spec,
            scratch_shapes=[pltpu.VMEM((bB, H), jnp.float32),   # q masked sum
                            pltpu.VMEM((bB, H), jnp.float32),   # t masked sum
                            pltpu.VMEM((bB, 1), jnp.float32),   # q mask count
                            pltpu.VMEM((bB, 1), jnp.float32)]), # t mask count
        compiler_params=pltpu.CompilerParams(
            dimension_semantics=("parallel", "arbitrary"),
            vmem_limit_bytes=vmem_limit),
    )(query_emb, target_emb, qm, tm, wq, wt, wa, b_pad)

    return out_padded[:, :NUM_CLASSES]


def reference_jax(query_emb, target_emb, query_mask, target_mask, w, b):
    qe = query_emb.astype(jnp.float32)
    te = target_emb.astype(jnp.float32)
    qm = query_mask.astype(jnp.float32)[:, :, None]
    tm = target_mask.astype(jnp.float32)[:, :, None]
    qp = jnp.sum(qe * qm, 1) / jnp.maximum(jnp.sum(qm, 1), -1e-9)
    tp = jnp.sum(te * tm, 1) / jnp.maximum(jnp.sum(tm, 1), -1e-9)
    hidden = jnp.concatenate([qp, tp, jnp.abs(qp - tp)], axis=-1)
    return hidden @ w + b


if __name__ == "__main__":
    key = jax.random.PRNGKey(0)
    B, S, VOCAB = 16, 256, 1024

    k_tab, k_qid, k_tid, k_ql, k_tl, k_w, k_b = jax.random.split(key, 7)

    # Deterministic "encoder" stand-in: embedding-table lookup -> last_hidden_state.
    emb_table = jax.random.normal(k_tab, (VOCAB, H), dtype=jnp.float32) * 0.02
    query_ids = jax.random.randint(k_qid, (B, S), 0, VOCAB)
    target_ids = jax.random.randint(k_tid, (B, S), 0, VOCAB)

    # Attention masks: random valid lengths in [1, S] (left-aligned valid tokens).
    pos = jnp.arange(S)[None, :]
    q_len = jax.random.randint(k_ql, (B,), 1, S + 1)
    t_len = jax.random.randint(k_tl, (B,), 1, S + 1)
    query_attention_mask = (pos < q_len[:, None]).astype(jnp.int32)
    target_attention_mask = (pos < t_len[:, None]).astype(jnp.int32)

    # Keep encoder activations bf16 end-to-end (halves HBM traffic).
    query_embedding = emb_table[query_ids].astype(jnp.bfloat16)    # (B, S, H)
    target_embedding = emb_table[target_ids].astype(jnp.bfloat16)  # (B, S, H)

    # Classifier parameters (nn.Linear(768*3, 2)), deterministic init.
    w = jax.random.normal(k_w, (3 * H, NUM_CLASSES), dtype=jnp.float32) * 0.02
    b = jax.random.normal(k_b, (NUM_CLASSES,), dtype=jnp.float32) * 0.02

    y = biencoder_classifier_pallas(query_embedding, target_embedding,
                                    query_attention_mask, target_attention_mask,
                                    w, b, block_b=8, block_s=128)
    y = jax.block_until_ready(y)

    y_ref = reference_jax(query_embedding, target_embedding,
                          query_attention_mask, target_attention_mask, w, b)
    assert y.shape == (B, NUM_CLASSES)
    assert jnp.allclose(y, y_ref, atol=2e-3, rtol=2e-2), (
        "max abs err = %g" % float(jnp.max(jnp.abs(y - y_ref))))

    print("KERNEL_OK")
</pallas_src>

<mosaic_0001>
module attributes {stable_mosaic.version = 11 : i64} {
  func.func @biencoder_kernel(%arg0: i32, %arg1: i32, %arg2: memref<8x128x768xbf16, #tpu.memory_space<vmem>>, %arg3: memref<8x128x768xbf16, #tpu.memory_space<vmem>>, %arg4: memref<8x128xf32, #tpu.memory_space<vmem>>, %arg5: memref<8x128xf32, #tpu.memory_space<vmem>>, %arg6: memref<768x128xf32, #tpu.memory_space<vmem>>, %arg7: memref<768x128xf32, #tpu.memory_space<vmem>>, %arg8: memref<768x128xf32, #tpu.memory_space<vmem>>, %arg9: memref<1x128xf32, #tpu.memory_space<vmem>>, %arg10: memref<8x128xf32, #tpu.memory_space<vmem>>, %arg11: memref<8x768xf32, #tpu.memory_space<vmem>>, %arg12: memref<8x768xf32, #tpu.memory_space<vmem>>, %arg13: memref<8x1xf32, #tpu.memory_space<vmem>>, %arg14: memref<8x1xf32, #tpu.memory_space<vmem>>) attributes {dimension_semantics = [#tpu.dimension_semantics<parallel>, #tpu.dimension_semantics<arbitrary>], iteration_bounds = array<i64: 2, 2>, scalar_prefetch = 0 : i64, scratch_operands = 4 : i64, tpu.core_type = #tpu.core_type<tc>, window_params = [{transform_indices = @transform_0, window_bounds = array<i64: 8, 128, 768>}, {transform_indices = @transform_1, window_bounds = array<i64: 8, 128, 768>}, {transform_indices = @transform_2, window_bounds = array<i64: 8, 128>}, {transform_indices = @transform_3, window_bounds = array<i64: 8, 128>}, {pipeline_mode = #tpu.pipeline_mode<synchronous>, transform_indices = @transform_4, window_bounds = array<i64: 768, 128>}, {pipeline_mode = #tpu.pipeline_mode<synchronous>, transform_indices = @transform_5, window_bounds = array<i64: 768, 128>}, {pipeline_mode = #tpu.pipeline_mode<synchronous>, transform_indices = @transform_6, window_bounds = array<i64: 768, 128>}, {pipeline_mode = #tpu.pipeline_mode<synchronous>, transform_indices = @transform_7, window_bounds = array<i64: 1, 128>}, {transform_indices = @transform_8, window_bounds = array<i64: 8, 128>}]} {
    %c0_i32 = arith.constant 0 : i32
    %0 = arith.cmpi eq, %arg1, %c0_i32 : i32
    %1 = arith.extui %0 : i1 to i32
    %c0_i32_0 = arith.constant 0 : i32
    %2 = arith.cmpi ne, %1, %c0_i32_0 : i32
    scf.if %2 {
      %cst_135 = arith.constant 0.000000e+00 : f32
      %132 = vector.broadcast %cst_135 : f32 to vector<8x768xf32>
      %c0_136 = arith.constant 0 : index
      %c0_137 = arith.constant 0 : index
      %133 = vector.load %arg11[%c0_136, %c0_137] : memref<8x768xf32, #tpu.memory_space<vmem>>, vector<8x768xf32>
      tpu.vector_store %arg11[%c0_136, %c0_137], %132 {strides = array<i32>} : memref<8x768xf32, #tpu.memory_space<vmem>>, vector<8x768xf32>,
      %cst_138 = arith.constant 0.000000e+00 : f32
      %134 = vector.broadcast %cst_138 : f32 to vector<8x768xf32>
      %c0_139 = arith.constant 0 : index
      %c0_140 = arith.constant 0 : index
      %135 = vector.load %arg12[%c0_139, %c0_140] : memref<8x768xf32, #tpu.memory_space<vmem>>, vector<8x768xf32>
      tpu.vector_store %arg12[%c0_139, %c0_140], %134 {strides = array<i32>} : memref<8x768xf32, #tpu.memory_space<vmem>>, vector<8x768xf32>,
      %cst_141 = arith.constant 0.000000e+00 : f32
      %136 = vector.broadcast %cst_141 : f32 to vector<8x1xf32>
      %c0_142 = arith.constant 0 : index
      %c0_143 = arith.constant 0 : index
      %137 = vector.load %arg13[%c0_142, %c0_143] : memref<8x1xf32, #tpu.memory_space<vmem>>, vector<8x1xf32>
      tpu.vector_store %arg13[%c0_142, %c0_143], %136 {strides = array<i32>} : memref<8x1xf32, #tpu.memory_space<vmem>>, vector<8x1xf32>,
      %cst_144 = arith.constant 0.000000e+00 : f32
      %138 = vector.broadcast %cst_144 : f32 to vector<8x1xf32>
      %c0_145 = arith.constant 0 : index
      %c0_146 = arith.constant 0 : index
      %139 = vector.load %arg14[%c0_145, %c0_146] : memref<8x1xf32, #tpu.memory_space<vmem>>, vector<8x1xf32>
      tpu.vector_store %arg14[%c0_145, %c0_146], %138 {strides = array<i32>} : memref<8x1xf32, #tpu.memory_space<vmem>>, vector<8x1xf32>,
    } else {
    }
    %c0 = arith.constant 0 : index
    %c0_1 = arith.constant 0 : index
    %3 = vector.load %arg4[%c0, %c0_1] : memref<8x128xf32, #tpu.memory_space<vmem>>, vector<8x128xf32>
    %c0_2 = arith.constant 0 : index
    %c0_3 = arith.constant 0 : index
    %4 = vector.load %arg5[%c0_2, %c0_3] : memref<8x128xf32, #tpu.memory_space<vmem>>, vector<8x128xf32>
    %5 = arith.truncf %3 : vector<8x128xf32> to vector<8x128xbf16>
    %c0_4 = arith.constant 0 : index
    %c0_5 = arith.constant 0 : index
    %6 = vector.load %arg11[%c0_4, %c0_5] : memref<8x768xf32, #tpu.memory_space<vmem>>, vector<1x768xf32>
    %7 = vector.extract_strided_slice %5 {offsets = [0, 0], sizes = [1, 128], strides = [1, 1]} : vector<8x128xbf16> to vector<1x128xbf16>
    %c0_6 = arith.constant 0 : index
    %c0_7 = arith.constant 0 : index
    %c0_8 = arith.constant 0 : index
    %8 = vector.load %arg2[%c0_6, %c0_7, %c0_8] : memref<8x128x768xbf16, #tpu.memory_space<vmem>>, vector<1x128x768xbf16>
    %9 = vector.shape_cast %8 : vector<1x128x768xbf16> to vector<128x768xbf16>
    %cst = arith.constant dense<0.000000e+00> : vector<1x768xf32>
    %10 = tpu.matmul %7, %9, %cst {dimension_numbers = #tpu.dot_dimension_numbers<[1], [0], [0], [1], [0, 0, 1, 1], [], []>} : vector<1x128xbf16>, vector<128x768xbf16>, vector<1x768xf32> -> vector<1x768xf32>
    %11 = arith.addf %6, %10 : vector<1x768xf32>
    %c0_9 = arith.constant 0 : index
    %c0_10 = arith.constant 0 : index
    %12 = vector.load %arg11[%c0_9, %c0_10] : memref<8x768xf32, #tpu.memory_space<vmem>>, vector<1x768xf32>
    tpu.vector_store %arg11[%c0_9, %c0_10], %11 {strides = array<i32>} : memref<8x768xf32, #tpu.memory_space<vmem>>, vector<1x768xf32>,
    %c1 = arith.constant 1 : index
    %c0_11 = arith.constant 0 : index
    %13 = vector.load %arg11[%c1, %c0_11] : memref<8x768xf32, #tpu.memory_space<vmem>>, vector<1x768xf32>
    %14 = vector.extract_strided_slice %5 {offsets = [1, 0], sizes = [1, 128], strides = [1, 1]} : vector<8x128xbf16> to vector<1x128xbf16>
    %c1_12 = arith.constant 1 : index
    %c0_13 = arith.constant 0 : index
    %c0_14 = arith.constant 0 : index
    %15 = vector.load %arg2[%c1_12, %c0_13, %c0_14] : memref<8x128x768xbf16, #tpu.memory_space<vmem>>, vector<1x128x768xbf16>
    %16 = vector.shape_cast %15 : vector<1x128x768xbf16> to vector<128x768xbf16>
    %cst_15 = arith.constant dense<0.000000e+00> : vector<1x768xf32>
    %17 = tpu.matmul %14, %16, %cst_15 {dimension_numbers = #tpu.dot_dimension_numbers<[1], [0], [0], [1], [0, 0, 1, 1], [], []>} : vector<1x128xbf16>, vector<128x768xbf16>, vector<1x768xf32> -> vector<1x768xf32>
    %18 = arith.addf %13, %17 : vector<1x768xf32>
    %c1_16 = arith.constant 1 : index
    %c0_17 = arith.constant 0 : index
    %19 = vector.load %arg11[%c1_16, %c0_17] : memref<8x768xf32, #tpu.memory_space<vmem>>, vector<1x768xf32>
    tpu.vector_store %arg11[%c1_16, %c0_17], %18 {strides = array<i32>} : memref<8x768xf32, #tpu.memory_space<vmem>>, vector<1x768xf32>,
    %c2 = arith.constant 2 : index
    %c0_18 = arith.constant 0 : index
    %20 = vector.load %arg11[%c2, %c0_18] : memref<8x768xf32, #tpu.memory_space<vmem>>, vector<1x768xf32>
    %21 = vector.extract_strided_slice %5 {offsets = [2, 0], sizes = [1, 128], strides = [1, 1]} : vector<8x128xbf16> to vector<1x128xbf16>
    %c2_19 = arith.constant 2 : index
    %c0_20 = arith.constant 0 : index
    %c0_21 = arith.constant 0 : index
    %22 = vector.load %arg2[%c2_19, %c0_20, %c0_21] : memref<8x128x768xbf16, #tpu.memory_space<vmem>>, vector<1x128x768xbf16>
    %23 = vector.shape_cast %22 : vector<1x128x768xbf16> to vector<128x768xbf16>
    %cst_22 = arith.constant dense<0.000000e+00> : vector<1x768xf32>
    %24 = tpu.matmul %21, %23, %cst_22 {dimension_numbers = #tpu.dot_dimension_numbers<[1], [0], [0], [1], [0, 0, 1, 1], [], []>} : vector<1x128xbf16>, vector<128x768xbf16>, vector<1x768xf32> -> vector<1x768xf32>
    %25 = arith.addf %20, %24 : vector<1x768xf32>
    %c2_23 = arith.constant 2 : index
    %c0_24 = arith.constant 0 : index
    %26 = vector.load %arg11[%c2_23, %c0_24] : memref<8x768xf32, #tpu.memory_space<vmem>>, vector<1x768xf32>
    tpu.vector_store %arg11[%c2_23, %c0_24], %25 {strides = array<i32>} : memref<8x768xf32, #tpu.memory_space<vmem>>, vector<1x768xf32>,
    %c3 = arith.constant 3 : index
    %c0_25 = arith.constant 0 : index
    %27 = vector.load %arg11[%c3, %c0_25] : memref<8x768xf32, #tpu.memory_space<vmem>>, vector<1x768xf32>
    %28 = vector.extract_strided_slice %5 {offsets = [3, 0], sizes = [1, 128], strides = [1, 1]} : vector<8x128xbf16> to vector<1x128xbf16>
    %c3_26 = arith.constant 3 : index
    %c0_27 = arith.constant 0 : index
    %c0_28 = arith.constant 0 : index
    %29 = vector.load %arg2[%c3_26, %c0_27, %c0_28] : memref<8x128x768xbf16, #tpu.memory_space<vmem>>, vector<1x128x768xbf16>
    %30 = vector.shape_cast %29 : vector<1x128x768xbf16> to vector<128x768xbf16>
    %cst_29 = arith.constant dense<0.000000e+00> : vector<1x768xf32>
    %31 = tpu.matmul %28, %30, %cst_29 {dimension_numbers = #tpu.dot_dimension_numbers<[1], [0], [0], [1], [0, 0, 1, 1], [], []>} : vector<1x128xbf16>, vector<128x768xbf16>, vector<1x768xf32> -> vector<1x768xf32>
    %32 = arith.addf %27, %31 : vector<1x768xf32>
    %c3_30 = arith.constant 3 : index
    %c0_31 = arith.constant 0 : index
    %33 = vector.load %arg11[%c3_30, %c0_31] : memref<8x768xf32, #tpu.memory_space<vmem>>, vector<1x768xf32>
    tpu.vector_store %arg11[%c3_30, %c0_31], %32 {strides = array<i32>} : memref<8x768xf32, #tpu.memory_space<vmem>>, vector<1x768xf32>,
    %c4 = arith.constant 4 : index
    %c0_32 = arith.constant 0 : index
    %34 = vector.load %arg11[%c4, %c0_32] : memref<8x768xf32, #tpu.memory_space<vmem>>, vector<1x768xf32>
    %35 = vector.extract_strided_slice %5 {offsets = [4, 0], sizes = [1, 128], strides = [1, 1]} : vector<8x128xbf16> to vector<1x128xbf16>
    %c4_33 = arith.constant 4 : index
    %c0_34 = arith.constant 0 : index
    %c0_35 = arith.constant 0 : index
    %36 = vector.load %arg2[%c4_33, %c0_34, %c0_35] : memref<8x128x768xbf16, #tpu.memory_space<vmem>>, vector<1x128x768xbf16>
    %37 = vector.shape_cast %36 : vector<1x128x768xbf16> to vector<128x768xbf16>
    %cst_36 = arith.constant dense<0.000000e+00> : vector<1x768xf32>
    %38 = tpu.matmul %35, %37, %cst_36 {dimension_numbers = #tpu.dot_dimension_numbers<[1], [0], [0], [1], [0, 0, 1, 1], [], []>} : vector<1x128xbf16>, vector<128x768xbf16>, vector<1x768xf32> -> vector<1x768xf32>
    %39 = arith.addf %34, %38 : vector<1x768xf32>
    %c4_37 = arith.constant 4 : index
    %c0_38 = arith.constant 0 : index
    %40 = vector.load %arg11[%c4_37, %c0_38] : memref<8x768xf32, #tpu.memory_space<vmem>>, vector<1x768xf32>
    tpu.vector_store %arg11[%c4_37, %c0_38], %39 {strides = array<i32>} : memref<8x768xf32, #tpu.memory_space<vmem>>, vector<1x768xf32>,
    %c5 = arith.constant 5 : index
    %c0_39 = arith.constant 0 : index
    %41 = vector.load %arg11[%c5, %c0_39] : memref<8x768xf32, #tpu.memory_space<vmem>>, vector<1x768xf32>
    %42 = vector.extract_strided_slice %5 {offsets = [5, 0], sizes = [1, 128], strides = [1, 1]} : vector<8x128xbf16> to vector<1x128xbf16>
    %c5_40 = arith.constant 5 : index
    %c0_41 = arith.constant 0 : index
    %c0_42 = arith.constant 0 : index
    %43 = vector.load %arg2[%c5_40, %c0_41, %c0_42] : memref<8x128x768xbf16, #tpu.memory_space<vmem>>, vector<1x128x768xbf16>
    %44 = vector.shape_cast %43 : vector<1x128x768xbf16> to vector<128x768xbf16>
    %cst_43 = arith.constant dense<0.000000e+00> : vector<1x768xf32>
    %45 = tpu.matmul %42, %44, %cst_43 {dimension_numbers = #tpu.dot_dimension_numbers<[1], [0], [0], [1], [0, 0, 1, 1], [], []>} : vector<1x128xbf16>, vector<128x768xbf16>, vector<1x768xf32> -> vector<1x768xf32>
    %46 = arith.addf %41, %45 : vector<1x768xf32>
    %c5_44 = arith.constant 5 : index
    %c0_45 = arith.constant 0 : index
    %47 = vector.load %arg11[%c5_44, %c0_45] : memref<8x768xf32, #tpu.memory_space<vmem>>, vector<1x768xf32>
    tpu.vector_store %arg11[%c5_44, %c0_45], %46 {strides = array<i32>} : memref<8x768xf32, #tpu.memory_space<vmem>>, vector<1x768xf32>,
    %c6 = arith.constant 6 : index
    %c0_46 = arith.constant 0 : index
    %48 = vector.load %arg11[%c6, %c0_46] : memref<8x768xf32, #tpu.memory_space<vmem>>, vector<1x768xf32>
    %49 = vector.extract_strided_slice %5 {offsets = [6, 0], sizes = [1, 128], strides = [1, 1]} : vector<8x128xbf16> to vector<1x128xbf16>
    %c6_47 = arith.constant 6 : index
    %c0_48 = arith.constant 0 : index
    %c0_49 = arith.constant 0 : index
    %50 = vector.load %arg2[%c6_47, %c0_48, %c0_49] : memref<8x128x768xbf16, #tpu.memory_space<vmem>>, vector<1x128x768xbf16>
    %51 = vector.shape_cast %50 : vector<1x128x768xbf16> to vector<128x768xbf16>
    %cst_50 = arith.constant dense<0.000000e+00> : vector<1x768xf32>
    %52 = tpu.matmul %49, %51, %cst_50 {dimension_numbers = #tpu.dot_dimension_numbers<[1], [0], [0], [1], [0, 0, 1, 1], [], []>} : vector<1x128xbf16>, vector<128x768xbf16>, vector<1x768xf32> -> vector<1x768xf32>
    %53 = arith.addf %48, %52 : vector<1x768xf32>
    %c6_51 = arith.constant 6 : index
    %c0_52 = arith.constant 0 : index
    %54 = vector.load %arg11[%c6_51, %c0_52] : memref<8x768xf32, #tpu.memory_space<vmem>>, vector<1x768xf32>
    tpu.vector_store %arg11[%c6_51, %c0_52], %53 {strides = array<i32>} : memref<8x768xf32, #tpu.memory_space<vmem>>, vector<1x768xf32>,
    %c7 = arith.constant 7 : index
    %c0_53 = arith.constant 0 : index
    %55 = vector.load %arg11[%c7, %c0_53] : memref<8x768xf32, #tpu.memory_space<vmem>>, vector<1x768xf32>
    %56 = vector.extract_strided_slice %5 {offsets = [7, 0], sizes = [1, 128], strides = [1, 1]} : vector<8x128xbf16> to vector<1x128xbf16>
    %c7_54 = arith.constant 7 : index
    %c0_55 = arith.constant 0 : index
    %c0_56 = arith.constant 0 : index
    %57 = vector.load %arg2[%c7_54, %c0_55, %c0_56] : memref<8x128x768xbf16, #tpu.memory_space<vmem>>, vector<1x128x768xbf16>
    %58 = vector.shape_cast %57 : vector<1x128x768xbf16> to vector<128x768xbf16>
    %cst_57 = arith.constant dense<0.000000e+00> : vector<1x768xf32>
    %59 = tpu.matmul %56, %58, %cst_57 {dimension_numbers = #tpu.dot_dimension_numbers<[1], [0], [0], [1], [0, 0, 1, 1], [], []>} : vector<1x128xbf16>, vector<128x768xbf16>, vector<1x768xf32> -> vector<1x768xf32>
    %60 = arith.addf %55, %59 : vector<1x768xf32>
    %c7_58 = arith.constant 7 : index
    %c0_59 = arith.constant 0 : index
    %61 = vector.load %arg11[%c7_58, %c0_59] : memref<8x768xf32, #tpu.memory_space<vmem>>, vector<1x768xf32>
    tpu.vector_store %arg11[%c7_58, %c0_59], %60 {strides = array<i32>} : memref<8x768xf32, #tpu.memory_space<vmem>>, vector<1x768xf32>,
    %62 = arith.truncf %4 : vector<8x128xf32> to vector<8x128xbf16>
    %c0_60 = arith.constant 0 : index
    %c0_61 = arith.constant 0 : index
    %63 = vector.load %arg12[%c0_60, %c0_61] : memref<8x768xf32, #tpu.memory_space<vmem>>, vector<1x768xf32>
    %64 = vector.extract_strided_slice %62 {offsets = [0, 0], sizes = [1, 128], strides = [1, 1]} : vector<8x128xbf16> to vector<1x128xbf16>
    %c0_62 = arith.constant 0 : index
    %c0_63 = arith.constant 0 : index
    %c0_64 = arith.constant 0 : index
    %65 = vector.load %arg3[%c0_62, %c0_63, %c0_64] : memref<8x128x768xbf16, #tpu.memory_space<vmem>>, vector<1x128x768xbf16>
    %66 = vector.shape_cast %65 : vector<1x128x768xbf16> to vector<128x768xbf16>
    %cst_65 = arith.constant dense<0.000000e+00> : vector<1x768xf32>
    %67 = tpu.matmul %64, %66, %cst_65 {dimension_numbers = #tpu.dot_dimension_numbers<[1], [0], [0], [1], [0, 0, 1, 1], [], []>} : vector<1x128xbf16>, vector<128x768xbf16>, vector<1x768xf32> -> vector<1x768xf32>
    %68 = arith.addf %63, %67 : vector<1x768xf32>
    %c0_66 = arith.constant 0 : index
    %c0_67 = arith.constant 0 : index
    %69 = vector.load %arg12[%c0_66, %c0_67] : memref<8x768xf32, #tpu.memory_space<vmem>>, vector<1x768xf32>
    tpu.vector_store %arg12[%c0_66, %c0_67], %68 {strides = array<i32>} : memref<8x768xf32, #tpu.memory_space<vmem>>, vector<1x768xf32>,
    %c1_68 = arith.constant 1 : index
    %c0_69 = arith.constant 0 : index
    %70 = vector.load %arg12[%c1_68, %c0_69] : memref<8x768xf32, #tpu.memory_space<vmem>>, vector<1x768xf32>
    %71 = vector.extract_strided_slice %62 {offsets = [1, 0], sizes = [1, 128], strides = [1, 1]} : vector<8x128xbf16> to vector<1x128xbf16>
    %c1_70 = arith.constant 1 : index
    %c0_71 = arith.constant 0 : index
    %c0_72 = arith.constant 0 : index
    %72 = vector.load %arg3[%c1_70, %c0_71, %c0_72] : memref<8x128x768xbf16, #tpu.memory_space<vmem>>, vector<1x128x768xbf16>
    %73 = vector.shape_cast %72 : vector<1x128x768xbf16> to vector<128x768xbf16>
    %cst_73 = arith.constant dense<0.000000e+00> : vector<1x768xf32>
    %74 = tpu.matmul %71, %73, %cst_73 {dimension_numbers = #tpu.dot_dimension_numbers<[1], [0], [0], [1], [0, 0, 1, 1], [], []>} : vector<1x128xbf16>, vector<128x768xbf16>, vector<1x768xf32> -> vector<1x768xf32>
    %75 = arith.addf %70, %74 : vector<1x768xf32>
    %c1_74 = arith.constant 1 : index
    %c0_75 = arith.constant 0 : index
    %76 = vector.load %arg12[%c1_74, %c0_75] : memref<8x768xf32, #tpu.memory_space<vmem>>, vector<1x768xf32>
    tpu.vector_store %arg12[%c1_74, %c0_75], %75 {strides = array<i32>} : memref<8x768xf32, #tpu.memory_space<vmem>>, vector<1x768xf32>,
    %c2_76 = arith.constant 2 : index
    %c0_77 = arith.constant 0 : index
    %77 = vector.load %arg12[%c2_76, %c0_77] : memref<8x768xf32, #tpu.memory_space<vmem>>, vector<1x768xf32>
    %78 = vector.extract_strided_slice %62 {offsets = [2, 0], sizes = [1, 128], strides = [1, 1]} : vector<8x128xbf16> to vector<1x128xbf16>
    %c2_78 = arith.constant 2 : index
    %c0_79 = arith.constant 0 : index
    %c0_80 = arith.constant 0 : index
    %79 = vector.load %arg3[%c2_78, %c0_79, %c0_80] : memref<8x128x768xbf16, #tpu.memory_space<vmem>>, vector<1x128x768xbf16>
    %80 = vector.shape_cast %79 : vector<1x128x768xbf16> to vector<128x768xbf16>
    %cst_81 = arith.constant dense<0.000000e+00> : vector<1x768xf32>
    %81 = tpu.matmul %78, %80, %cst_81 {dimension_numbers = #tpu.dot_dimension_numbers<[1], [0], [0], [1], [0, 0, 1, 1], [], []>} : vector<1x128xbf16>, vector<128x768xbf16>, vector<1x768xf32> -> vector<1x768xf32>
    %82 = arith.addf %77, %81 : vector<1x768xf32>
    %c2_82 = arith.constant 2 : index
    %c0_83 = arith.constant 0 : index
    %83 = vector.load %arg12[%c2_82, %c0_83] : memref<8x768xf32, #tpu.memory_space<vmem>>, vector<1x768xf32>
    tpu.vector_store %arg12[%c2_82, %c0_83], %82 {strides = array<i32>} : memref<8x768xf32, #tpu.memory_space<vmem>>, vector<1x768xf32>,
    %c3_84 = arith.constant 3 : index
    %c0_85 = arith.constant 0 : index
    %84 = vector.load %arg12[%c3_84, %c0_85] : memref<8x768xf32, #tpu.memory_space<vmem>>, vector<1x768xf32>
    %85 = vector.extract_strided_slice %62 {offsets = [3, 0], sizes = [1, 128], strides = [1, 1]} : vector<8x128xbf16> to vector<1x128xbf16>
    %c3_86 = arith.constant 3 : index
    %c0_87 = arith.constant 0 : index
    %c0_88 = arith.constant 0 : index
    %86 = vector.load %arg3[%c3_86, %c0_87, %c0_88] : memref<8x128x768xbf16, #tpu.memory_space<vmem>>, vector<1x128x768xbf16>
    %87 = vector.shape_cast %86 : vector<1x128x768xbf16> to vector<128x768xbf16>
    %cst_89 = arith.constant dense<0.000000e+00> : vector<1x768xf32>
    %88 = tpu.matmul %85, %87, %cst_89 {dimension_numbers = #tpu.dot_dimension_numbers<[1], [0], [0], [1], [0, 0, 1, 1], [], []>} : vector<1x128xbf16>, vector<128x768xbf16>, vector<1x768xf32> -> vector<1x768xf32>
    %89 = arith.addf %84, %88 : vector<1x768xf32>
    %c3_90 = arith.constant 3 : index
    %c0_91 = arith.constant 0 : index
    %90 = vector.load %arg12[%c3_90, %c0_91] : memref<8x768xf32, #tpu.memory_space<vmem>>, vector<1x768xf32>
    tpu.vector_store %arg12[%c3_90, %c0_91], %89 {strides = array<i32>} : memref<8x768xf32, #tpu.memory_space<vmem>>, vector<1x768xf32>,
    %c4_92 = arith.constant 4 : index
    %c0_93 = arith.constant 0 : index
    %91 = vector.load %arg12[%c4_92, %c0_93] : memref<8x768xf32, #tpu.memory_space<vmem>>, vector<1x768xf32>
    %92 = vector.extract_strided_slice %62 {offsets = [4, 0], sizes = [1, 128], strides = [1, 1]} : vector<8x128xbf16> to vector<1x128xbf16>
    %c4_94 = arith.constant 4 : index
    %c0_95 = arith.constant 0 : index
    %c0_96 = arith.constant 0 : index
    %93 = vector.load %arg3[%c4_94, %c0_95, %c0_96] : memref<8x128x768xbf16, #tpu.memory_space<vmem>>, vector<1x128x768xbf16>
    %94 = vector.shape_cast %93 : vector<1x128x768xbf16> to vector<128x768xbf16>
    %cst_97 = arith.constant dense<0.000000e+00> : vector<1x768xf32>
    %95 = tpu.matmul %92, %94, %cst_97 {dimension_numbers = #tpu.dot_dimension_numbers<[1], [0], [0], [1], [0, 0, 1, 1], [], []>} : vector<1x128xbf16>, vector<128x768xbf16>, vector<1x768xf32> -> vector<1x768xf32>
    %96 = arith.addf %91, %95 : vector<1x768xf32>
    %c4_98 = arith.constant 4 : index
    %c0_99 = arith.constant 0 : index
    %97 = vector.load %arg12[%c4_98, %c0_99] : memref<8x768xf32, #tpu.memory_space<vmem>>, vector<1x768xf32>
    tpu.vector_store %arg12[%c4_98, %c0_99], %96 {strides = array<i32>} : memref<8x768xf32, #tpu.memory_space<vmem>>, vector<1x768xf32>,
    %c5_100 = arith.constant 5 : index
    %c0_101 = arith.constant 0 : index
    %98 = vector.load %arg12[%c5_100, %c0_101] : memref<8x768xf32, #tpu.memory_space<vmem>>, vector<1x768xf32>
    %99 = vector.extract_strided_slice %62 {offsets = [5, 0], sizes = [1, 128], strides = [1, 1]} : vector<8x128xbf16> to vector<1x128xbf16>
    %c5_102 = arith.constant 5 : index
    %c0_103 = arith.constant 0 : index
    %c0_104 = arith.constant 0 : index
    %100 = vector.load %arg3[%c5_102, %c0_103, %c0_104] : memref<8x128x768xbf16, #tpu.memory_space<vmem>>, vector<1x128x768xbf16>
    %101 = vector.shape_cast %100 : vector<1x128x768xbf16> to vector<128x768xbf16>
    %cst_105 = arith.constant dense<0.000000e+00> : vector<1x768xf32>
    %102 = tpu.matmul %99, %101, %cst_105 {dimension_numbers = #tpu.dot_dimension_numbers<[1], [0], [0], [1], [0, 0, 1, 1], [], []>} : vector<1x128xbf16>, vector<128x768xbf16>, vector<1x768xf32> -> vector<1x768xf32>
    %103 = arith.addf %98, %102 : vector<1x768xf32>
    %c5_106 = arith.constant 5 : index
    %c0_107 = arith.constant 0 : index
    %104 = vector.load %arg12[%c5_106, %c0_107] : memref<8x768xf32, #tpu.memory_space<vmem>>, vector<1x768xf32>
    tpu.vector_store %arg12[%c5_106, %c0_107], %103 {strides = array<i32>} : memref<8x768xf32, #tpu.memory_space<vmem>>, vector<1x768xf32>,
    %c6_108 = arith.constant 6 : index
    %c0_109 = arith.constant 0 : index
    %105 = vector.load %arg12[%c6_108, %c0_109] : memref<8x768xf32, #tpu.memory_space<vmem>>, vector<1x768xf32>
    %106 = vector.extract_strided_slice %62 {offsets = [6, 0], sizes = [1, 128], strides = [1, 1]} : vector<8x128xbf16> to vector<1x128xbf16>
    %c6_110 = arith.constant 6 : index
    %c0_111 = arith.constant 0 : index
    %c0_112 = arith.constant 0 : index
    %107 = vector.load %arg3[%c6_110, %c0_111, %c0_112] : memref<8x128x768xbf16, #tpu.memory_space<vmem>>, vector<1x128x768xbf16>
    %108 = vector.shape_cast %107 : vector<1x128x768xbf16> to vector<128x768xbf16>
    %cst_113 = arith.constant dense<0.000000e+00> : vector<1x768xf32>
    %109 = tpu.matmul %106, %108, %cst_113 {dimension_numbers = #tpu.dot_dimension_numbers<[1], [0], [0], [1], [0, 0, 1, 1], [], []>} : vector<1x128xbf16>, vector<128x768xbf16>, vector<1x768xf32> -> vector<1x768xf32>
    %110 = arith.addf %105, %109 : vector<1x768xf32>
    %c6_114 = arith.constant 6 : index
    %c0_115 = arith.constant 0 : index
    %111 = vector.load %arg12[%c6_114, %c0_115] : memref<8x768xf32, #tpu.memory_space<vmem>>, vector<1x768xf32>
    tpu.vector_store %arg12[%c6_114, %c0_115], %110 {strides = array<i32>} : memref<8x768xf32, #tpu.memory_space<vmem>>, vector<1x768xf32>,
    %c7_116 = arith.constant 7 : index
    %c0_117 = arith.constant 0 : index
    %112 = vector.load %arg12[%c7_116, %c0_117] : memref<8x768xf32, #tpu.memory_space<vmem>>, vector<1x768xf32>
    %113 = vector.extract_strided_slice %62 {offsets = [7, 0], sizes = [1, 128], strides = [1, 1]} : vector<8x128xbf16> to vector<1x128xbf16>
    %c7_118 = arith.constant 7 : index
    %c0_119 = arith.constant 0 : index
    %c0_120 = arith.constant 0 : index
    %114 = vector.load %arg3[%c7_118, %c0_119, %c0_120] : memref<8x128x768xbf16, #tpu.memory_space<vmem>>, vector<1x128x768xbf16>
    %115 = vector.shape_cast %114 : vector<1x128x768xbf16> to vector<128x768xbf16>
    %cst_121 = arith.constant dense<0.000000e+00> : vector<1x768xf32>
    %116 = tpu.matmul %113, %115, %cst_121 {dimension_numbers = #tpu.dot_dimension_numbers<[1], [0], [0], [1], [0, 0, 1, 1], [], []>} : vector<1x128xbf16>, vector<128x768xbf16>, vector<1x768xf32> -> vector<1x768xf32>
    %117 = arith.addf %112, %116 : vector<1x768xf32>
    %c7_122 = arith.constant 7 : index
    %c0_123 = arith.constant 0 : index
    %118 = vector.load %arg12[%c7_122, %c0_123] : memref<8x768xf32, #tpu.memory_space<vmem>>, vector<1x768xf32>
    tpu.vector_store %arg12[%c7_122, %c0_123], %117 {strides = array<i32>} : memref<8x768xf32, #tpu.memory_space<vmem>>, vector<1x768xf32>,
    %c0_124 = arith.constant 0 : index
    %c0_125 = arith.constant 0 : index
    %119 = vector.load %arg13[%c0_124, %c0_125] : memref<8x1xf32, #tpu.memory_space<vmem>>, vector<8x1xf32>
    %cst_126 = arith.constant dense<0.000000e+00> : vector<8xf32>
    %120 = vector.multi_reduction <add>, %3, %cst_126 [1] : vector<8x128xf32> to vector<8xf32>
    %121 = vector.shape_cast %120 : vector<8xf32> to vector<8x1xf32>
    %122 = arith.addf %119, %121 : vector<8x1xf32>
    %c0_127 = arith.constant 0 : index
    %c0_128 = arith.constant 0 : index
    %123 = vector.load %arg13[%c0_127, %c0_128] : memref<8x1xf32, #tpu.memory_space<vmem>>, vector<8x1xf32>
    tpu.vector_store %arg13[%c0_127, %c0_128], %122 {strides = array<i32>} : memref<8x1xf32, #tpu.memory_space<vmem>>, vector<8x1xf32>,
    %c0_129 = arith.constant 0 : index
    %c0_130 = arith.constant 0 : index
    %124 = vector.load %arg14[%c0_129, %c0_130] : memref<8x1xf32, #tpu.memory_space<vmem>>, vector<8x1xf32>
    %cst_131 = arith.constant dense<0.000000e+00> : vector<8xf32>
    %125 = vector.multi_reduction <add>, %4, %cst_131 [1] : vector<8x128xf32> to vector<8xf32>
    %126 = vector.shape_cast %125 : vector<8xf32> to vector<8x1xf32>
    %127 = arith.addf %124, %126 : vector<8x1xf32>
    %c0_132 = arith.constant 0 : index
    %c0_133 = arith.constant 0 : index
    %128 = vector.load %arg14[%c0_132, %c0_133] : memref<8x1xf32, #tpu.memory_space<vmem>>, vector<8x1xf32>
    tpu.vector_store %arg14[%c0_132, %c0_133], %127 {strides = array<i32>} : memref<8x1xf32, #tpu.memory_space<vmem>>, vector<8x1xf32>,
    %c1_i32 = arith.constant 1 : i32
    %129 = arith.cmpi eq, %arg1, %c1_i32 : i32
    %130 = arith.extui %129 : i1 to i32
    %c0_i32_134 = arith.constant 0 : i32
    %131 = arith.cmpi ne, %130, %c0_i32_134 : i32
    scf.if %131 {
      %c0_135 = arith.constant 0 : index
      %c0_136 = arith.constant 0 : index
      %132 = vector.load %arg13[%c0_135, %c0_136] : memref<8x1xf32, #tpu.memory_space<vmem>>, vector<8x1xf32>
      %cst_137 = arith.constant -9.99999971E-10 : f32
      %133 = vector.broadcast %cst_137 : f32 to vector<8x1xf32>
      %134 = arith.maximumf %132, %133 : vector<8x1xf32>
      %135 = tpu.reciprocal %134 {approx = true} : vector<8x1xf32> -> vector<8x1xf32>
      %c0_138 = arith.constant 0 : index
      %c0_139 = arith.constant 0 : index
      %136 = vector.load %arg14[%c0_138, %c0_139] : memref<8x1xf32, #tpu.memory_space<vmem>>, vector<8x1xf32>
      %cst_140 = arith.constant -9.99999971E-10 : f32
      %137 = vector.broadcast %cst_140 : f32 to vector<8x1xf32>
      %138 = arith.maximumf %136, %137 : vector<8x1xf32>
      %139 = tpu.reciprocal %138 {approx = true} : vector<8x1xf32> -> vector<8x1xf32>
      %c0_141 = arith.constant 0 : index
      %c0_142 = arith.constant 0 : index
      %140 = vector.load %arg11[%c0_141, %c0_142] : memref<8x768xf32, #tpu.memory_space<vmem>>, vector<8x768xf32>
      %141 = vector.broadcast %135 : vector<8x1xf32> to vector<8x768xf32>
      %142 = arith.mulf %140, %141 : vector<8x768xf32>
      %c0_143 = arith.constant 0 : index
      %c0_144 = arith.constant 0 : index
      %143 = vector.load %arg12[%c0_143, %c0_144] : memref<8x768xf32, #tpu.memory_space<vmem>>, vector<8x768xf32>
      %144 = vector.broadcast %139 : vector<8x1xf32> to vector<8x768xf32>
      %145 = arith.mulf %143, %144 : vector<8x768xf32>
      %146 = arith.subf %142, %145 : vector<8x768xf32>
      %147 = math.absf %146 : vector<8x768xf32>
      %c0_145 = arith.constant 0 : index
      %c0_146 = arith.constant 0 : index
      %148 = vector.load %arg6[%c0_145, %c0_146] : memref<768x128xf32, #tpu.memory_space<vmem>>, vector<768x128xf32>
      %cst_147 = arith.constant dense<0.000000e+00> : vector<8x128xf32>
      %149 = tpu.matmul %142, %148, %cst_147 {dimension_numbers = #tpu.dot_dimension_numbers<[1], [0], [0], [1], [0, 0, 1, 1], [], []>} : vector<8x768xf32>, vector<768x128xf32>, vector<8x128xf32> -> vector<8x128xf32>
      %c0_148 = arith.constant 0 : index
      %c0_149 = arith.constant 0 : index
      %150 = vector.load %arg7[%c0_148, %c0_149] : memref<768x128xf32, #tpu.memory_space<vmem>>, vector<768x128xf32>
      %cst_150 = arith.constant dense<0.000000e+00> : vector<8x128xf32>
      %151 = tpu.matmul %145, %150, %cst_150 {dimension_numbers = #tpu.dot_dimension_numbers<[1], [0], [0], [1], [0, 0, 1, 1], [], []>} : vector<8x768xf32>, vector<768x128xf32>, vector<8x128xf32> -> vector<8x128xf32>
      %152 = arith.addf %149, %151 : vector<8x128xf32>
      %c0_151 = arith.constant 0 : index
      %c0_152 = arith.constant 0 : index
      %153 = vector.load %arg8[%c0_151, %c0_152] : memref<768x128xf32, #tpu.memory_space<vmem>>, vector<768x128xf32>
      %cst_153 = arith.constant dense<0.000000e+00> : vector<8x128xf32>
      %154 = tpu.matmul %147, %153, %cst_153 {dimension_numbers = #tpu.dot_dimension_numbers<[1], [0], [0], [1], [0, 0, 1, 1], [], []>} : vector<8x768xf32>, vector<768x128xf32>, vector<8x128xf32> -> vector<8x128xf32>
      %155 = arith.addf %152, %154 : vector<8x128xf32>
      %c0_154 = arith.constant 0 : index
      %c0_155 = arith.constant 0 : index
      %156 = vector.load %arg9[%c0_154, %c0_155] : memref<1x128xf32, #tpu.memory_space<vmem>>, vector<1x128xf32>
      %157 = vector.broadcast %156 : vector<1x128xf32> to vector<8x128xf32>
      %158 = arith.addf %155, %157 : vector<8x128xf32>
      %c0_156 = arith.constant 0 : index
      %c0_157 = arith.constant 0 : index
      %159 = vector.load %arg10[%c0_156, %c0_157] : memref<8x128xf32, #tpu.memory_space<vmem>>, vector<8x128xf32>
      tpu.vector_store %arg10[%c0_156, %c0_157], %158 {strides = array<i32>} : memref<8x128xf32, #tpu.memory_space<vmem>>, vector<8x128xf32>,
    } else {
    }
    return
  }
  func.func @transform_0(%arg0: i32, %arg1: i32) -> (i32, i32, i32) {
    %c0_i32 = arith.constant 0 : i32
    %c0_i32_0 = arith.constant 0 : i32
    return %arg0, %arg1, %c0_i32 : i32, i32, i32
  }
  func.func @transform_1(%arg0: i32, %arg1: i32) -> (i32, i32, i32) {
    %c0_i32 = arith.constant 0 : i32
    %c0_i32_0 = arith.constant 0 : i32
    return %arg0, %arg1, %c0_i32 : i32, i32, i32
  }
  func.func @transform_2(%arg0: i32, %arg1: i32) -> (i32, i32) {
    %c0_i32 = arith.constant 0 : i32
    return %arg0, %arg1 : i32, i32
  }
  func.func @transform_3(%arg0: i32, %arg1: i32) -> (i32, i32) {
    %c0_i32 = arith.constant 0 : i32
    return %arg0, %arg1 : i32, i32
  }
  func.func @transform_4(%arg0: i32, %arg1: i32) -> (i32, i32) {
    %c0_i32 = arith.constant 0 : i32
    %c0_i32_0 = arith.constant 0 : i32
    %c0_i32_1 = arith.constant 0 : i32
    return %c0_i32, %c0_i32_0 : i32, i32
  }
  func.func @transform_5(%arg0: i32, %arg1: i32) -> (i32, i32) {
    %c0_i32 = arith.constant 0 : i32
    %c0_i32_0 = arith.constant 0 : i32
    %c0_i32_1 = arith.constant 0 : i32
    return %c0_i32, %c0_i32_0 : i32, i32
  }
  func.func @transform_6(%arg0: i32, %arg1: i32) -> (i32, i32) {
    %c0_i32 = arith.constant 0 : i32
    %c0_i32_0 = arith.constant 0 : i32
    %c0_i32_1 = arith.constant 0 : i32
    return %c0_i32, %c0_i32_0 : i32, i32
  }
  func.func @transform_7(%arg0: i32, %arg1: i32) -> (i32, i32) {
    %c0_i32 = arith.constant 0 : i32
    %c0_i32_0 = arith.constant 0 : i32
    %c0_i32_1 = arith.constant 0 : i32
    return %c0_i32, %c0_i32_0 : i32, i32
  }
  func.func @transform_8(%arg0: i32, %arg1: i32) -> (i32, i32) {
    %c0_i32 = arith.constant 0 : i32
    %c0_i32_0 = arith.constant 0 : i32
    return %arg0, %c0_i32 : i32, i32
  }
}

</mosaic_0001>

<bundles_post_ra>
// kernel: tpu_custom_call.1
= control target key start
LH: loop header
LB: loop body
LE: loop exit
PB: predicated region body
PF: predicated region fallthrough
CT: control target
= control target key end

     0   :  { %s14757_s0 = inlined_call_operand.hbm [shape: bf16[16,256,768], index: 0, kind: input, shape index: {}]   ;;  %s14758_s1 = inlined_call_operand.hbm [shape: bf16[16,256,768], index: 1, kind: input, shape index: {}]   ;;  %s14759_s2 = inlined_call_operand.hbm [shape: f32[16,256], index: 2, kind: input, shape index: {}]   ;;  %s14760_s3 = inlined_call_operand.hbm [shape: f32[16,256], index: 3, kind: input, shape index: {}]   ;;  %s14761_s4 = inlined_call_operand.hbm [shape: f32[768,128], index: 4, kind: input, shape index: {}]   ;;  %s14762_s5 = inlined_call_operand.hbm [shape: f32[768,128], index: 5, kind: input, shape index: {}]   ;;  %s14763_s6 = inlined_call_operand.hbm [shape: f32[768,128], index: 6, kind: input, shape index: {}]   ;;  %s14764_s7 = inlined_call_operand.hbm [shape: f32[1,128], index: 7, kind: input, shape index: {}]   ;;  %s14765_s8 = inlined_call_operand.hbm [shape: f32[16,128], index: 8, kind: output, shape index: {}]  }
   0x1   :  { %14787 = sst [smem:[#allocation49_spill]] %s14765_s8 }
   0x2   :  { %13 = vsyncpa [#allocation7], 0 }
   0x3   :  { %15 = vsyncpa [#allocation7 + $0x1], 0 }
   0x4   :  { %16 = vsyncpa [#allocation10], 0 }
   0x5   :  { %18 = vsyncpa [#allocation10 + $0x1], 0 }
   0x6   :  { %19 = vsyncpa [#allocation13], 0 }
   0x7   :  { %21 = vsyncpa [#allocation13 + $0x1], 0 }
   0x8   :  { %22 = vsyncpa [#allocation16], 0 }
   0x9   :  { %23 = vsyncpa [#allocation19], 0 }
   0xa   :  { %24 = vsyncpa [#allocation8], 0 }
   0xb   :  { %26 = vsyncpa [#allocation8 + $0x1], 0  ;;  %s13104_s27 = smov 0   ;;  %s13106_s28 = smov 0  }
   0xc   :  { %s13108_s29 = smov 0   ;;  %s13110_s30 = smov 0  }
   0xd   :  { %s13112_s9 = smov 0   ;;  %s13114_s10 = smov 0  }
   0xe   :  { %s13116_s11 = smov 0   ;;  %s13118_s12 = smov 0  }
   0xf   :  { %s13120_s13 = smov 0   ;;  %s13122_s14 = smov 0  }
  0x10   :  { %s13124_s15 = smov 0  }
  0x11 LB: > { %14788 = sst [smem:[#allocation34_spill]] %s12992_s27  ;;  %s13158_s16 = sadd.s32 4294967295, %s13032_s15   ;;  %s13032_s15 = sphi %s13124_s15, %s32_s15   ;;  %s13028_s14 = sphi %s13122_s14, %s14848_s14   ;;  %s13024_s13 = sphi %s13120_s13, %s14847_s13   ;;  %s13020_s12 = sphi %s13118_s12, %s14846_s12   ;;  %s13016_s11 = sphi %s13116_s11, %s14845_s11   ;;  %s13012_s10 = sphi %s13114_s10, %s14844_s10   ;;  %s13008_s9 = sphi %s13112_s9, %s14843_s9   ;;  %s13004_s30 = sphi %s13110_s30, %s14839_s30   ;;  %s13000_s29 = sphi %s13108_s29, %s14838_s29   ;;  %s12996_s28 = sphi %s13106_s28, %s14837_s28   ;;  %s12992_s27 = sphi %s13104_s27, %s14836_s27  }
  0x12   : > { %14789 = sst [smem:[#allocation35_spill]] %s12996_s28  ;;  %s9296_s17 = sadd.s32 4294967294, %s13032_s15  }
  0x13   : > { %14790 = sst [smem:[#allocation36_spill]] %s13000_s29  ;;  %s41_s18 = sadd.s32 1, %s13024_s13 }
  0x14   : > { %14791 = sst [smem:[#allocation37_spill]] %s13008_s9  ;;  %s44_s19 = sadd.s32 1, %s13028_s14 }
  0x15   : > { %14792 = sst [smem:[#allocation38_spill]] %s13016_s11  ;;  %p42_p0 = scmp.ge.s32.totalorder %s41_s18, 2 }
  0x16   : > { %14793 = sst [smem:[#allocation39_spill]] %s13020_s12  ;;  %s53_s20 = sadd.s32 1, %s13012_s10 }
  0x17   : > { %14794 = sst [smem:[#allocation40_spill]] %s13158_s16  ;;  %p60_p1 = scmp.ne.s32.totalorder %s13012_s10, %s13008_s9 }
  0x18   : > { %p61_p2 = scmp.eq.s32.totalorder %s13032_s15, 0  ;;  %s14850_s18 = smov (%p42_p0, %s41_s18), 0 }
  0x19   : > { %14795 = sst [smem:[#allocation41_spill]] %s14850_s18  ;;  %s14852_s19 = smov (!%p42_p0, %s44_s19), %s13028_s14 }
  0x1a   : > { %s49_s21 = ssub.s32 %s13024_s13, %s14850_s18  ;;  %p13172_p3 = por %p61_p2, %p60_p1 }
  0x1b   : > { %p46_p4 = scmp.ge.s32.totalorder %s14852_s19, 2  ;;  %p66_p5 = scmp.ne.s32.totalorder %s13008_s9, %s13004_s30 }
  0x1c   : > { %s14796_s22 = scalar_select %p13172_p3, 1, 0 }
  0x1d   : > { %p14771_p6 = scmp.eq.s32.totalorder %s13158_s16, 0  ;;  %s247_s23 = sadd.s32 1, %s13000_s29 }
  0x1e   : > { %s14854_s19 = smov (%p46_p4, %s14852_s19), 0  ;;  %p257_p8 = scmp.ne.s32.totalorder %s13000_s29, %s12996_s28 }
  0x1f   : > { %14797 = sst [smem:[#allocation42_spill]] %s14854_s19  ;;  %p13183_p7 = por %p14771_p6, %p66_p5 }
  0x20   : > { %s48_s25 = ssub.s32 %s13028_s14, %s14854_s19  ;;  %p258_p9 = scmp.eq.s32.totalorder %s13158_s16, 3 }
  0x21   : > { %s14798_s24 = scalar_select %p13183_p7, 1, 0 }
  0x22   : > { %s50_s26 = sor.u32 %s49_s21, %s48_s25  ;;  %p245_p10 = scmp.eq.s32.totalorder %s48_s25, 0 }
  0x23   : > { %14799 = sst [smem:[#allocation43_spill]] %s14798_s24  ;;  %p51_p11 = scmp.eq.s32.totalorder %s50_s26, 0 }
  0x24   : > { %p13192_p12 = por %p258_p9, %p257_p8  ;;  %p263_p13 = scmp.ne.s32.totalorder %s12996_s28, %s12992_s27 }
  0x25   : > { %s13197_s18 = scalar_select %p245_p10, %s13000_s29, %s247_s23  }
  0x26   : > { %s14800_s30 = scalar_select %p13192_p12, 1, 0 }
  0x27   : > { %14802 = sst [smem:[#allocation45_spill]] %s13197_s18  ;;  %p264_p0 = scmp.eq.s32.totalorder %s9296_s17, 3 }
  0x28   : > { %14801 = sst [smem:[#allocation44_spill]] %s14800_s30  ;;  %p9297_p1 = scmp.ge.s32.totalorder %s13032_s15, 1 }
  0x29   : > { %s13200_s8 = scalar_select %p51_p11, %s13012_s10, %s53_s20  }
  0x2a   : > { %p271_p2 = scmp.lt.s32.totalorder %s13032_s15, 5  ;;  %p13206_p4 = por %p264_p0, %p263_p13 }
  0x2b   : > { %14803 = sst [smem:[#allocation46_spill]] %s13200_s8  ;;  %s13034_s25 = smov [#allocation15]  }
  0x2c   : > { %s14804_s12 = scalar_select %p13206_p4, 1, 0 }
  0x2d   : > { %p13210_p5 = pnand %p9297_p1, %p271_p2  ;;  %s296_s23 = sshll.u32 %s13034_s25, 4  ;;  %s297_s23 = int_to_ptr.vmem [resolvable:$true] %s296_s23 }
  0x2e   : > { %14805 = sst [smem:[#allocation47_spill]] %s14804_s12  ;;  %s12722_s19 = scalar_lea.hbm %s14762_s5, 12288 }
  0x2f   : > { %s14806_s21 = scalar_select %p13210_p5, 1, 0 }
  0x30   : > { %p11428_p8 = pneg %p13210_p5  ;;  %p12723_p10 = scmp.ne.s32.totalorder %s14762_s5, %s12722_s19 }
  0x31   : > { %14807 = sst [smem:[#allocation48_spill]] %s14806_s21  ;;  %p12729_p1 = scmp.lt.u32.totalorder %s12722_s19, %s14762_s5 }
  0x32   : > { %p13218_p9 = pnand %p11428_p8, %p14771_p6 }
  0x34   : > { %p13230_p11 = pneg %p13218_p9 }
  0x36   : > { %p12725_p13 = pnand %p13230_p11, %p12723_p10 }
  0x38   : > { %p12726_p0 = pneg %p12725_p13 }
  0x3a   : > { %p12731_p2 = pnand %p12729_p1, %p12726_p0 }
  0x3c   : > { %12734 = shalt.err (!%p12731_p2)
}
  0x3d   : > { %s12735_s17 = scalar_lea.vmem %s297_s23, 12288  ;;  %p12743_p12 = scmp.lt.s32.totalorder %s297_s23, %s297_s23 }
  0x3e   : > { %p12736_p8 = scmp.ne.s32.totalorder %s297_s23, %s12735_s17  ;;  %p12744_p7 = scmp.lt.s32.totalorder %s12735_s17, %s12735_s17 }
  0x40   : > { %p12738_p6 = pnand %p12736_p8, %p13230_p11  ;;  %p12745_p5 = por %p12744_p7, %p12743_p12 }
  0x42   : > { %p12739_p4 = pneg %p12738_p6 }
  0x44   : > { %p12746_p3 = pnand %p12745_p5, %p12739_p4 }
  0x46   : > { %12749 = shalt.err (!%p12746_p3)
}
  0x47   : > { %s13035_s8 = smov 128   ;;  %s13036_s18 = smov 8  }
  0x48   : > { %11434 = dma.hbm_to_vmem [thread:$0]  (!%p13218_p9), %s14762_s5, 12288, %s297_s23, [#allocation16], %s13035_s8, %s13035_s8, %s13036_s18  }
  0x49   : > { %s13037_s26 = smov [#allocation14]   ;;  %s13038_s27 = smov [#allocation17]  }
  0x4a   : > { %s283_s25 = sshll.u32 %s13037_s26, 4  ;;  %s309_s17 = sshll.u32 %s13038_s27, 4  ;;  %s284_s25 = int_to_ptr.vmem [resolvable:$true] %s283_s25  ;;  %s310_s17 = int_to_ptr.vmem [resolvable:$true] %s309_s17 }
  0x4b   : > { %s12750_s28 = scalar_lea.hbm %s14761_s4, 12288 }
  0x4c   : > { %p12751_p3 = scmp.ne.s32.totalorder %s14761_s4, %s12750_s28  ;;  %p12757_p12 = scmp.lt.u32.totalorder %s12750_s28, %s14761_s4 }
  0x4e   : > { %p12753_p6 = pnand %p12751_p3, %p13230_p11 }
  0x50   : > { %p12754_p7 = pneg %p12753_p6 }
  0x52   : > { %p12759_p4 = pnand %p12757_p12, %p12754_p7 }
  0x54   : > { %12762 = shalt.err (!%p12759_p4)
}
  0x55   : > { %s12763_s23 = scalar_lea.vmem %s284_s25, 12288  ;;  %p12771_p0 = scmp.lt.s32.totalorder %s284_s25, %s284_s25 }
  0x56   : > { %p12764_p5 = scmp.ne.s32.totalorder %s284_s25, %s12763_s23  ;;  %p12772_p1 = scmp.lt.s32.totalorder %s12763_s23, %s12763_s23 }
  0x58   : > { %p12766_p10 = pnand %p12764_p5, %p13230_p11  ;;  %p12773_p2 = por %p12772_p1, %p12771_p0 }
  0x5a   : > { %p12767_p13 = pneg %p12766_p10 }
  0x5c   : > { %p12774_p8 = pnand %p12773_p2, %p12767_p13 }
  0x5e   : > { %12777 = shalt.err (!%p12774_p8)
}
  0x5f   : > { %11431 = dma.hbm_to_vmem [thread:$0]  (!%p13218_p9), %s14761_s4, 12288, %s284_s25, [#allocation13], %s13035_s8, %s13035_s8, %s13036_s18  }
  0x60   : > { %s12778_s16 = scalar_lea.hbm %s14763_s6, 12288 }
  0x61   : > { %p12779_p3 = scmp.ne.s32.totalorder %s14763_s6, %s12778_s16  ;;  %p12785_p12 = scmp.lt.u32.totalorder %s12778_s16, %s14763_s6 }
  0x63   : > { %p12781_p6 = pnand %p12779_p3, %p13230_p11 }
  0x65   : > { %p12782_p7 = pneg %p12781_p6 }
  0x67   : > { %p12787_p4 = pnand %p12785_p12, %p12782_p7 }
  0x69   : > { %12790 = shalt.err (!%p12787_p4)
}
  0x6a   : > { %s12791_s19 = scalar_lea.vmem %s310_s17, 12288  ;;  %p12799_p0 = scmp.lt.s32.totalorder %s310_s17, %s310_s17 }
  0x6b   : > { %p12792_p5 = scmp.ne.s32.totalorder %s310_s17, %s12791_s19  ;;  %p12800_p1 = scmp.lt.s32.totalorder %s12791_s19, %s12791_s19 }
  0x6d   : > { %p12794_p10 = pnand %p12792_p5, %p13230_p11  ;;  %p12801_p2 = por %p12800_p1, %p12799_p0 }
  0x6f   : > { %p12795_p13 = pneg %p12794_p10 }
  0x71   : > { %p12802_p8 = pnand %p12801_p2, %p12795_p13 }
  0x73   : > { %12805 = shalt.err (!%p12802_p8)
}
  0x74   : > { %11437 = dma.hbm_to_vmem [thread:$0]  (!%p13218_p9), %s14763_s6, 12288, %s310_s17, [#allocation16], %s13035_s8, %s13035_s8, %s13036_s18  }
  0x75   : > { %s13039_s23 = smov [#allocation18]   ;;  %s12806_s11 = scalar_lea.hbm %s14764_s7, 16 }
  0x76   : > { %s323_s27 = sshll.u32 %s13039_s23, 4  ;;  %p12807_p3 = scmp.ne.s32.totalorder %s14764_s7, %s12806_s11  ;;  %s324_s27 = int_to_ptr.vmem [resolvable:$true] %s323_s27 }
  0x77   : > { %p12813_p12 = scmp.lt.u32.totalorder %s12806_s11, %s14764_s7 }
  0x78   : > { %p12809_p6 = pnand %p12807_p3, %p13230_p11 }
  0x7a   : > { %p12810_p7 = pneg %p12809_p6 }
  0x7c   : > { %p12815_p4 = pnand %p12813_p12, %p12810_p7 }
  0x7e   : > { %12818 = shalt.err (!%p12815_p4)
}
  0x7f   : > { %s12819_s8 = scalar_lea.vmem %s324_s27, 16  ;;  %s12826_s18 = scalar_lea.vmem %s324_s27, 32 }
  0x80   : > { %p12820_p5 = scmp.ne.s32.totalorder %s324_s27, %s12819_s8  ;;  %p12827_p0 = scmp.lt.s32.totalorder %s324_s27, %s324_s27 }
  0x81   : > { %p12828_p1 = scmp.lt.s32.totalorder %s12826_s18, %s12819_s8 }
  0x82   : > { %p12822_p10 = pnand %p12820_p5, %p13230_p11 }
  0x83   : > { %p12829_p2 = por %p12828_p1, %p12827_p0 }
  0x84   : > { %p12823_p13 = pneg %p12822_p10 }
  0x86   : > { %p12830_p8 = pnand %p12829_p2, %p12823_p13 }
  0x88   : > { %12833 = shalt.err (!%p12830_p8)
}
  0x89   : > { %11440 = dma.hbm_to_vmem [thread:$0]  (!%p13218_p9), %s14764_s7, 16, %s324_s27, [#allocation19]  }
  0x8a   : > { %p9302_p3 = scmp.ge.s32.totalorder %s13032_s15, 4 }
  0x8c   : > { %330 = sbr.rel (%p9302_p3) target bundleno = 225 (0xe1), region = 32 }
  0x93   : > { %s13311_s29 = sand.u32 1, %s13012_s10   ;;  %s11382_s19 = smul.u32 96, %s13024_s13 }
  0x94   : > { %s11381_s20 = smul.u32 3072, %s13311_s29  ;;  %s13040_s25 = smov 12288  }
  0x95   : > { %s11383_s26 = smul.u32 1536, %s13028_s14  ;;  %p14810_p9 = scmp.ne.s32.totalorder %s14796_s22, 0 }
  0x96   : > { %s338_s27 = scalar_lea.vmem [#allocation6], %s11381_s20  ;;  %s13041_s11 = smov 6144  }
  0x97   : > { %11397 = sst [smem:[#allocation22]] (%p14810_p9), %s13040_s25  ;;  %s346_s23 = sadd.s32 %s11383_s26, %s11382_s19 }
  0x98   : > { %s361_s28 = sshll.u32 %s338_s27, 4  ;;  %11398 = sst [smem:[#allocation22 + $0x1]] (%p14810_p9), %s13041_s11  ;;  %s362_s28 = int_to_ptr.vmem [resolvable:$true] %s361_s28 }
  0x99   : > { %s11396_s9 = scalar_select %p14810_p9, [#allocation0], [#allocation25] }
  0x9a   : > { %s13042_s24 = smov 16   ;;  %s9307_s30 = sshll.u32 %s346_s23, 6 }
  0x9b   : > { %s353_s16 = sld [smem:[%s11396_s9]]   ;;  %s13043_s21 = smov 384  }
  0x9c   : > { %11399 = sst [smem:[#allocation22 + $0x2]] (%p14810_p9), %s13042_s24  ;;  %s13044_s8 = smov 24  }
  0x9d   : > { %11400 = sst [smem:[#allocation22 + $0x3]] (%p14810_p9), %s13043_s21  ;;  %s348_s12 = scalar_lea.hbm %s14757_s0, %s9307_s30 }
  0x9e   : > { %11401 = sst [smem:[#allocation22 + $0x4]] (%p14810_p9), %s13043_s21  ;;  %s335_s25 = scalar_lea.sflag [#allocation7], %s13311_s29 }
  0x9f   : > { %11402 = sst [smem:[#allocation22 + $0x5]] (%p14810_p9), %s13044_s8  ;;  %s13045_s27 = smov [#allocation21]  }
  0xa1   : > { %s9308_s19 = sshll.u32 %s353_s16, 26 }
  0xa2   : > { %s9309_s26 = sadd.s32 134217728, %s9308_s19 }
  0xa3   : > { %11403 = dma.general (%p14810_p9), %s348_s12, 49152, %s362_s28, %s335_s25, %s13045_s27, [#allocation22], %s9309_s26, 0  }
  0xa4   : > { %s384_s23 = sand.u32 1, %s13032_s15   ;;  %s398_s24 = scalar_lea.hbm %s14758_s1, %s9307_s30 }
  0xa5   : > { %s11404_s16 = scalar_select %p14810_p9, [#allocation0], [#allocation26] }
  0xa6   : > { %s388_s21 = scalar_lea.vmem [#allocation9], %s11381_s20  ;;  %s13046_s18 = smov 12288  }
  0xa7   : > { %s411_s8 = sshll.u32 %s388_s21, 4  ;;  %s403_s28 = sld [smem:[%s11404_s16]]   ;;  %s412_s8 = int_to_ptr.vmem [resolvable:$true] %s411_s8 }
  0xa8   : > { %11405 = sst [smem:[#allocation24]] (%p14810_p9), %s13046_s18  ;;  %s13047_s17 = smov 6144  }
  0xa9   : > { %11406 = sst [smem:[#allocation24 + $0x1]] (%p14810_p9), %s13047_s17  ;;  %s13048_s12 = smov 16  }
  0xaa   : > { %11407 = sst [smem:[#allocation24 + $0x2]] (%p14810_p9), %s13048_s12  ;;  %s13049_s30 = smov 384  }
  0xab   : > { %11408 = sst [smem:[#allocation24 + $0x3]] (%p14810_p9), %s13049_s30  ;;  %s13050_s19 = smov 24  }
  0xac   : > { %11409 = sst [smem:[#allocation24 + $0x4]] (%p14810_p9), %s13049_s30  ;;  %s13360_s25 = scalar_lea.sflag [#allocation10], %s384_s23 }
  0xad   : > { %s9315_s20 = sshll.u32 %s403_s28, 26  ;;  %11410 = sst [smem:[#allocation24 + $0x5]] (%p14810_p9), %s13050_s19 }
  0xae   : > { %s9316_s26 = sadd.s32 134217728, %s9315_s20  ;;  %s13051_s27 = smov [#allocation23]  }
  0xaf   : > { %11411 = dma.general (%p14810_p9), %s398_s24, 49152, %s412_s8, %s13360_s25, %s13051_s27, [#allocation24], %s9316_s26, 0  }
  0xb0   : > { %s9317_s9 = sshll.u32 %s13311_s29, 3  ;;  %s9318_s11 = sshll.u32 %s13028_s14, 1 }
  0xb1   : > { %s13368_s16 = sadd.s32 %s13024_s13, %s9318_s11  ;;  %s438_s28 = scalar_lea.vmem [#allocation11], %s9317_s9 }
  0xb2   : > { %s9319_s21 = sshll.u32 %s13368_s16, 7  ;;  %s447_s18 = sshll.u32 %s438_s28, 4  ;;  %s448_s18 = int_to_ptr.vmem [resolvable:$true] %s447_s18 }
  0xb3   : > { %s445_s24 = scalar_lea.hbm %s14759_s2, %s9319_s21  ;;  %s12838_s19 = scalar_lea.hbm %s14759_s2, 512 }
  0xb4   : > { %s12834_s8 = scalar_lea.hbm %s445_s24, 128  ;;  %p12839_p12 = scmp.lt.u32.totalorder %s445_s24, %s14759_s2 }
  0xb5   : > { %p12835_p11 = scmp.ne.s32.totalorder %s445_s24, %s12834_s8  ;;  %p12840_p4 = scmp.lt.u32.totalorder %s12838_s19, %s12834_s8 }
  0xb6   : > { %p12842_p10 = scmp.lt.u32.totalorder %s12834_s8, %s445_s24 }
  0xb7   : > { %p12836_p6 = pnand %p12835_p11, %p14810_p9  ;;  %p12841_p5 = por %p12840_p4, %p12839_p12 }
  0xb9   : > { %p12837_p7 = pneg %p12836_p6  ;;  %p12843_p13 = por %p12842_p10, %p12841_p5 }
  0xbb   : > { %p12844_p0 = pnand %p12843_p13, %p12837_p7 }
  0xbd   : > { %12847 = shalt.err (!%p12844_p0)
}
  0xbe   : > { %s12848_s11 = scalar_lea.vmem %s448_s18, 128  ;;  %s13052_s28 = smov [#allocation11]  }
  0xbf   : > { %p12849_p1 = scmp.ne.s32.totalorder %s448_s18, %s12848_s11  ;;  %s12852_s17 = sshll.u32 %s13052_s28, 4  ;;  %s12853_s17 = int_to_ptr.vmem [resolvable:$false] %s12852_s17 }
  0xc0   : > { %s12854_s12 = scalar_lea.vmem %s12853_s17, 256  ;;  %p12855_p3 = scmp.lt.s32.totalorder %s448_s18, %s12853_s17 }
  0xc1   : > { %p12850_p2 = pnand %p12849_p1, %p14810_p9  ;;  %p12856_p11 = scmp.lt.s32.totalorder %s12854_s12, %s12848_s11 }
  0xc3   : > { %p12851_p8 = pneg %p12850_p2  ;;  %p12857_p6 = por %p12856_p11, %p12855_p3 }
  0xc5   : > { %p12858_p4 = pnand %p12857_p6, %p12851_p8 }
  0xc7   : > { %12861 = shalt.err (!%p12858_p4)
}
  0xc8   : > { %11412 = dma.hbm_to_vmem [thread:$0]  (%p14810_p9), %s445_s24, 128, %s448_s18, %s13360_s25  }
  0xc9   : > { %s13396_s20 = scalar_lea.hbm %s14760_s3, %s9319_s21  ;;  %s458_s19 = scalar_lea.vmem [#allocation12], %s9317_s9 }
  0xca   : > { %s467_s26 = sshll.u32 %s458_s19, 4  ;;  %s455_s27 = scalar_lea.sflag [#allocation13], %s384_s23  ;;  %s468_s26 = int_to_ptr.vmem [resolvable:$true] %s467_s26 }
  0xcb   : > { %s12862_s11 = scalar_lea.hbm %s13396_s20, 128  ;;  %s12866_s21 = scalar_lea.hbm %s14760_s3, 512 }
  0xcc   : > { %p12863_p7 = scmp.ne.s32.totalorder %s13396_s20, %s12862_s11  ;;  %p12867_p10 = scmp.lt.u32.totalorder %s13396_s20, %s14760_s3 }
  0xcd   : > { %p12868_p13 = scmp.lt.u32.totalorder %s12866_s21, %s12862_s11  ;;  %p12870_p1 = scmp.lt.u32.totalorder %s12862_s11, %s13396_s20 }
  0xce   : > { %p12864_p12 = pnand %p12863_p7, %p14810_p9 }
  0xcf   : > { %p12869_p0 = por %p12868_p13, %p12867_p10 }
  0xd0   : > { %p12865_p5 = pneg %p12864_p12 }
  0xd1   : > { %p12871_p2 = por %p12870_p1, %p12869_p0 }
  0xd3   : > { %p12872_p8 = pnand %p12871_p2, %p12865_p5 }
  0xd5   : > { %12875 = shalt.err (!%p12872_p8)
}
  0xd6   : > { %s12876_s23 = scalar_lea.vmem %s468_s26, 128  ;;  %s13053_s9 = smov [#allocation12]  }
  0xd7   : > { %p12877_p3 = scmp.ne.s32.totalorder %s468_s26, %s12876_s23  ;;  %s12880_s24 = sshll.u32 %s13053_s9, 4  ;;  %s12881_s24 = int_to_ptr.vmem [resolvable:$false] %s12880_s24 }
  0xd8   : > { %s12882_s28 = scalar_lea.vmem %s12881_s24, 256  ;;  %p12883_p4 = scmp.lt.s32.totalorder %s468_s26, %s12881_s24 }
  0xd9   : > { %p12878_p11 = pnand %p12877_p3, %p14810_p9  ;;  %p12884_p7 = scmp.lt.s32.totalorder %s12882_s28, %s12876_s23 }
  0xdb   : > { %p12879_p6 = pneg %p12878_p11  ;;  %p12885_p12 = por %p12884_p7, %p12883_p4 }
  0xdd   : > { %p12886_p10 = pnand %p12885_p12, %p12879_p6 }
  0xdf   : > { %12889 = shalt.err (!%p12886_p10)
}
  0xe0   : > { %11413 = dma.hbm_to_vmem [thread:$0]  (%p14810_p9), %s13396_s20, 128, %s468_s26, %s455_s27  }
  0xe1 PF: > { %s14811_s17 = sld [smem:[#allocation48_spill]] }
  0xe7   : > { %p14812_p5 = scmp.ne.s32.totalorder %s14811_s17, 0 }
  0xe8   : > { %s14813_s12 = sld [smem:[#allocation37_spill]] (!%p14812_p5)  ;;  %s14814_s8 = sld [smem:[#allocation43_spill]] (!%p14812_p5) }
  0xe9   : > { %476 = sbr.rel (%p14812_p5) target bundleno = 1777 (0x6f1), region = 52 }
  0xee   : > { %s478_s30 = sand.u32 (!%p14812_p5), 1, %s14813_s12   ;;  %p14815_p13 = scmp.ne.s32.totalorder (!%p14812_p5), %s14814_s8, 0 }
  0xef   : > { %s11387_s19 = smul.u32 (!%p14812_p5), 3072, %s478_s30  ;;  %s479_s11 = scalar_lea.sflag (!%p14812_p5), [#allocation7], %s478_s30 }
  0xf1   : > { %s13422_s25 = scalar_lea.vmem [#allocation6], %s11387_s19 }
  0xf2   : > { %12963 = dma.done.wait (%p14815_p13), %s479_s11, 49152  }
  0xf3   : > { %12965 = vsyncadd (%p14815_p13), %s479_s11, 4294918144  ;;  %s14816_s16 = sld [smem:[#allocation40_spill]]  ;;  %s13429_s26 = scalar_lea.vmem [#allocation9], %s11387_s19 }
  0xf9   : > { %s487_s22 = sand.u32 1, %s14816_s16  }
  0xfa   : > { %s488_s20 = scalar_lea.sflag [#allocation10], %s487_s22 }
  0xfb   : > { %12967 = dma.done.wait (%p14815_p13), %s488_s20, 49280  }
  0xfc   : > { %12969 = vsyncadd (%p14815_p13), %s488_s20, 4294918016  ;;  %s9324_s27 = sshll.u32 %s478_s30, 3  ;;  %s506_s18 = scalar_lea.sflag [#allocation13], %s487_s22 }
  0xfd   : > { %s13435_s21 = scalar_lea.vmem [#allocation11], %s9324_s27  ;;  %s13437_s29 = scalar_lea.vmem [#allocation12], %s9324_s27 }
  0xfe   : > { %12971 = dma.done.wait (%p14815_p13), %s506_s18, 128  }
  0xff   : > { %12973 = vsyncadd (%p14815_p13), %s506_s18, 4294967168  ;;  %p14817_p9 = scmp.eq.s32.totalorder %s14816_s16, 0 }
 0x101   : > { %12975 = dma.done.wait (%p14817_p9), [#allocation13], 12288   ;;  %p14818_p0 = pmov %p14817_p9 }
 0x103   : > { %12977 = vsyncadd (%p14818_p0), [#allocation13], 4294955008  ;;  %p14819_p1 = pmov %p14818_p0 }
 0x104   : > { %p14820_p2 = pmov %p14818_p0 }
 0x105   : > { %12979 = dma.done.wait (%p14819_p1), [#allocation16], 24576  }
 0x106   : > { %12981 = vsyncadd (%p14820_p2), [#allocation16], 4294942720  ;;  %p14821_p8 = pmov %p14818_p0 }
 0x107   : > { %p14822_p3 = pmov %p14818_p0 }
 0x108   : > { %12983 = dma.done.wait (%p14821_p8), [#allocation19], 16  }
 0x109   : > { %12985 = vsyncadd (%p14822_p3), [#allocation19], 4294967280  ;;  %s14823_s23 = sld [smem:[#allocation35_spill]] }
 0x10a   : > { %s14824_s17 = sld [smem:[#allocation38_spill]] }
 0x10f   : > { %s570_s9 = sand.u32 1, %s14823_s23  }
 0x110   : > { %s13458_s24 = sshll.u32 %s570_s9, 3  ;;  %p9331_p11 = scmp.ne.s32.totalorder %s14824_s17, 0 }
 0x111   : > { %s572_s28 = scalar_lea.vmem [#allocation20], %s13458_s24  ;;  %vm594_vm0 = vcmask (!%p9331_p11), 7168   ;;  %v13054_v0 = vmov (!%p9331_p11), 0.0  }
 0x112   : > { %581 = sbr.rel (%p9331_p11) target bundleno = 281 (0x119), region = 88  ;;  %582 = vst [vmem:[#allocation2] sm:$0xff] (!%p9331_p11), %v13054_v0  ;;  %583 = vst [vmem:[#allocation2 + $0x8] sm:$0xff] (!%p9331_p11), %v13054_v0 }
 0x113   : > { %584 = vst [vmem:[#allocation2 + $0x10] sm:$0xff] (!%p9331_p11), %v13054_v0  ;;  %585 = vst [vmem:[#allocation2 + $0x18] sm:$0xff] (!%p9331_p11), %v13054_v0 }
 0x114   : > { %586 = vst [vmem:[#allocation2 + $0x20] sm:$0xff] (!%p9331_p11), %v13054_v0  ;;  %587 = vst [vmem:[#allocation2 + $0x28] sm:$0xff] (!%p9331_p11), %v13054_v0 }
 0x115   : > { %588 = vst [vmem:[#allocation3] sm:$0xff] (!%p9331_p11), %v13054_v0  ;;  %589 = vst [vmem:[#allocation3 + $0x8] sm:$0xff] (!%p9331_p11), %v13054_v0 }
 0x116   : > { %590 = vst [vmem:[#allocation3 + $0x10] sm:$0xff] (!%p9331_p11), %v13054_v0  ;;  %591 = vst [vmem:[#allocation3 + $0x18] sm:$0xff] (!%p9331_p11), %v13054_v0 }
 0x117   : > { %592 = vst [vmem:[#allocation3 + $0x20] sm:$0xff] (!%p9331_p11), %v13054_v0  ;;  %593 = vst [vmem:[#allocation3 + $0x28] sm:$0xff] (!%p9331_p11), %v13054_v0 }
 0x118   : > { %595 = vst.msk [vmem:[#allocation4] sm:$0xff] (!%p9331_p11), %vm594_vm0, %v13054_v0  ;;  %596 = vst.msk [vmem:[#allocation5] sm:$0xff] (!%p9331_p11), %vm594_vm0, %v13054_v0 }
 0x119 PF: > { %v11564_v1 = vld [vmem:[%s13422_s25 + $0x4] ss:$24 sps:$4 sm:$0xff]   ;;  %v13055_v3 = vmov 0   ;;  %v11568_v4 = vld [vmem:[%s13422_s25] ss:$24 sps:$4 sm:$0xff]   ;;  %vm8095_vm2 = vcmask 7168  }
 0x11a   : > { %v11566_v2 = vld [vmem:[%s13422_s25 + $0xc] ss:$24 sps:$4 sm:$0xff]   ;;  %923 = vmatprep.mubr.bf16.mxu0 %v13055_v3  ;;  %964 = vmatprep.mubr.bf16.mxu1 %v13055_v3  ;;  %v11569_v5 = vld [vmem:[%s13422_s25 + $0x8] ss:$24 sps:$4 sm:$0xff]   ;;  %v11572_v7 = vld [vmem:[%s13422_s25 + $0x3c] ss:$24 sps:$4 sm:$0xff]  }
 0x11b   : > { %891 = vmatprep.subr.bf16.mxu0 %v11564_v1  ;;  %932 = vmatprep.subr.bf16.mxu1 %v11566_v2  ;;  %v11570_v6 = vld [vmem:[%s13422_s25 + $0x34] ss:$24 sps:$4 sm:$0xff]   ;;  %v11574_v8 = vld [vmem:[%s13422_s25 + $0x30] ss:$24 sps:$4 sm:$0xff]   ;;  %v11576_v10 = vld [vmem:[%s13422_s25 + $0x64] ss:$24 sps:$4 sm:$0xff]  }
 0x11c   : > { %892 = vmatpush1.bf16.msra.mxu0 %v11568_v4  ;;  %933 = vmatpush1.bf16.msra.mxu1 %v11569_v5  ;;  %v11575_v9 = vld [vmem:[%s13422_s25 + $0x38] ss:$24 sps:$4 sm:$0xff]   ;;  %v11578_v11 = vld [vmem:[%s13422_s25 + $0x6c] ss:$24 sps:$4 sm:$0xff]   ;;  %v11581_v13 = vld [vmem:[%s13422_s25 + $0x68] ss:$24 sps:$4 sm:$0xff]  }
 0x11d   : > { %893 = vmatprep.subr.bf16.mxu0 %v11570_v6  ;;  %934 = vmatprep.subr.bf16.mxu1 %v11572_v7  ;;  %v11580_v12 = vld [vmem:[%s13422_s25 + $0x60] ss:$24 sps:$4 sm:$0xff]   ;;  %v11582_v14 = vld [vmem:[%s13422_s25 + $0x94] ss:$24 sps:$4 sm:$0xff]   ;;  %v11586_v16 = vld [vmem:[%s13422_s25 + $0x90] ss:$24 sps:$4 sm:$0xff]  }
 0x11e   : > { %v11584_v15 = vld [vmem:[%s13422_s25 + $0x9c] ss:$24 sps:$4 sm:$0xff]   ;;  %v11587_v17 = vld [vmem:[%s13422_s25 + $0x98] ss:$24 sps:$4 sm:$0xff]   ;;  %v11590_v19 = vld [vmem:[%s13422_s25 + $0xcc] ss:$24 sps:$4 sm:$0xff]  }
 0x11f   : > { %v11588_v18 = vld [vmem:[%s13422_s25 + $0xc4] ss:$24 sps:$4 sm:$0xff]   ;;  %v11592_v20 = vld [vmem:[%s13422_s25 + $0xc0] ss:$24 sps:$4 sm:$0xff]   ;;  %v11594_v22 = vld [vmem:[%s13422_s25 + $0xf4] ss:$24 sps:$4 sm:$0xff]  }
 0x120   : > { %894 = vmatpush1.bf16.msra.mxu0 %v11574_v8  ;;  %935 = vmatpush1.bf16.msra.mxu1 %v11575_v9  ;;  %v11593_v21 = vld [vmem:[%s13422_s25 + $0xc8] ss:$24 sps:$4 sm:$0xff]   ;;  %v11596_v23 = vld [vmem:[%s13422_s25 + $0xfc] ss:$24 sps:$4 sm:$0xff]   ;;  %v11599_v25 = vld [vmem:[%s13422_s25 + $0xf8] ss:$24 sps:$4 sm:$0xff]  }
 0x121   : > { %895 = vmatprep.subr.bf16.mxu0 %v11576_v10  ;;  %936 = vmatprep.subr.bf16.mxu1 %v11578_v11  ;;  %v11598_v24 = vld [vmem:[%s13422_s25 + $0xf0] ss:$24 sps:$4 sm:$0xff]   ;;  %v11600_v26 = vld [vmem:[%s13422_s25 + $0x124] ss:$24 sps:$4 sm:$0xff]   ;;  %v11604_v29 = vld [vmem:[%s13422_s25 + $0x120] ss:$24 sps:$4 sm:$0xff]  }
 0x122   : > { %v11602_v27 = vld [vmem:[%s13422_s25 + $0x12c] ss:$24 sps:$4 sm:$0xff]   ;;  %v11605_v30 = vld [vmem:[%s13422_s25 + $0x128] ss:$24 sps:$4 sm:$0xff]   ;;  %v11608_v32 = vld [vmem:[%s13422_s25 + $0x15c] ss:$24 sps:$4 sm:$0xff]  }
 0x123   : > { %v597_v28 = vld [vmem:[%s13435_s21] sm:$0xff]  ;;  %v11611_v34 = vld [vmem:[%s13422_s25 + $0x158] ss:$24 sps:$4 sm:$0xff]   ;;  %v11668_v10 = vld [vmem:[%s13422_s25 + $0x1bc] ss:$24 sps:$4 sm:$0xff]   ;;  %s14827_s12 = sld [smem:[#allocation38_spill]] }
 0x124   : > { %896 = vmatpush1.bf16.msra.mxu0 %v11580_v12  ;;  %937 = vmatpush1.bf16.msra.mxu1 %v11581_v13  ;;  %v11606_v31 = vld [vmem:[%s13422_s25 + $0x154] ss:$24 sps:$4 sm:$0xff]   ;;  %v11610_v33 = vld [vmem:[%s13422_s25 + $0x150] ss:$24 sps:$4 sm:$0xff]   ;;  %v11617_v36 = vld [vmem:[%s13422_s25 + $0x184] ss:$24 sps:$4 sm:$0xff]   ;;  %v13499_v37 = vpack.c.bf16 %v597_v28, %v597_v28 }
 0x125   : > { %897 = vmatprep.subr.bf16.mxu0 %v11582_v14  ;;  %938 = vmatprep.subr.bf16.mxu1 %v11584_v15  ;;  %v11614_v35 = vld [vmem:[%s13422_s25 + $0x14] ss:$24 sps:$4 sm:$0xff]   ;;  %v11612_v38 = vld [vmem:[%s13422_s25 + $0x10] ss:$24 sps:$4 sm:$0xff]   ;;  %v11615_v39 = vld [vmem:[%s13422_s25 + $0x180] ss:$24 sps:$4 sm:$0xff]  }
 0x126   : > { %8092 = vadd.xlane.f32.xlu0 %v597_v28  ;;  %v11620_v40 = vld [vmem:[%s13422_s25 + $0x44] ss:$24 sps:$4 sm:$0xff]   ;;  %v11623_v41 = vld [vmem:[%s13422_s25 + $0x1b4] ss:$24 sps:$4 sm:$0xff]   ;;  %v11618_v42 = vld [vmem:[%s13422_s25 + $0x40] ss:$24 sps:$4 sm:$0xff]  }
 0x127   : > { %v11621_v43 = vld [vmem:[%s13422_s25 + $0x1b0] ss:$24 sps:$4 sm:$0xff]   ;;  %v11626_v44 = vld [vmem:[%s13422_s25 + $0x74] ss:$24 sps:$4 sm:$0xff]   ;;  %v11629_v45 = vld [vmem:[%s13422_s25 + $0x1e4] ss:$24 sps:$4 sm:$0xff]  }
 0x128   : > { %898 = vmatpush1.bf16.msra.mxu0 %v11586_v16  ;;  %939 = vmatpush1.bf16.msra.mxu1 %v11587_v17  ;;  %v11624_v46 = vld [vmem:[%s13422_s25 + $0x70] ss:$24 sps:$4 sm:$0xff]   ;;  %v11627_v47 = vld [vmem:[%s13422_s25 + $0x1e0] ss:$24 sps:$4 sm:$0xff]   ;;  %v11632_v48 = vld [vmem:[%s13422_s25 + $0xa4] ss:$24 sps:$4 sm:$0xff]  }
 0x129   : > { %899 = vmatprep.subr.bf16.mxu0 %v11588_v18  ;;  %940 = vmatprep.subr.bf16.mxu1 %v11590_v19  ;;  %v11635_v49 = vld [vmem:[%s13422_s25 + $0x214] ss:$24 sps:$4 sm:$0xff]   ;;  %v11630_v50 = vld [vmem:[%s13422_s25 + $0xa0] ss:$24 sps:$4 sm:$0xff]   ;;  %v11633_v51 = vld [vmem:[%s13422_s25 + $0x210] ss:$24 sps:$4 sm:$0xff]  }
 0x12a   : > { %v11638_v52 = vld [vmem:[%s13422_s25 + $0xd4] ss:$24 sps:$4 sm:$0xff]   ;;  %v11641_v53 = vld [vmem:[%s13422_s25 + $0x244] ss:$24 sps:$4 sm:$0xff]   ;;  %v11636_v54 = vld [vmem:[%s13422_s25 + $0xd0] ss:$24 sps:$4 sm:$0xff]  }
 0x12b   : > { %v11639_v55 = vld [vmem:[%s13422_s25 + $0x240] ss:$24 sps:$4 sm:$0xff]   ;;  %v11644_v56 = vld [vmem:[%s13422_s25 + $0x104] ss:$24 sps:$4 sm:$0xff]   ;;  %v11647_v57 = vld [vmem:[%s13422_s25 + $0x274] ss:$24 sps:$4 sm:$0xff]  }
 0x12c   : > { %900 = vmatpush1.bf16.msra.mxu0 %v11592_v20  ;;  %941 = vmatpush1.bf16.msra.mxu1 %v11593_v21  ;;  %v11642_v58 = vld [vmem:[%s13422_s25 + $0x100] ss:$24 sps:$4 sm:$0xff]   ;;  %v11645_v59 = vld [vmem:[%s13422_s25 + $0x270] ss:$24 sps:$4 sm:$0xff]   ;;  %v11650_v60 = vld [vmem:[%s13422_s25 + $0x134] ss:$24 sps:$4 sm:$0xff]  }
 0x12d   : > { %901 = vmatprep.subr.bf16.mxu0 %v11594_v22  ;;  %942 = vmatprep.subr.bf16.mxu1 %v11596_v23  ;;  %v11653_v61 = vld [vmem:[%s13422_s25 + $0x2a4] ss:$24 sps:$4 sm:$0xff]   ;;  %v11648_v62 = vld [vmem:[%s13422_s25 + $0x130] ss:$24 sps:$4 sm:$0xff]   ;;  %v11651_v63 = vld [vmem:[%s13422_s25 + $0x2a0] ss:$24 sps:$4 sm:$0xff]  }
 0x12e   : > { %v11656_v0 = vld [vmem:[%s13422_s25 + $0x164] ss:$24 sps:$4 sm:$0xff]   ;;  %v11659_v1 = vld [vmem:[%s13422_s25 + $0x2d4] ss:$24 sps:$4 sm:$0xff]   ;;  %v11654_v2 = vld [vmem:[%s13422_s25 + $0x160] ss:$24 sps:$4 sm:$0xff]  }
 0x12f   : > { %v11657_v4 = vld [vmem:[%s13422_s25 + $0x2d0] ss:$24 sps:$4 sm:$0xff]   ;;  %v11662_v5 = vld [vmem:[%s13422_s25 + $0x18c] ss:$24 sps:$4 sm:$0xff]   ;;  %v13538_v7 = vshrl.u32 %v13499_v37, 16  ;;  %p10772_p6 = scmp.ne.s32.totalorder %s14827_s12, 1 }
 0x130   : > { %902 = vmatpush1.bf16.msra.mxu0 %v11598_v24  ;;  %943 = vmatpush1.bf16.msra.mxu1 %v11599_v25  ;;  %v11665_v6 = vld [vmem:[%s13422_s25 + $0x194] ss:$24 sps:$4 sm:$0xff]   ;;  %v11660_v8 = vld [vmem:[%s13422_s25 + $0x188] ss:$24 sps:$4 sm:$0xff]   ;;  %v11671_v11 = vld [vmem:[%s13422_s25 + $0x1c4] ss:$24 sps:$4 sm:$0xff]  }
 0x131   : > { %903 = vmatprep.subr.bf16.mxu0 %v11600_v26  ;;  %944 = vmatprep.subr.bf16.mxu1 %v11602_v27  ;;  %v11663_v9 = vld [vmem:[%s13422_s25 + $0x190] ss:$24 sps:$4 sm:$0xff]   ;;  %v11669_v13 = vld [vmem:[%s13422_s25 + $0x1c0] ss:$24 sps:$4 sm:$0xff]   ;;  %v11674_v14 = vld [vmem:[%s13422_s25 + $0x1ec] ss:$24 sps:$4 sm:$0xff]  }
 0x132   : > { %v11666_v12 = vld [vmem:[%s13422_s25 + $0x1b8] ss:$24 sps:$4 sm:$0xff]   ;;  %v11677_v15 = vld [vmem:[%s13422_s25 + $0x1f4] ss:$24 sps:$4 sm:$0xff]   ;;  %v11672_v16 = vld [vmem:[%s13422_s25 + $0x1e8] ss:$24 sps:$4 sm:$0xff]  }
 0x133   : > { %v11675_v17 = vld [vmem:[%s13422_s25 + $0x1f0] ss:$24 sps:$4 sm:$0xff]   ;;  %v11680_v18 = vld [vmem:[%s13422_s25 + $0x21c] ss:$24 sps:$4 sm:$0xff]   ;;  %v11681_v21 = vld [vmem:[%s13422_s25 + $0x220] ss:$24 sps:$4 sm:$0xff]  }
 0x134   : > { %904 = vmatpush1.bf16.msra.mxu0 %v11604_v29  ;;  %945 = vmatpush1.bf16.msra.mxu1 %v11605_v30  ;;  %v11683_v19 = vld [vmem:[%s13422_s25 + $0x224] ss:$24 sps:$4 sm:$0xff]   ;;  %v11678_v20 = vld [vmem:[%s13422_s25 + $0x218] ss:$24 sps:$4 sm:$0xff]   ;;  %v11689_v23 = vld [vmem:[%s13422_s25 + $0x254] ss:$24 sps:$4 sm:$0xff]  }
 0x135   : > { %905 = vmatprep.subr.bf16.mxu0 %v11606_v31  ;;  %946 = vmatprep.subr.bf16.mxu1 %v11608_v32  ;;  %v11686_v22 = vld [vmem:[%s13422_s25 + $0x24c] ss:$24 sps:$4 sm:$0xff]   ;;  %v11684_v24 = vld [vmem:[%s13422_s25 + $0x248] ss:$24 sps:$4 sm:$0xff]   ;;  %v11692_v26 = vld [vmem:[%s13422_s25 + $0x27c] ss:$24 sps:$4 sm:$0xff]  }
 0x136   : > { %v11687_v25 = vld [vmem:[%s13422_s25 + $0x250] ss:$24 sps:$4 sm:$0xff]   ;;  %v11695_v27 = vld [vmem:[%s13422_s25 + $0x284] ss:$24 sps:$4 sm:$0xff]   ;;  %v11693_v29 = vld [vmem:[%s13422_s25 + $0x280] ss:$24 sps:$4 sm:$0xff]  }
 0x137   : > { %v11690_v28 = vld [vmem:[%s13422_s25 + $0x278] ss:$24 sps:$4 sm:$0xff]   ;;  %v11698_v30 = vld [vmem:[%s13422_s25 + $0x2ac] ss:$24 sps:$4 sm:$0xff]   ;;  %v11696_v32 = vld [vmem:[%s13422_s25 + $0x2a8] ss:$24 sps:$4 sm:$0xff]  }
 0x138   : > { %906 = vmatpush1.bf16.msra.mxu0 %v11610_v33  ;;  %947 = vmatpush1.bf16.msra.mxu1 %v11611_v34  ;;  %v11701_v31 = vld [vmem:[%s13422_s25 + $0x2b4] ss:$24 sps:$4 sm:$0xff]   ;;  %v11699_v33 = vld [vmem:[%s13422_s25 + $0x2b0] ss:$24 sps:$4 sm:$0xff]  }
 0x139   : > { %973 = vmatprep.subr.bf16.mxu0 %v11614_v35  ;;  %1365 = vmatprep.subr.bf16.mxu1 %v11617_v36  ;;  %v11704_v34 = vld [vmem:[%s13422_s25 + $0x2dc] ss:$24 sps:$4 sm:$0xff]   ;;  %v11702_v36 = vld [vmem:[%s13422_s25 + $0x2d8] ss:$24 sps:$4 sm:$0xff]  }
 0x13a   : > { %v11707_v35 = vld [vmem:[%s13422_s25 + $0x2e4] ss:$24 sps:$4 sm:$0xff]  }
 0x13b   : > { %924 = vmatmul.mubr.bf16.vlgmr.msra.gmra.mrb[0].mxu0 %v13499_v37  ;;  %965 = vmatmul.mubr.bf16.vlgmr.msra.gmra.mrb[0].mxu1 %v13499_v37 }
 0x13c   : > { %974 = vmatpush1.bf16.msra.mxu0 %v11612_v38  ;;  %1366 = vmatpush1.bf16.msra.mxu1 %v11615_v39  ;;  %v11705_v38 = vld [vmem:[%s13422_s25 + $0x2e0] ss:$24 sps:$4 sm:$0xff]   ;;  %v11710_v39 = vld [vmem:[%s13422_s25 + $0x304] ss:$24 sps:$4 sm:$0xff]  }
 0x13d   : > { %975 = vmatprep.subr.bf16.mxu0 %v11620_v40  ;;  %1367 = vmatprep.subr.bf16.mxu1 %v11623_v41  ;;  %v11713_v40 = vld [vmem:[%s13422_s25 + $0x30c] ss:$24 sps:$4 sm:$0xff]   ;;  %v11708_v41 = vld [vmem:[%s13422_s25 + $0x300] ss:$24 sps:$4 sm:$0xff]  }
 0x13e   : > { %1005 = vmatprep.mubr.bf16.mxu0 %v13055_v3  ;;  %1397 = vmatprep.mubr.bf16.mxu1 %v13055_v3 }
 0x140   : > { %976 = vmatpush1.bf16.msra.mxu0 %v11618_v42  ;;  %1368 = vmatpush1.bf16.msra.mxu1 %v11621_v43  ;;  %v11711_v42 = vld [vmem:[%s13422_s25 + $0x308] ss:$24 sps:$4 sm:$0xff]   ;;  %v11716_v43 = vld [vmem:[%s13422_s25 + $0x334] ss:$24 sps:$4 sm:$0xff]  }
 0x141   : > { %977 = vmatprep.subr.bf16.mxu0 %v11626_v44  ;;  %1369 = vmatprep.subr.bf16.mxu1 %v11629_v45  ;;  %v11719_v44 = vld [vmem:[%s13422_s25 + $0x33c] ss:$24 sps:$4 sm:$0xff]   ;;  %v11714_v45 = vld [vmem:[%s13422_s25 + $0x330] ss:$24 sps:$4 sm:$0xff]  }
 0x144   : > { %978 = vmatpush1.bf16.msra.mxu0 %v11624_v46  ;;  %1370 = vmatpush1.bf16.msra.mxu1 %v11627_v47  ;;  %v11717_v46 = vld [vmem:[%s13422_s25 + $0x338] ss:$24 sps:$4 sm:$0xff]   ;;  %v11722_v47 = vld [vmem:[%s13422_s25 + $0x364] ss:$24 sps:$4 sm:$0xff]  }
 0x145   : > { %979 = vmatprep.subr.bf16.mxu0 %v11632_v48  ;;  %1371 = vmatprep.subr.bf16.mxu1 %v11635_v49  ;;  %v11725_v48 = vld [vmem:[%s13422_s25 + $0x36c] ss:$24 sps:$4 sm:$0xff]   ;;  %v11720_v49 = vld [vmem:[%s13422_s25 + $0x360] ss:$24 sps:$4 sm:$0xff]  }
 0x148   : > { %980 = vmatpush1.bf16.msra.mxu0 %v11630_v50  ;;  %1372 = vmatpush1.bf16.msra.mxu1 %v11633_v51  ;;  %v11723_v50 = vld [vmem:[%s13422_s25 + $0x368] ss:$24 sps:$4 sm:$0xff]   ;;  %v11728_v51 = vld [vmem:[%s13422_s25 + $0x394] ss:$24 sps:$4 sm:$0xff]  }
 0x149   : > { %981 = vmatprep.subr.bf16.mxu0 %v11638_v52  ;;  %1373 = vmatprep.subr.bf16.mxu1 %v11641_v53  ;;  %v11731_v52 = vld [vmem:[%s13422_s25 + $0x39c] ss:$24 sps:$4 sm:$0xff]   ;;  %v11726_v53 = vld [vmem:[%s13422_s25 + $0x390] ss:$24 sps:$4 sm:$0xff]  }
 0x14c   : > { %982 = vmatpush1.bf16.msra.mxu0 %v11636_v54  ;;  %1374 = vmatpush1.bf16.msra.mxu1 %v11639_v55  ;;  %v11729_v54 = vld [vmem:[%s13422_s25 + $0x398] ss:$24 sps:$4 sm:$0xff]   ;;  %v11734_v55 = vld [vmem:[%s13422_s25 + $0x3c4] ss:$24 sps:$4 sm:$0xff]  }
 0x14d   : > { %983 = vmatprep.subr.bf16.mxu0 %v11644_v56  ;;  %1375 = vmatprep.subr.bf16.mxu1 %v11647_v57  ;;  %v11737_v56 = vld [vmem:[%s13422_s25 + $0x3cc] ss:$24 sps:$4 sm:$0xff]   ;;  %v11732_v57 = vld [vmem:[%s13422_s25 + $0x3c0] ss:$24 sps:$4 sm:$0xff]  }
 0x150   : > { %984 = vmatpush1.bf16.msra.mxu0 %v11642_v58  ;;  %1376 = vmatpush1.bf16.msra.mxu1 %v11645_v59  ;;  %v11735_v58 = vld [vmem:[%s13422_s25 + $0x3c8] ss:$24 sps:$4 sm:$0xff]   ;;  %v11740_v59 = vld [vmem:[%s13422_s25 + $0x3f4] ss:$24 sps:$4 sm:$0xff]  }
 0x151   : > { %985 = vmatprep.subr.bf16.mxu0 %v11650_v60  ;;  %1377 = vmatprep.subr.bf16.mxu1 %v11653_v61  ;;  %v11743_v60 = vld [vmem:[%s13422_s25 + $0x3fc] ss:$24 sps:$4 sm:$0xff]   ;;  %v11738_v61 = vld [vmem:[%s13422_s25 + $0x3f0] ss:$24 sps:$4 sm:$0xff]  }
 0x154   : > { %986 = vmatpush1.bf16.msra.mxu0 %v11648_v62  ;;  %1378 = vmatpush1.bf16.msra.mxu1 %v11651_v63  ;;  %v11741_v62 = vld [vmem:[%s13422_s25 + $0x3f8] ss:$24 sps:$4 sm:$0xff]   ;;  %v11746_v63 = vld [vmem:[%s13422_s25 + $0x424] ss:$24 sps:$4 sm:$0xff]  }
 0x155   : > { %987 = vmatprep.subr.bf16.mxu0 %v11656_v0  ;;  %1379 = vmatprep.subr.bf16.mxu1 %v11659_v1  ;;  %v11749_v0 = vld [vmem:[%s13422_s25 + $0x42c] ss:$24 sps:$4 sm:$0xff]   ;;  %v11744_v1 = vld [vmem:[%s13422_s25 + $0x420] ss:$24 sps:$4 sm:$0xff]  }
 0x158   : > { %988 = vmatpush1.bf16.msra.mxu0 %v11654_v2  ;;  %1380 = vmatpush1.bf16.msra.mxu1 %v11657_v4  ;;  %v11747_v2 = vld [vmem:[%s13422_s25 + $0x428] ss:$24 sps:$4 sm:$0xff]   ;;  %v11752_v4 = vld [vmem:[%s13422_s25 + $0x454] ss:$24 sps:$4 sm:$0xff]  }
 0x159   : > { %1406 = vmatprep.subr.bf16.mxu0 %v11662_v5  ;;  %1447 = vmatprep.subr.bf16.mxu1 %v11665_v6  ;;  %v11755_v5 = vld [vmem:[%s13422_s25 + $0x45c] ss:$24 sps:$4 sm:$0xff]   ;;  %v11750_v6 = vld [vmem:[%s13422_s25 + $0x450] ss:$24 sps:$4 sm:$0xff]  }
 0x15b   : > { %1006 = vmatmul.mubr.bf16.vlgmr.msra.gmra.mrb[4].mxu0 %v13499_v37  ;;  %1398 = vmatmul.mubr.bf16.vlgmr.msra.gmra.mrb[4].mxu1 %v13538_v7 }
 0x15c   : > { %1407 = vmatpush1.bf16.msra.mxu0 %v11660_v8  ;;  %1448 = vmatpush1.bf16.msra.mxu1 %v11663_v9  ;;  %v11753_v8 = vld [vmem:[%s13422_s25 + $0x458] ss:$24 sps:$4 sm:$0xff]   ;;  %v11758_v9 = vld [vmem:[%s13422_s25 + $0x314] ss:$24 sps:$4 sm:$0xff]  }
 0x15d   : > { %1408 = vmatprep.subr.bf16.mxu0 %v11668_v10  ;;  %1449 = vmatprep.subr.bf16.mxu1 %v11671_v11  ;;  %v11761_v10 = vld [vmem:[%s13422_s25 + $0x484] ss:$24 sps:$4 sm:$0xff]   ;;  %v13613_v11 = vrot.slane %v13499_v37, 1 }
 0x15e   : > { %1438 = vmatprep.mubr.bf16.mxu0 %v13055_v3  ;;  %1479 = vmatprep.mubr.bf16.mxu1 %v13055_v3 }
 0x160   : > { %1409 = vmatpush1.bf16.msra.mxu0 %v11666_v12  ;;  %1450 = vmatpush1.bf16.msra.mxu1 %v11669_v13  ;;  %v11756_v12 = vld [vmem:[%s13422_s25 + $0x310] ss:$24 sps:$4 sm:$0xff]   ;;  %v11759_v13 = vld [vmem:[%s13422_s25 + $0x480] ss:$24 sps:$4 sm:$0xff]  }
 0x161   : > { %1410 = vmatprep.subr.bf16.mxu0 %v11674_v14  ;;  %1451 = vmatprep.subr.bf16.mxu1 %v11677_v15  ;;  %v11764_v14 = vld [vmem:[%s13422_s25 + $0x344] ss:$24 sps:$4 sm:$0xff]   ;;  %v11767_v15 = vld [vmem:[%s13422_s25 + $0x4b4] ss:$24 sps:$4 sm:$0xff]  }
 0x164   : > { %1411 = vmatpush1.bf16.msra.mxu0 %v11672_v16  ;;  %1452 = vmatpush1.bf16.msra.mxu1 %v11675_v17  ;;  %v11762_v16 = vld [vmem:[%s13422_s25 + $0x340] ss:$24 sps:$4 sm:$0xff]   ;;  %v11765_v17 = vld [vmem:[%s13422_s25 + $0x4b0] ss:$24 sps:$4 sm:$0xff]  }
 0x165   : > { %1412 = vmatprep.subr.bf16.mxu0 %v11680_v18  ;;  %1453 = vmatprep.subr.bf16.mxu1 %v11683_v19  ;;  %v11770_v18 = vld [vmem:[%s13422_s25 + $0x374] ss:$24 sps:$4 sm:$0xff]   ;;  %v11773_v19 = vld [vmem:[%s13422_s25 + $0x4e4] ss:$24 sps:$4 sm:$0xff]  }
 0x168   : > { %1413 = vmatpush1.bf16.msra.mxu0 %v11678_v20  ;;  %1454 = vmatpush1.bf16.msra.mxu1 %v11681_v21  ;;  %v11768_v20 = vld [vmem:[%s13422_s25 + $0x370] ss:$24 sps:$4 sm:$0xff]   ;;  %v11771_v21 = vld [vmem:[%s13422_s25 + $0x4e0] ss:$24 sps:$4 sm:$0xff]  }
 0x169   : > { %1414 = vmatprep.subr.bf16.mxu0 %v11686_v22  ;;  %1455 = vmatprep.subr.bf16.mxu1 %v11689_v23  ;;  %v11776_v22 = vld [vmem:[%s13422_s25 + $0x3a4] ss:$24 sps:$4 sm:$0xff]   ;;  %v11779_v23 = vld [vmem:[%s13422_s25 + $0x514] ss:$24 sps:$4 sm:$0xff]  }
 0x16c   : > { %1415 = vmatpush1.bf16.msra.mxu0 %v11684_v24  ;;  %1456 = vmatpush1.bf16.msra.mxu1 %v11687_v25  ;;  %v11774_v24 = vld [vmem:[%s13422_s25 + $0x3a0] ss:$24 sps:$4 sm:$0xff]   ;;  %v11777_v25 = vld [vmem:[%s13422_s25 + $0x510] ss:$24 sps:$4 sm:$0xff]  }
 0x16d   : > { %1416 = vmatprep.subr.bf16.mxu0 %v11692_v26  ;;  %1457 = vmatprep.subr.bf16.mxu1 %v11695_v27  ;;  %v11782_v26 = vld [vmem:[%s13422_s25 + $0x3d4] ss:$24 sps:$4 sm:$0xff]   ;;  %v11785_v27 = vld [vmem:[%s13422_s25 + $0x544] ss:$24 sps:$4 sm:$0xff]  }
 0x170   : > { %1417 = vmatpush1.bf16.msra.mxu0 %v11690_v28  ;;  %1458 = vmatpush1.bf16.msra.mxu1 %v11693_v29  ;;  %v11780_v28 = vld [vmem:[%s13422_s25 + $0x3d0] ss:$24 sps:$4 sm:$0xff]   ;;  %v11783_v29 = vld [vmem:[%s13422_s25 + $0x540] ss:$24 sps:$4 sm:$0xff]  }
 0x171   : > { %1418 = vmatprep.subr.bf16.mxu0 %v11698_v30  ;;  %1459 = vmatprep.subr.bf16.mxu1 %v11701_v31  ;;  %v11788_v30 = vld [vmem:[%s13422_s25 + $0x404] ss:$24 sps:$4 sm:$0xff]   ;;  %v11791_v31 = vld [vmem:[%s13422_s25 + $0x574] ss:$24 sps:$4 sm:$0xff]  }
 0x174   : > { %1419 = vmatpush1.bf16.msra.mxu0 %v11696_v32  ;;  %1460 = vmatpush1.bf16.msra.mxu1 %v11699_v33  ;;  %v11786_v32 = vld [vmem:[%s13422_s25 + $0x400] ss:$24 sps:$4 sm:$0xff]   ;;  %v11789_v33 = vld [vmem:[%s13422_s25 + $0x570] ss:$24 sps:$4 sm:$0xff]  }
 0x175   : > { %1420 = vmatprep.subr.bf16.mxu0 %v11704_v34  ;;  %1461 = vmatprep.subr.bf16.mxu1 %v11707_v35  ;;  %v11794_v34 = vld [vmem:[%s13422_s25 + $0x434] ss:$24 sps:$4 sm:$0xff]   ;;  %v11797_v35 = vld [vmem:[%s13422_s25 + $0x5a4] ss:$24 sps:$4 sm:$0xff]  }
 0x178   : > { %1421 = vmatpush1.bf16.msra.mxu0 %v11702_v36  ;;  %1462 = vmatpush1.bf16.msra.mxu1 %v11705_v38  ;;  %v11792_v36 = vld [vmem:[%s13422_s25 + $0x430] ss:$24 sps:$4 sm:$0xff]   ;;  %v11795_v38 = vld [vmem:[%s13422_s25 + $0x5a0] ss:$24 sps:$4 sm:$0xff]  }
 0x179   : > { %1834 = vmatprep.subr.bf16.mxu0 %v11710_v39  ;;  %1875 = vmatprep.subr.bf16.mxu1 %v11713_v40  ;;  %v11800_v39 = vld [vmem:[%s13422_s25 + $0x464] ss:$24 sps:$4 sm:$0xff]   ;;  %v11803_v40 = vld [vmem:[%s13422_s25 + $0x5d4] ss:$24 sps:$4 sm:$0xff]  }
 0x17b   : > { %1439 = vmatmul.mubr.bf16.vlgmr.msra.gmra.mrb[8].mxu0 %v13538_v7  ;;  %1480 = vmatmul.mubr.bf16.vlgmr.msra.gmra.mrb[8].mxu1 %v13538_v7 }
 0x17c   : > { %1835 = vmatpush1.bf16.msra.mxu0 %v11708_v41  ;;  %1876 = vmatpush1.bf16.msra.mxu1 %v11711_v42  ;;  %v11798_v41 = vld [vmem:[%s13422_s25 + $0x460] ss:$24 sps:$4 sm:$0xff]   ;;  %v11801_v42 = vld [vmem:[%s13422_s25 + $0x5d0] ss:$24 sps:$4 sm:$0xff]  }
 0x17d   : > { %1836 = vmatprep.subr.bf16.mxu0 %v11716_v43  ;;  %1877 = vmatprep.subr.bf16.mxu1 %v11719_v44  ;;  %v11806_v43 = vld [vmem:[%s13422_s25 + $0x48c] ss:$24 sps:$4 sm:$0xff]  }
 0x17e   : > { %1866 = vmatprep.mubr.bf16.mxu0 %v13055_v3  ;;  %1907 = vmatprep.mubr.bf16.mxu1 %v13055_v3  ;;  %v11809_v44 = vld [vmem:[%s13422_s25 + $0x494] ss:$24 sps:$4 sm:$0xff]  }
 0x180   : > { %1837 = vmatpush1.bf16.msra.mxu0 %v11714_v45  ;;  %1878 = vmatpush1.bf16.msra.mxu1 %v11717_v46  ;;  %v13652_v45 = vrot.slane %v13538_v7, 1  ;;  %v11804_v46 = vld [vmem:[%s13422_s25 + $0x488] ss:$24 sps:$4 sm:$0xff]  }
 0x181   : > { %1838 = vmatprep.subr.bf16.mxu0 %v11722_v47  ;;  %1879 = vmatprep.subr.bf16.mxu1 %v11725_v48  ;;  %v11807_v47 = vld [vmem:[%s13422_s25 + $0x490] ss:$24 sps:$4 sm:$0xff]   ;;  %v11812_v48 = vld [vmem:[%s13422_s25 + $0x4bc] ss:$24 sps:$4 sm:$0xff]  }
 0x184   : > { %1839 = vmatpush1.bf16.msra.mxu0 %v11720_v49  ;;  %1880 = vmatpush1.bf16.msra.mxu1 %v11723_v50  ;;  %v11815_v49 = vld [vmem:[%s13422_s25 + $0x4c4] ss:$24 sps:$4 sm:$0xff]   ;;  %v11810_v50 = vld [vmem:[%s13422_s25 + $0x4b8] ss:$24 sps:$4 sm:$0xff]  }
 0x185   : > { %1840 = vmatprep.subr.bf16.mxu0 %v11728_v51  ;;  %1881 = vmatprep.subr.bf16.mxu1 %v11731_v52  ;;  %v11813_v51 = vld [vmem:[%s13422_s25 + $0x4c0] ss:$24 sps:$4 sm:$0xff]   ;;  %v11818_v52 = vld [vmem:[%s13422_s25 + $0x4ec] ss:$24 sps:$4 sm:$0xff]  }
 0x188   : > { %1841 = vmatpush1.bf16.msra.mxu0 %v11726_v53  ;;  %1882 = vmatpush1.bf16.msra.mxu1 %v11729_v54  ;;  %v11821_v53 = vld [vmem:[%s13422_s25 + $0x4f4] ss:$24 sps:$4 sm:$0xff]   ;;  %v11816_v54 = vld [vmem:[%s13422_s25 + $0x4e8] ss:$24 sps:$4 sm:$0xff]  }
 0x189   : > { %1842 = vmatprep.subr.bf16.mxu0 %v11734_v55  ;;  %1883 = vmatprep.subr.bf16.mxu1 %v11737_v56  ;;  %v11819_v55 = vld [vmem:[%s13422_s25 + $0x4f0] ss:$24 sps:$4 sm:$0xff]   ;;  %v11824_v56 = vld [vmem:[%s13422_s25 + $0x51c] ss:$24 sps:$4 sm:$0xff]  }
 0x18c   : > { %1843 = vmatpush1.bf16.msra.mxu0 %v11732_v57  ;;  %1884 = vmatpush1.bf16.msra.mxu1 %v11735_v58  ;;  %v11827_v57 = vld [vmem:[%s13422_s25 + $0x524] ss:$24 sps:$4 sm:$0xff]   ;;  %v11822_v58 = vld [vmem:[%s13422_s25 + $0x518] ss:$24 sps:$4 sm:$0xff]  }
 0x18d   : > { %1844 = vmatprep.subr.bf16.mxu0 %v11740_v59  ;;  %1885 = vmatprep.subr.bf16.mxu1 %v11743_v60  ;;  %v11825_v59 = vld [vmem:[%s13422_s25 + $0x520] ss:$24 sps:$4 sm:$0xff]   ;;  %v11830_v60 = vld [vmem:[%s13422_s25 + $0x54c] ss:$24 sps:$4 sm:$0xff]  }
 0x190   : > { %1845 = vmatpush1.bf16.msra.mxu0 %v11738_v61  ;;  %1886 = vmatpush1.bf16.msra.mxu1 %v11741_v62  ;;  %v11833_v61 = vld [vmem:[%s13422_s25 + $0x554] ss:$24 sps:$4 sm:$0xff]   ;;  %v11828_v62 = vld [vmem:[%s13422_s25 + $0x548] ss:$24 sps:$4 sm:$0xff]  }
 0x191   : > { %1846 = vmatprep.subr.bf16.mxu0 %v11746_v63  ;;  %1887 = vmatprep.subr.bf16.mxu1 %v11749_v0  ;;  %v11831_v63 = vld [vmem:[%s13422_s25 + $0x550] ss:$24 sps:$4 sm:$0xff]   ;;  %v11836_v0 = vld [vmem:[%s13422_s25 + $0x57c] ss:$24 sps:$4 sm:$0xff]  }
 0x194   : > { %1847 = vmatpush1.bf16.msra.mxu0 %v11744_v1  ;;  %1888 = vmatpush1.bf16.msra.mxu1 %v11747_v2  ;;  %v11839_v1 = vld [vmem:[%s13422_s25 + $0x584] ss:$24 sps:$4 sm:$0xff]   ;;  %v11834_v2 = vld [vmem:[%s13422_s25 + $0x578] ss:$24 sps:$4 sm:$0xff]  }
 0x195   : > { %1848 = vmatprep.subr.bf16.mxu0 %v11752_v4  ;;  %1889 = vmatprep.subr.bf16.mxu1 %v11755_v5  ;;  %v11837_v4 = vld [vmem:[%s13422_s25 + $0x580] ss:$24 sps:$4 sm:$0xff]   ;;  %v11842_v5 = vld [vmem:[%s13422_s25 + $0x5ac] ss:$24 sps:$4 sm:$0xff]  }
 0x198   : > { %1849 = vmatpush1.bf16.msra.mxu0 %v11750_v6  ;;  %1890 = vmatpush1.bf16.msra.mxu1 %v11753_v8  ;;  %v11845_v6 = vld [vmem:[%s13422_s25 + $0x5b4] ss:$24 sps:$4 sm:$0xff]   ;;  %v11840_v8 = vld [vmem:[%s13422_s25 + $0x5a8] ss:$24 sps:$4 sm:$0xff]  }
 0x199   : > { %1916 = vmatprep.subr.bf16.mxu0 %v11758_v9  ;;  %2302 = vmatprep.subr.bf16.mxu1 %v11761_v10  ;;  %v11843_v9 = vld [vmem:[%s13422_s25 + $0x5b0] ss:$24 sps:$4 sm:$0xff]   ;;  %v11848_v10 = vld [vmem:[%s13422_s25 + $0x5dc] ss:$24 sps:$4 sm:$0xff]  }
 0x19b   : > { %1867 = vmatmul.mubr.bf16.vlgmr.msra.gmra.mrb[12].mxu0 %v13613_v11  ;;  %1908 = vmatmul.mubr.bf16.vlgmr.msra.gmra.mrb[12].mxu1 %v13613_v11 }
 0x19c   : > { %1917 = vmatpush1.bf16.msra.mxu0 %v11756_v12  ;;  %2303 = vmatpush1.bf16.msra.mxu1 %v11759_v13  ;;  %v11846_v12 = vld [vmem:[%s13422_s25 + $0x5d8] ss:$24 sps:$4 sm:$0xff]  }
 0x19d   : > { %1918 = vmatprep.subr.bf16.mxu0 %v11764_v14  ;;  %2304 = vmatprep.subr.bf16.mxu1 %v11767_v15  ;;  %v11849_v13 = vld [vmem:[%s13422_s25 + $0x5e0] ss:$24 sps:$4 sm:$0xff]   ;;  %v11854_v14 = vld [vmem:[%s13422_s25 + $0x604] ss:$24 sps:$4 sm:$0xff]  }
 0x19e   : > { %1948 = vmatprep.mubr.bf16.mxu0 %v13055_v3  ;;  %2334 = vmatprep.mubr.bf16.mxu1 %v13055_v3  ;;  %v11857_v15 = vld [vmem:[%s13422_s25 + $0x60c] ss:$24 sps:$4 sm:$0xff]  }
 0x1a0   : > { %1919 = vmatpush1.bf16.msra.mxu0 %v11762_v16  ;;  %2305 = vmatpush1.bf16.msra.mxu1 %v11765_v17  ;;  %v11852_v16 = vld [vmem:[%s13422_s25 + $0x600] ss:$24 sps:$4 sm:$0xff]  }
 0x1a1   : > { %1920 = vmatprep.subr.bf16.mxu0 %v11770_v18  ;;  %2306 = vmatprep.subr.bf16.mxu1 %v11773_v19  ;;  %v11855_v17 = vld [vmem:[%s13422_s25 + $0x608] ss:$24 sps:$4 sm:$0xff]   ;;  %v11860_v18 = vld [vmem:[%s13422_s25 + $0x634] ss:$24 sps:$4 sm:$0xff]  }
 0x1a2   : > { %v11863_v19 = vld [vmem:[%s13422_s25 + $0x63c] ss:$24 sps:$4 sm:$0xff]  }
 0x1a4   : > { %1921 = vmatpush1.bf16.msra.mxu0 %v11768_v20  ;;  %2307 = vmatpush1.bf16.msra.mxu1 %v11771_v21  ;;  %v11858_v20 = vld [vmem:[%s13422_s25 + $0x630] ss:$24 sps:$4 sm:$0xff]  }
 0x1a5   : > { %1922 = vmatprep.subr.bf16.mxu0 %v11776_v22  ;;  %2308 = vmatprep.subr.bf16.mxu1 %v11779_v23  ;;  %v11861_v21 = vld [vmem:[%s13422_s25 + $0x638] ss:$24 sps:$4 sm:$0xff]   ;;  %v11866_v22 = vld [vmem:[%s13422_s25 + $0x664] ss:$24 sps:$4 sm:$0xff]  }
 0x1a6   : > { %v11869_v23 = vld [vmem:[%s13422_s25 + $0x66c] ss:$24 sps:$4 sm:$0xff]  }
 0x1a8   : > { %1923 = vmatpush1.bf16.msra.mxu0 %v11774_v24  ;;  %2309 = vmatpush1.bf16.msra.mxu1 %v11777_v25  ;;  %v11864_v24 = vld [vmem:[%s13422_s25 + $0x660] ss:$24 sps:$4 sm:$0xff]  }
 0x1a9   : > { %1924 = vmatprep.subr.bf16.mxu0 %v11782_v26  ;;  %2310 = vmatprep.subr.bf16.mxu1 %v11785_v27  ;;  %v11867_v25 = vld [vmem:[%s13422_s25 + $0x668] ss:$24 sps:$4 sm:$0xff]   ;;  %v11872_v26 = vld [vmem:[%s13422_s25 + $0x694] ss:$24 sps:$4 sm:$0xff]  }
 0x1aa   : > { %v11875_v27 = vld [vmem:[%s13422_s25 + $0x69c] ss:$24 sps:$4 sm:$0xff]  }
 0x1ac   : > { %1925 = vmatpush1.bf16.msra.mxu0 %v11780_v28  ;;  %2311 = vmatpush1.bf16.msra.mxu1 %v11783_v29  ;;  %v11870_v28 = vld [vmem:[%s13422_s25 + $0x690] ss:$24 sps:$4 sm:$0xff]  }
 0x1ad   : > { %1926 = vmatprep.subr.bf16.mxu0 %v11788_v30  ;;  %2312 = vmatprep.subr.bf16.mxu1 %v11791_v31  ;;  %v11873_v29 = vld [vmem:[%s13422_s25 + $0x698] ss:$24 sps:$4 sm:$0xff]   ;;  %v11878_v30 = vld [vmem:[%s13422_s25 + $0x6c4] ss:$24 sps:$4 sm:$0xff]  }
 0x1ae   : > { %v11881_v31 = vld [vmem:[%s13422_s25 + $0x6cc] ss:$24 sps:$4 sm:$0xff]  }
 0x1b0   : > { %1927 = vmatpush1.bf16.msra.mxu0 %v11786_v32  ;;  %2313 = vmatpush1.bf16.msra.mxu1 %v11789_v33  ;;  %v11876_v32 = vld [vmem:[%s13422_s25 + $0x6c0] ss:$24 sps:$4 sm:$0xff]  }
 0x1b1   : > { %1928 = vmatprep.subr.bf16.mxu0 %v11794_v34  ;;  %2314 = vmatprep.subr.bf16.mxu1 %v11797_v35  ;;  %v11879_v33 = vld [vmem:[%s13422_s25 + $0x6c8] ss:$24 sps:$4 sm:$0xff]   ;;  %v11884_v34 = vld [vmem:[%s13422_s25 + $0x6f4] ss:$24 sps:$4 sm:$0xff]  }
 0x1b2   : > { %v11887_v35 = vld [vmem:[%s13422_s25 + $0x6fc] ss:$24 sps:$4 sm:$0xff]  }
 0x1b4   : > { %1929 = vmatpush1.bf16.msra.mxu0 %v11792_v36  ;;  %2315 = vmatpush1.bf16.msra.mxu1 %v11795_v38  ;;  %v11882_v36 = vld [vmem:[%s13422_s25 + $0x6f0] ss:$24 sps:$4 sm:$0xff]  }
 0x1b5   : > { %1930 = vmatprep.subr.bf16.mxu0 %v11800_v39  ;;  %2316 = vmatprep.subr.bf16.mxu1 %v11803_v40  ;;  %v11885_v38 = vld [vmem:[%s13422_s25 + $0x6f8] ss:$24 sps:$4 sm:$0xff]   ;;  %v11890_v39 = vld [vmem:[%s13422_s25 + $0x724] ss:$24 sps:$4 sm:$0xff]  }
 0x1b6   : > { %v11893_v40 = vld [vmem:[%s13422_s25 + $0x72c] ss:$24 sps:$4 sm:$0xff]  }
 0x1b8   : > { %1931 = vmatpush1.bf16.msra.mxu0 %v11798_v41  ;;  %2317 = vmatpush1.bf16.msra.mxu1 %v11801_v42  ;;  %v11888_v41 = vld [vmem:[%s13422_s25 + $0x720] ss:$24 sps:$4 sm:$0xff]  }
 0x1b9   : > { %2343 = vmatprep.subr.bf16.mxu0 %v11806_v43  ;;  %2384 = vmatprep.subr.bf16.mxu1 %v11809_v44  ;;  %v11891_v42 = vld [vmem:[%s13422_s25 + $0x728] ss:$24 sps:$4 sm:$0xff]   ;;  %v11896_v43 = vld [vmem:[%s13422_s25 + $0x754] ss:$24 sps:$4 sm:$0xff]  }
 0x1ba   : > { %v11899_v44 = vld [vmem:[%s13422_s25 + $0x75c] ss:$24 sps:$4 sm:$0xff]  }
 0x1bb   : > { %1949 = vmatmul.mubr.bf16.vlgmr.msra.gmra.mrb[16].mxu0 %v13613_v11  ;;  %2335 = vmatmul.mubr.bf16.vlgmr.msra.gmra.mrb[16].mxu1 %v13652_v45  ;;  %v11851_v11 = vld [vmem:[%s13422_s25 + $0x5e4] ss:$24 sps:$4 sm:$0xff]  }
 0x1bc   : > { %2344 = vmatpush1.bf16.msra.mxu0 %v11804_v46  ;;  %2385 = vmatpush1.bf16.msra.mxu1 %v11807_v47  ;;  %v11897_v46 = vld [vmem:[%s13422_s25 + $0x758] ss:$24 sps:$4 sm:$0xff]   ;;  %v11902_v47 = vld [vmem:[%s13422_s25 + $0x614] ss:$24 sps:$4 sm:$0xff]  }
 0x1bd   : > { %2345 = vmatprep.subr.bf16.mxu0 %v11812_v48  ;;  %2386 = vmatprep.subr.bf16.mxu1 %v11815_v49  ;;  %v11905_v48 = vld [vmem:[%s13422_s25 + $0x784] ss:$24 sps:$4 sm:$0xff]   ;;  %v13727_v49 = vrot.slane %v13499_v37, 2 }
 0x1be   : > { %2375 = vmatprep.mubr.bf16.mxu0 %v13055_v3  ;;  %2416 = vmatprep.mubr.bf16.mxu1 %v13055_v3 }
 0x1c0   : > { %2346 = vmatpush1.bf16.msra.mxu0 %v11810_v50  ;;  %2387 = vmatpush1.bf16.msra.mxu1 %v11813_v51  ;;  %v11900_v50 = vld [vmem:[%s13422_s25 + $0x610] ss:$24 sps:$4 sm:$0xff]   ;;  %v11903_v51 = vld [vmem:[%s13422_s25 + $0x780] ss:$24 sps:$4 sm:$0xff]  }
 0x1c1   : > { %2347 = vmatprep.subr.bf16.mxu0 %v11818_v52  ;;  %2388 = vmatprep.subr.bf16.mxu1 %v11821_v53  ;;  %v11908_v52 = vld [vmem:[%s13422_s25 + $0x644] ss:$24 sps:$4 sm:$0xff]   ;;  %v11911_v53 = vld [vmem:[%s13422_s25 + $0x7b4] ss:$24 sps:$4 sm:$0xff]  }
 0x1c4   : > { %2348 = vmatpush1.bf16.msra.mxu0 %v11816_v54  ;;  %2389 = vmatpush1.bf16.msra.mxu1 %v11819_v55  ;;  %v11906_v54 = vld [vmem:[%s13422_s25 + $0x640] ss:$24 sps:$4 sm:$0xff]   ;;  %v11909_v55 = vld [vmem:[%s13422_s25 + $0x7b0] ss:$24 sps:$4 sm:$0xff]  }
 0x1c5   : > { %2349 = vmatprep.subr.bf16.mxu0 %v11824_v56  ;;  %2390 = vmatprep.subr.bf16.mxu1 %v11827_v57  ;;  %v11914_v56 = vld [vmem:[%s13422_s25 + $0x674] ss:$24 sps:$4 sm:$0xff]   ;;  %v11917_v57 = vld [vmem:[%s13422_s25 + $0x7e4] ss:$24 sps:$4 sm:$0xff]  }
 0x1c8   : > { %2350 = vmatpush1.bf16.msra.mxu0 %v11822_v58  ;;  %2391 = vmatpush1.bf16.msra.mxu1 %v11825_v59  ;;  %v11912_v58 = vld [vmem:[%s13422_s25 + $0x670] ss:$24 sps:$4 sm:$0xff]   ;;  %v11915_v59 = vld [vmem:[%s13422_s25 + $0x7e0] ss:$24 sps:$4 sm:$0xff]  }
 0x1c9   : > { %2351 = vmatprep.subr.bf16.mxu0 %v11830_v60  ;;  %2392 = vmatprep.subr.bf16.mxu1 %v11833_v61  ;;  %v11920_v60 = vld [vmem:[%s13422_s25 + $0x6a4] ss:$24 sps:$4 sm:$0xff]   ;;  %v11923_v61 = vld [vmem:[%s13422_s25 + $0x814] ss:$24 sps:$4 sm:$0xff]  }
 0x1cc   : > { %2352 = vmatpush1.bf16.msra.mxu0 %v11828_v62  ;;  %2393 = vmatpush1.bf16.msra.mxu1 %v11831_v63  ;;  %v11918_v62 = vld [vmem:[%s13422_s25 + $0x6a0] ss:$24 sps:$4 sm:$0xff]   ;;  %v11921_v63 = vld [vmem:[%s13422_s25 + $0x810] ss:$24 sps:$4 sm:$0xff]  }
 0x1cd   : > { %2353 = vmatprep.subr.bf16.mxu0 %v11836_v0  ;;  %2394 = vmatprep.subr.bf16.mxu1 %v11839_v1  ;;  %v11926_v0 = vld [vmem:[%s13422_s25 + $0x6d4] ss:$24 sps:$4 sm:$0xff]   ;;  %v11929_v1 = vld [vmem:[%s13422_s25 + $0x844] ss:$24 sps:$4 sm:$0xff]  }
 0x1d0   : > { %2354 = vmatpush1.bf16.msra.mxu0 %v11834_v2  ;;  %2395 = vmatpush1.bf16.msra.mxu1 %v11837_v4  ;;  %v13056_v2 = vmov 1966171168  }
 0x1d1   : > { %2355 = vmatprep.subr.bf16.mxu0 %v11842_v5  ;;  %2396 = vmatprep.subr.bf16.mxu1 %v11845_v6  ;;  %v1024_v4 = vunpack.c.l.s4 %v13056_v2  ;;  %v1026_v5 = vlaneseq  ;;  %v11924_v6 = vld [vmem:[%s13422_s25 + $0x6d0] ss:$24 sps:$4 sm:$0xff]  }
 0x1d3   : > { %vm13828_vm1 = vcmp.lt.s32.totalorder %v1026_v5, 768 }
 0x1d4   : > { %2356 = vmatpush1.bf16.msra.mxu0 %v11840_v8  ;;  %2397 = vmatpush1.bf16.msra.mxu1 %v11843_v9  ;;  %v11927_v8 = vld [vmem:[%s13422_s25 + $0x840] ss:$24 sps:$4 sm:$0xff]   ;;  %v11932_v9 = vld [vmem:[%s13422_s25 + $0x704] ss:$24 sps:$4 sm:$0xff]  }
 0x1d5   : > { %2357 = vmatprep.subr.bf16.mxu0 %v11848_v10  ;;  %2398 = vmatprep.subr.bf16.mxu1 %v11851_v11  ;;  %v11935_v10 = vld [vmem:[%s13422_s25 + $0x874] ss:$24 sps:$4 sm:$0xff]   ;;  %v1025_v11 = vunpack.c.0.s8 %v1024_v4  ;;  %v11984_v4 = vld [vmem:[%s13422_s25 + $0x8a8] ss:$24 sps:$4 sm:$0xff]  }
 0x1d8   : > { %2358 = vmatpush1.bf16.msra.mxu0 %v11846_v12  ;;  %2399 = vmatpush1.bf16.msra.mxu1 %v11849_v13  ;;  %v1027_v12 = vshrl.u32 %v1026_v5, 7  ;;  %v11930_v13 = vld [vmem:[%s13422_s25 + $0x700] ss:$24 sps:$4 sm:$0xff]   ;;  %v12002_v5 = vld [vmem:[%s13422_s25 + $0x930] ss:$24 sps:$4 sm:$0xff]  }
 0x1d9   : > { %2770 = vmatprep.subr.bf16.mxu0 %v11854_v14  ;;  %2811 = vmatprep.subr.bf16.mxu1 %v11857_v15  ;;  %v11933_v14 = vld [vmem:[%s13422_s25 + $0x870] ss:$24 sps:$4 sm:$0xff]   ;;  %v11938_v15 = vld [vmem:[%s13422_s25 + $0x734] ss:$24 sps:$4 sm:$0xff]  }
 0x1db   : > { %2376 = vmatmul.mubr.bf16.vlgmr.msra.gmra.mrb[20].mxu0 %v13652_v45  ;;  %2417 = vmatmul.mubr.bf16.vlgmr.msra.gmra.mrb[20].mxu1 %v13652_v45  ;;  %v11894_v45 = vld [vmem:[%s13422_s25 + $0x750] ss:$24 sps:$4 sm:$0xff]  }
 0x1dc   : > { %2771 = vmatpush1.bf16.msra.mxu0 %v11852_v16  ;;  %2812 = vmatpush1.bf16.msra.mxu1 %v11855_v17  ;;  %v11941_v16 = vld [vmem:[%s13422_s25 + $0x8a4] ss:$24 sps:$4 sm:$0xff]  }
 0x1dd   : > { %2772 = vmatprep.subr.bf16.mxu0 %v11860_v18  ;;  %2813 = vmatprep.subr.bf16.mxu1 %v11863_v19  ;;  %v13758_v19 = vsub.s32 %v1025_v11, %v1027_v12 }
 0x1de   : > { %2802 = vmatprep.mubr.bf16.mxu0 %v13055_v3  ;;  %2843 = vmatprep.mubr.bf16.mxu1 %v13055_v3 }
 0x1e0   : > { %2773 = vmatpush1.bf16.msra.mxu0 %v11858_v20  ;;  %2814 = vmatpush1.bf16.msra.mxu1 %v11861_v21 }
 0x1e1   : > { %2774 = vmatprep.subr.bf16.mxu0 %v11866_v22  ;;  %2815 = vmatprep.subr.bf16.mxu1 %v11869_v23  ;;  %v11936_v22 = vld [vmem:[%s13422_s25 + $0x730] ss:$24 sps:$4 sm:$0xff]  }
 0x1e4   : > { %2775 = vmatpush1.bf16.msra.mxu0 %v11864_v24  ;;  %2816 = vmatpush1.bf16.msra.mxu1 %v11867_v25 }
 0x1e5   : > { %2776 = vmatprep.subr.bf16.mxu0 %v11872_v26  ;;  %2817 = vmatprep.subr.bf16.mxu1 %v11875_v27  ;;  %v11939_v27 = vld [vmem:[%s13422_s25 + $0x8a0] ss:$24 sps:$4 sm:$0xff]  }
 0x1e8   : > { %2777 = vmatpush1.bf16.msra.mxu0 %v11870_v28  ;;  %2818 = vmatpush1.bf16.msra.mxu1 %v11873_v29  ;;  %v11944_v28 = vld [vmem:[%s13422_s25 + $0x764] ss:$24 sps:$4 sm:$0xff]  }
 0x1e9   : > { %2778 = vmatprep.subr.bf16.mxu0 %v11878_v30  ;;  %2819 = vmatprep.subr.bf16.mxu1 %v11881_v31  ;;  %v11947_v31 = vld [vmem:[%s13422_s25 + $0x8d4] ss:$24 sps:$4 sm:$0xff]  }
 0x1ec   : > { %2779 = vmatpush1.bf16.msra.mxu0 %v11876_v32  ;;  %2820 = vmatpush1.bf16.msra.mxu1 %v11879_v33 }
 0x1ed   : > { %2780 = vmatprep.subr.bf16.mxu0 %v11884_v34  ;;  %2821 = vmatprep.subr.bf16.mxu1 %v11887_v35  ;;  %v11942_v34 = vld [vmem:[%s13422_s25 + $0x760] ss:$24 sps:$4 sm:$0xff]  }
 0x1f0   : > { %2781 = vmatpush1.bf16.msra.mxu0 %v11882_v36  ;;  %2822 = vmatpush1.bf16.msra.mxu1 %v11885_v38  ;;  %v11945_v36 = vld [vmem:[%s13422_s25 + $0x8d0] ss:$24 sps:$4 sm:$0xff]   ;;  %v11950_v38 = vld [vmem:[%s13422_s25 + $0x78c] ss:$24 sps:$4 sm:$0xff]  }
 0x1f1   : > { %2782 = vmatprep.subr.bf16.mxu0 %v11890_v39  ;;  %2823 = vmatprep.subr.bf16.mxu1 %v11893_v40  ;;  %v11953_v39 = vld [vmem:[%s13422_s25 + $0x794] ss:$24 sps:$4 sm:$0xff]   ;;  %v13777_v40 = vrot.slane %v13538_v7, 2 }
 0x1f4   : > { %2783 = vmatpush1.bf16.msra.mxu0 %v11888_v41  ;;  %2824 = vmatpush1.bf16.msra.mxu1 %v11891_v42  ;;  %v11948_v41 = vld [vmem:[%s13422_s25 + $0x788] ss:$24 sps:$4 sm:$0xff]  }
 0x1f5   : > { %2784 = vmatprep.subr.bf16.mxu0 %v11896_v43  ;;  %2825 = vmatprep.subr.bf16.mxu1 %v11899_v44  ;;  %v11951_v42 = vld [vmem:[%s13422_s25 + $0x790] ss:$24 sps:$4 sm:$0xff]   ;;  %v11956_v43 = vld [vmem:[%s13422_s25 + $0x7bc] ss:$24 sps:$4 sm:$0xff]  }
 0x1f6   : > { %v11959_v44 = vld [vmem:[%s13422_s25 + $0x7c4] ss:$24 sps:$4 sm:$0xff]  }
 0x1f8   : > { %2785 = vmatpush1.bf16.msra.mxu0 %v11894_v45  ;;  %2826 = vmatpush1.bf16.msra.mxu1 %v11897_v46  ;;  %v11954_v45 = vld [vmem:[%s13422_s25 + $0x7b8] ss:$24 sps:$4 sm:$0xff]  }
 0x1f9   : > { %2852 = vmatprep.subr.bf16.mxu0 %v11902_v47  ;;  %3238 = vmatprep.subr.bf16.mxu1 %v11905_v48  ;;  %v11957_v46 = vld [vmem:[%s13422_s25 + $0x7c0] ss:$24 sps:$4 sm:$0xff]   ;;  %v11962_v47 = vld [vmem:[%s13422_s25 + $0x7ec] ss:$24 sps:$4 sm:$0xff]  }
 0x1fa   : > { %v11965_v48 = vld [vmem:[%s13422_s25 + $0x7f4] ss:$24 sps:$4 sm:$0xff]  }
 0x1fb   : > { %2803 = vmatmul.mubr.bf16.vlgmr.msra.gmra.mrb[24].mxu0 %v13727_v49  ;;  %2844 = vmatmul.mubr.bf16.vlgmr.msra.gmra.mrb[24].mxu1 %v13727_v49 }
 0x1fc   : > { %2853 = vmatpush1.bf16.msra.mxu0 %v11900_v50  ;;  %3239 = vmatpush1.bf16.msra.mxu1 %v11903_v51  ;;  %v11963_v50 = vld [vmem:[%s13422_s25 + $0x7f0] ss:$24 sps:$4 sm:$0xff]   ;;  %v11968_v51 = vld [vmem:[%s13422_s25 + $0x81c] ss:$24 sps:$4 sm:$0xff]  }
 0x1fd   : > { %2854 = vmatprep.subr.bf16.mxu0 %v11908_v52  ;;  %3240 = vmatprep.subr.bf16.mxu1 %v11911_v53  ;;  %v11971_v52 = vld [vmem:[%s13422_s25 + $0x824] ss:$24 sps:$4 sm:$0xff]   ;;  %v11966_v53 = vld [vmem:[%s13422_s25 + $0x818] ss:$24 sps:$4 sm:$0xff]  }
 0x1fe   : > { %2884 = vmatprep.mubr.bf16.mxu0 %v13055_v3  ;;  %3270 = vmatprep.mubr.bf16.mxu1 %v13055_v3 }
 0x200   : > { %2855 = vmatpush1.bf16.msra.mxu0 %v11906_v54  ;;  %3241 = vmatpush1.bf16.msra.mxu1 %v11909_v55  ;;  %v11969_v54 = vld [vmem:[%s13422_s25 + $0x820] ss:$24 sps:$4 sm:$0xff]   ;;  %v11974_v55 = vld [vmem:[%s13422_s25 + $0x84c] ss:$24 sps:$4 sm:$0xff]  }
 0x201   : > { %2856 = vmatprep.subr.bf16.mxu0 %v11914_v56  ;;  %3242 = vmatprep.subr.bf16.mxu1 %v11917_v57  ;;  %v11977_v56 = vld [vmem:[%s13422_s25 + $0x854] ss:$24 sps:$4 sm:$0xff]   ;;  %v11972_v57 = vld [vmem:[%s13422_s25 + $0x848] ss:$24 sps:$4 sm:$0xff]  }
 0x204   : > { %2857 = vmatpush1.bf16.msra.mxu0 %v11912_v58  ;;  %3243 = vmatpush1.bf16.msra.mxu1 %v11915_v59  ;;  %v11975_v58 = vld [vmem:[%s13422_s25 + $0x850] ss:$24 sps:$4 sm:$0xff]   ;;  %v11980_v59 = vld [vmem:[%s13422_s25 + $0x87c] ss:$24 sps:$4 sm:$0xff]  }
 0x205   : > { %2858 = vmatprep.subr.bf16.mxu0 %v11920_v60  ;;  %3244 = vmatprep.subr.bf16.mxu1 %v11923_v61  ;;  %v11983_v60 = vld [vmem:[%s13422_s25 + $0x884] ss:$24 sps:$4 sm:$0xff]   ;;  %v11978_v61 = vld [vmem:[%s13422_s25 + $0x878] ss:$24 sps:$4 sm:$0xff]  }
 0x208   : > { %2859 = vmatpush1.bf16.msra.mxu0 %v11918_v62  ;;  %3245 = vmatpush1.bf16.msra.mxu1 %v11921_v63  ;;  %v11981_v62 = vld [vmem:[%s13422_s25 + $0x880] ss:$24 sps:$4 sm:$0xff]   ;;  %v11986_v63 = vld [vmem:[%s13422_s25 + $0x8ac] ss:$24 sps:$4 sm:$0xff]  }
 0x209   : > { %2860 = vmatprep.subr.bf16.mxu0 %v11926_v0  ;;  %3246 = vmatprep.subr.bf16.mxu1 %v11929_v1  ;;  %v11989_v0 = vld [vmem:[%s13422_s25 + $0x8b4] ss:$24 sps:$4 sm:$0xff]  }
 0x20c   : > { %2861 = vmatpush1.bf16.msra.mxu0 %v11924_v6  ;;  %3247 = vmatpush1.bf16.msra.mxu1 %v11927_v8  ;;  %v11987_v6 = vld [vmem:[%s13422_s25 + $0x8b0] ss:$24 sps:$4 sm:$0xff]  }
 0x20d   : > { %2862 = vmatprep.subr.bf16.mxu0 %v11932_v9  ;;  %3248 = vmatprep.subr.bf16.mxu1 %v11935_v10  ;;  %v600_v8 = vld [vmem:[#allocation2] ss:$8 sm:$0xf] }
 0x20e   : > { %v925_v17 = vpop.f32.mrb[0].mxu0  ;;  %v966_v18 = vpop.f32.mrb[0].mxu1  ;;  %v601_v9 = vld [vmem:[#allocation2] ss:$8 sm:$0x30] }
 0x20f   : > { %v927_v20 = vpop.f32.mrb[1].mxu0  ;;  %v968_v21 = vpop.f32.mrb[1].mxu1 }
 0x210   : > { %v1020_v23 = vcombine.low %v925_v17, %v927_v20  ;;  %v1021_v24 = vcombine.low %v966_v18, %v968_v21  ;;  %v929_v25 = vpop.f32.mrb[2].mxu0  ;;  %v970_v26 = vpop.f32.mrb[2].mxu1  ;;  %2863 = vmatpush1.bf16.msra.mxu0 %v11930_v13  ;;  %3249 = vmatpush1.bf16.msra.mxu1 %v11933_v14  ;;  %v11992_v18 = vld [vmem:[%s13422_s25 + $0x8dc] ss:$24 sps:$4 sm:$0xff]  }
 0x211   : > { %v930_v29 = vpop.f32.mrb[3].mxu0  ;;  %v971_v30 = vpop.f32.mrb[3].mxu1  ;;  %2864 = vmatprep.subr.bf16.mxu0 %v11938_v15  ;;  %3250 = vmatprep.subr.bf16.mxu1 %v11941_v16  ;;  %v11995_v20 = vld [vmem:[%s13422_s25 + $0x8e4] ss:$24 sps:$4 sm:$0xff]   ;;  %v602_v25 = vor.u32 %v601_v9, %v600_v8 }
 0x212   : > { %v13765_v32 = vrot.slane %v1020_v23, %v13758_v19  ;;  %v13768_v33 = vrot.slane %v1021_v24, %v13758_v19  ;;  %v11993_v23 = vld [vmem:[%s13422_s25 + $0x8e0] ss:$24 sps:$4 sm:$0xff]  }
 0x213   : > { %v1070_v8 = vld [vmem:[#allocation2 + $0x1] ss:$8 sm:$0x30] }
 0x214   : > { %v1044_v35 = vcombine.low %v13765_v32, %v13768_v33  ;;  %2865 = vmatpush1.bf16.msra.mxu0 %v11936_v22  ;;  %3251 = vmatpush1.bf16.msra.mxu1 %v11939_v27  ;;  %v11990_v22 = vld [vmem:[%s13422_s25 + $0x8d8] ss:$24 sps:$4 sm:$0xff]   ;;  %v11998_v27 = vld [vmem:[%s13422_s25 + $0x904] ss:$24 sps:$4 sm:$0xff]   ;;  %v11999_v32 = vld [vmem:[%s13422_s25 + $0x908] ss:$24 sps:$4 sm:$0xff]  }
 0x215   : > { %2866 = vmatprep.subr.bf16.mxu0 %v11944_v28  ;;  %3252 = vmatprep.subr.bf16.mxu1 %v11947_v31  ;;  %v12001_v28 = vld [vmem:[%s13422_s25 + $0x90c] ss:$24 sps:$4 sm:$0xff]   ;;  %v11996_v31 = vld [vmem:[%s13422_s25 + $0x900] ss:$24 sps:$4 sm:$0xff]  }
 0x216   : > { %v1051_v24 = vrot.slane %v1044_v35, %v13758_v19  ;;  %v12007_v35 = vld [vmem:[%s13422_s25 + $0x93c] ss:$24 sps:$4 sm:$0xff]  }
 0x218   : > { %2867 = vmatpush1.bf16.msra.mxu0 %v11942_v34  ;;  %3253 = vmatpush1.bf16.msra.mxu1 %v11945_v36  ;;  %v12004_v34 = vld [vmem:[%s13422_s25 + $0x934] ss:$24 sps:$4 sm:$0xff]  }
 0x219   : > { %3279 = vmatprep.subr.bf16.mxu0 %v11950_v38  ;;  %3320 = vmatprep.subr.bf16.mxu1 %v11953_v39  ;;  %v598_v36 = vld [vmem:[%s13437_s29] sm:$0xff] }
 0x21a   : > { %8098 = vadd.xlane.f32.xlu0 %v598_v36  ;;  %v12005_v38 = vld [vmem:[%s13422_s25 + $0x938] ss:$24 sps:$4 sm:$0xff]   ;;  %v12010_v39 = vld [vmem:[%s13422_s25 + $0x964] ss:$24 sps:$4 sm:$0xff]  }
 0x21b   : > { %2885 = vmatmul.mubr.bf16.vlgmr.msra.gmra.mrb[28].mxu0 %v13727_v49  ;;  %3271 = vmatmul.mubr.bf16.vlgmr.msra.gmra.mrb[28].mxu1 %v13777_v40  ;;  %v11960_v49 = vld [vmem:[%s13422_s25 + $0x7e8] ss:$24 sps:$4 sm:$0xff]  }
 0x21c   : > { %3280 = vmatpush1.bf16.msra.mxu0 %v11948_v41  ;;  %3321 = vmatpush1.bf16.msra.mxu1 %v11951_v42  ;;  %v12013_v41 = vld [vmem:[%s13422_s25 + $0x96c] ss:$24 sps:$4 sm:$0xff]   ;;  %v12011_v42 = vld [vmem:[%s13422_s25 + $0x968] ss:$24 sps:$4 sm:$0xff]  }
 0x21d   : > { %3281 = vmatprep.subr.bf16.mxu0 %v11956_v43  ;;  %3322 = vmatprep.subr.bf16.mxu1 %v11959_v44  ;;  %v12016_v43 = vld [vmem:[%s13422_s25 + $0x994] ss:$24 sps:$4 sm:$0xff]   ;;  %v12059_v36 = vld [vmem:[%s13422_s25 + $0xae0] ss:$24 sps:$4 sm:$0xff]  }
 0x21e   : > { %3311 = vmatprep.mubr.bf16.mxu0 %v13055_v3  ;;  %3352 = vmatprep.mubr.bf16.mxu1 %v13055_v3  ;;  %v12019_v44 = vld [vmem:[%s13422_s25 + $0x99c] ss:$24 sps:$4 sm:$0xff]  }
 0x220   : > { %3282 = vmatpush1.bf16.msra.mxu0 %v11954_v45  ;;  %3323 = vmatpush1.bf16.msra.mxu1 %v11957_v46  ;;  %v12014_v45 = vld [vmem:[%s13422_s25 + $0x990] ss:$24 sps:$4 sm:$0xff]  }
 0x221   : > { %3283 = vmatprep.subr.bf16.mxu0 %v11962_v47  ;;  %3324 = vmatprep.subr.bf16.mxu1 %v11965_v48  ;;  %v12017_v46 = vld [vmem:[%s13422_s25 + $0x998] ss:$24 sps:$4 sm:$0xff]   ;;  %v12022_v47 = vld [vmem:[%s13422_s25 + $0x9c4] ss:$24 sps:$4 sm:$0xff]  }
 0x222   : > { %v12025_v48 = vld [vmem:[%s13422_s25 + $0x9cc] ss:$24 sps:$4 sm:$0xff]  }
 0x224   : > { %3284 = vmatpush1.bf16.msra.mxu0 %v11960_v49  ;;  %3325 = vmatpush1.bf16.msra.mxu1 %v11963_v50  ;;  %v12020_v49 = vld [vmem:[%s13422_s25 + $0x9c0] ss:$24 sps:$4 sm:$0xff]  }
 0x225   : > { %3285 = vmatprep.subr.bf16.mxu0 %v11968_v51  ;;  %3326 = vmatprep.subr.bf16.mxu1 %v11971_v52  ;;  %v12023_v50 = vld [vmem:[%s13422_s25 + $0x9c8] ss:$24 sps:$4 sm:$0xff]   ;;  %v12028_v51 = vld [vmem:[%s13422_s25 + $0x9f4] ss:$24 sps:$4 sm:$0xff]  }
 0x226   : > { %v12031_v52 = vld [vmem:[%s13422_s25 + $0x9fc] ss:$24 sps:$4 sm:$0xff]  }
 0x228   : > { %3286 = vmatpush1.bf16.msra.mxu0 %v11966_v53  ;;  %3327 = vmatpush1.bf16.msra.mxu1 %v11969_v54  ;;  %v12026_v53 = vld [vmem:[%s13422_s25 + $0x9f0] ss:$24 sps:$4 sm:$0xff]  }
 0x229   : > { %3287 = vmatprep.subr.bf16.mxu0 %v11974_v55  ;;  %3328 = vmatprep.subr.bf16.mxu1 %v11977_v56  ;;  %v12029_v54 = vld [vmem:[%s13422_s25 + $0x9f8] ss:$24 sps:$4 sm:$0xff]   ;;  %v12034_v55 = vld [vmem:[%s13422_s25 + $0xa24] ss:$24 sps:$4 sm:$0xff]  }
 0x22a   : > { %v12037_v56 = vld [vmem:[%s13422_s25 + $0xa2c] ss:$24 sps:$4 sm:$0xff]  }
 0x22c   : > { %3288 = vmatpush1.bf16.msra.mxu0 %v11972_v57  ;;  %3329 = vmatpush1.bf16.msra.mxu1 %v11975_v58 }
 0x22d   : > { %3289 = vmatprep.subr.bf16.mxu0 %v11980_v59  ;;  %3330 = vmatprep.subr.bf16.mxu1 %v11983_v60  ;;  %v12032_v59 = vld [vmem:[%s13422_s25 + $0xa20] ss:$24 sps:$4 sm:$0xff]  }
 0x22e   : > { %v1007_v1 = vpop.f32.mrb[4].mxu0  ;;  %v13807_v2 = vpop.f32.mrb[4].mxu1  ;;  %v12035_v60 = vld [vmem:[%s13422_s25 + $0xa28] ss:$24 sps:$4 sm:$0xff]  }
 0x22f   : > { %v1009_v10 = vpop.f32.mrb[5].mxu0  ;;  %v13811_v11 = vpop.f32.mrb[5].mxu1 }
 0x230   : > { %v1022_v12 = vcombine.low %v1007_v1, %v1009_v10  ;;  %v1494_v13 = vcombine.low %v13807_v2, %v13811_v11  ;;  %v1011_v14 = vpop.f32.mrb[6].mxu0  ;;  %v1403_v15 = vpop.f32.mrb[6].mxu1  ;;  %3290 = vmatpush1.bf16.msra.mxu0 %v11978_v61  ;;  %3331 = vmatpush1.bf16.msra.mxu1 %v11981_v62  ;;  %v12049_v2 = vld [vmem:[%s13422_s25 + $0xa84] ss:$24 sps:$4 sm:$0xff]  }
 0x231   : > { %v1012_v16 = vpop.f32.mrb[7].mxu0  ;;  %v1404_v17 = vpop.f32.mrb[7].mxu1  ;;  %3291 = vmatprep.subr.bf16.mxu0 %v11986_v63  ;;  %3332 = vmatprep.subr.bf16.mxu1 %v11989_v0  ;;  %v12043_v14 = vld [vmem:[%s13422_s25 + $0xa5c] ss:$24 sps:$4 sm:$0xff]  }
 0x232   : > { %v1043_v21 = vrot.slane %v1022_v12, %v13758_v19  ;;  %v12040_v12 = vld [vmem:[%s13422_s25 + $0xa54] ss:$24 sps:$4 sm:$0xff]   ;;  %v1503_v15 = vrot.slane %v1494_v13, %v13758_v19 }
 0x234   : > { %v1058_v26 = vrot.slane %v1043_v21, %v13758_v19  ;;  %3292 = vmatpush1.bf16.msra.mxu0 %v11984_v4  ;;  %3333 = vmatpush1.bf16.msra.mxu1 %v11987_v6  ;;  %v1069_v6 = vld [vmem:[#allocation2 + $0x1] ss:$8 sm:$0xf] }
 0x235   : > { %3293 = vmatprep.subr.bf16.mxu0 %v11992_v18  ;;  %3334 = vmatprep.subr.bf16.mxu1 %v11995_v20  ;;  %v12038_v18 = vld [vmem:[%s13422_s25 + $0xa50] ss:$24 sps:$4 sm:$0xff]   ;;  %v1071_v13 = vor.u32 %v1070_v8, %v1069_v6  ;;  %v12086_v6 = vld [vmem:[%s13422_s25 + $0xa60] ss:$24 sps:$4 sm:$0xff]  }
 0x236   : > { %v1059_v29 = vcombine.low %v1051_v24, %v1058_v26  ;;  %v12041_v20 = vld [vmem:[%s13422_s25 + $0xa58] ss:$24 sps:$4 sm:$0xff]   ;;  %v13884_v26 = vrot.slane %v13499_v37, 3 }
 0x237   : > { %v12044_v24 = vld [vmem:[%s13422_s25 + $0x910] ss:$24 sps:$4 sm:$0xff]   ;;  %v12050_v37 = vld [vmem:[%s13422_s25 + $0x940] ss:$24 sps:$4 sm:$0xff]  }
 0x238   : > { %v1061_v33 = vadd.f32 %v1059_v29, %v602_v25  ;;  %3294 = vmatpush1.bf16.msra.mxu0 %v11990_v22  ;;  %3335 = vmatpush1.bf16.msra.mxu1 %v11993_v23  ;;  %v12046_v23 = vld [vmem:[%s13422_s25 + $0x914] ss:$24 sps:$4 sm:$0xff]   ;;  %v12047_v25 = vld [vmem:[%s13422_s25 + $0xa80] ss:$24 sps:$4 sm:$0xff]   ;;  %v12089_v8 = vld [vmem:[%s13422_s25 + $0xbd0] ss:$24 sps:$4 sm:$0xff]  }
 0x239   : > { %3706 = vmatprep.subr.bf16.mxu0 %v11998_v27  ;;  %3747 = vmatprep.subr.bf16.mxu1 %v12001_v28  ;;  %v12052_v28 = vld [vmem:[%s13422_s25 + $0x944] ss:$24 sps:$4 sm:$0xff]   ;;  %v12055_v29 = vld [vmem:[%s13422_s25 + $0xab4] ss:$24 sps:$4 sm:$0xff]  }
 0x23a   : > { %1066 = vst.msk [vmem:[#allocation2] ss:$8 sm:$0xf] %vm13828_vm1, %v1061_v33  ;;  %1067 = vst.msk [vmem:[#allocation2] ss:$8 sm:$0x30] %vm13828_vm1, %v1061_v33 }
 0x23b   : > { %3312 = vmatmul.mubr.bf16.vlgmr.msra.gmra.mrb[32].mxu0 %v13777_v40  ;;  %3353 = vmatmul.mubr.bf16.vlgmr.msra.gmra.mrb[32].mxu1 %v13777_v40  ;;  %v12008_v40 = vld [vmem:[%s13422_s25 + $0x960] ss:$24 sps:$4 sm:$0xff]   ;;  %v12058_v33 = vld [vmem:[%s13422_s25 + $0x974] ss:$24 sps:$4 sm:$0xff]  }
 0x23c   : > { %3707 = vmatpush1.bf16.msra.mxu0 %v11996_v31  ;;  %3748 = vmatpush1.bf16.msra.mxu1 %v11999_v32  ;;  %v12053_v32 = vld [vmem:[%s13422_s25 + $0xab0] ss:$24 sps:$4 sm:$0xff]  }
 0x23d   : > { %3708 = vmatprep.subr.bf16.mxu0 %v12004_v34  ;;  %3749 = vmatprep.subr.bf16.mxu1 %v12007_v35  ;;  %v12061_v34 = vld [vmem:[%s13422_s25 + $0xae4] ss:$24 sps:$4 sm:$0xff]   ;;  %v12056_v35 = vld [vmem:[%s13422_s25 + $0x970] ss:$24 sps:$4 sm:$0xff]  }
 0x23e   : > { %3738 = vmatprep.mubr.bf16.mxu0 %v13055_v3  ;;  %3779 = vmatprep.mubr.bf16.mxu1 %v13055_v3 }
 0x240   : > { %3709 = vmatpush1.bf16.msra.mxu0 %v12002_v5  ;;  %3750 = vmatpush1.bf16.msra.mxu1 %v12005_v38  ;;  %v12064_v5 = vld [vmem:[%s13422_s25 + $0x9a4] ss:$24 sps:$4 sm:$0xff]   ;;  %v12067_v38 = vld [vmem:[%s13422_s25 + $0xb14] ss:$24 sps:$4 sm:$0xff]  }
 0x241   : > { %3710 = vmatprep.subr.bf16.mxu0 %v12010_v39  ;;  %3751 = vmatprep.subr.bf16.mxu1 %v12013_v41  ;;  %v12062_v39 = vld [vmem:[%s13422_s25 + $0x9a0] ss:$24 sps:$4 sm:$0xff]   ;;  %v12065_v41 = vld [vmem:[%s13422_s25 + $0xb10] ss:$24 sps:$4 sm:$0xff]  }
 0x244   : > { %3711 = vmatpush1.bf16.msra.mxu0 %v12008_v40  ;;  %3752 = vmatpush1.bf16.msra.mxu1 %v12011_v42  ;;  %v12070_v40 = vld [vmem:[%s13422_s25 + $0x9d4] ss:$24 sps:$4 sm:$0xff]   ;;  %v12073_v42 = vld [vmem:[%s13422_s25 + $0xb44] ss:$24 sps:$4 sm:$0xff]  }
 0x245   : > { %3712 = vmatprep.subr.bf16.mxu0 %v12016_v43  ;;  %3753 = vmatprep.subr.bf16.mxu1 %v12019_v44  ;;  %v12068_v43 = vld [vmem:[%s13422_s25 + $0x9d0] ss:$24 sps:$4 sm:$0xff]   ;;  %v12071_v44 = vld [vmem:[%s13422_s25 + $0xb40] ss:$24 sps:$4 sm:$0xff]  }
 0x248   : > { %3713 = vmatpush1.bf16.msra.mxu0 %v12014_v45  ;;  %3754 = vmatpush1.bf16.msra.mxu1 %v12017_v46  ;;  %v12076_v45 = vld [vmem:[%s13422_s25 + $0xa04] ss:$24 sps:$4 sm:$0xff]   ;;  %v12079_v46 = vld [vmem:[%s13422_s25 + $0xb74] ss:$24 sps:$4 sm:$0xff]  }
 0x249   : > { %3714 = vmatprep.subr.bf16.mxu0 %v12022_v47  ;;  %3755 = vmatprep.subr.bf16.mxu1 %v12025_v48  ;;  %v12074_v47 = vld [vmem:[%s13422_s25 + $0xa00] ss:$24 sps:$4 sm:$0xff]   ;;  %v12077_v48 = vld [vmem:[%s13422_s25 + $0xb70] ss:$24 sps:$4 sm:$0xff]  }
 0x24c   : > { %3715 = vmatpush1.bf16.msra.mxu0 %v12020_v49  ;;  %3756 = vmatpush1.bf16.msra.mxu1 %v12023_v50  ;;  %v12082_v49 = vld [vmem:[%s13422_s25 + $0xa34] ss:$24 sps:$4 sm:$0xff]   ;;  %v12085_v50 = vld [vmem:[%s13422_s25 + $0xba4] ss:$24 sps:$4 sm:$0xff]  }
 0x24d   : > { %3716 = vmatprep.subr.bf16.mxu0 %v12028_v51  ;;  %3757 = vmatprep.subr.bf16.mxu1 %v12031_v52 }
 0x24e   : > { %v1440_v57 = vpop.f32.mrb[8].mxu0  ;;  %v1481_v58 = vpop.f32.mrb[8].mxu1 }
 0x24f   : > { %v1442_v61 = vpop.f32.mrb[9].mxu0  ;;  %v1483_v62 = vpop.f32.mrb[9].mxu1 }
 0x250   : > { %v1495_v63 = vcombine.low %v1440_v57, %v1442_v61  ;;  %v1496_v0 = vcombine.low %v1481_v58, %v1483_v62  ;;  %v1444_v1 = vpop.f32.mrb[10].mxu0  ;;  %v1485_v4 = vpop.f32.mrb[10].mxu1  ;;  %3717 = vmatpush1.bf16.msra.mxu0 %v12026_v53  ;;  %3758 = vmatpush1.bf16.msra.mxu1 %v12029_v54 }
 0x251   : > { %v1445_v9 = vpop.f32.mrb[11].mxu0  ;;  %v1486_v10 = vpop.f32.mrb[11].mxu1  ;;  %3718 = vmatprep.subr.bf16.mxu0 %v12034_v55  ;;  %3759 = vmatprep.subr.bf16.mxu1 %v12037_v56 }
 0x252   : > { %v1510_v16 = vrot.slane %v1495_v63, %v13758_v19  ;;  %v1517_v17 = vrot.slane %v1496_v0, %v13758_v19  ;;  %v12088_v63 = vld [vmem:[%s13422_s25 + $0xa64] ss:$24 sps:$4 sm:$0xff]   ;;  %v12091_v0 = vld [vmem:[%s13422_s25 + $0xbd4] ss:$24 sps:$4 sm:$0xff]  }
 0x253   : > { %v12094_v10 = vld [vmem:[%s13422_s25 + $0xa8c] ss:$24 sps:$4 sm:$0xff]  }
 0x254   : > { %v1518_v21 = vcombine.low %v1503_v15, %v1510_v16  ;;  %v1532_v22 = vrot.slane %v1517_v17, %v13758_v19  ;;  %3719 = vmatpush1.bf16.msra.mxu0 %v12032_v59  ;;  %3760 = vmatpush1.bf16.msra.mxu1 %v12035_v60  ;;  %v12080_v59 = vld [vmem:[%s13422_s25 + $0xa30] ss:$24 sps:$4 sm:$0xff]   ;;  %v12083_v60 = vld [vmem:[%s13422_s25 + $0xba0] ss:$24 sps:$4 sm:$0xff]   ;;  %v13935_v16 = vrot.slane %v13538_v7, 3 }
 0x255   : > { %3720 = vmatprep.subr.bf16.mxu0 %v12040_v12  ;;  %3761 = vmatprep.subr.bf16.mxu1 %v12043_v14  ;;  %v12097_v12 = vld [vmem:[%s13422_s25 + $0xa94] ss:$24 sps:$4 sm:$0xff]   ;;  %v12092_v14 = vld [vmem:[%s13422_s25 + $0xa88] ss:$24 sps:$4 sm:$0xff]  }
 0x256   : > { %v1525_v11 = vrot.slane %v1518_v21, %v13758_v19  ;;  %v12095_v15 = vld [vmem:[%s13422_s25 + $0xa90] ss:$24 sps:$4 sm:$0xff]   ;;  %v12100_v17 = vld [vmem:[%s13422_s25 + $0xabc] ss:$24 sps:$4 sm:$0xff]   ;;  %v12101_v7 = vld [vmem:[%s13422_s25 + $0xac0] ss:$24 sps:$4 sm:$0xff]  }
 0x257   : > { %v12106_v21 = vld [vmem:[%s13422_s25 + $0xaec] ss:$24 sps:$4 sm:$0xff]  }
 0x258   : > { %v1533_v27 = vcombine.low %v1525_v11, %v1532_v22  ;;  %3721 = vmatpush1.bf16.msra.mxu0 %v12038_v18  ;;  %3762 = vmatpush1.bf16.msra.mxu1 %v12041_v20  ;;  %v12103_v18 = vld [vmem:[%s13422_s25 + $0xac4] ss:$24 sps:$4 sm:$0xff]   ;;  %v12098_v20 = vld [vmem:[%s13422_s25 + $0xab8] ss:$24 sps:$4 sm:$0xff]   ;;  %v12109_v22 = vld [vmem:[%s13422_s25 + $0xaf4] ss:$24 sps:$4 sm:$0xff]  }
 0x259   : > { %3788 = vmatprep.subr.bf16.mxu0 %v12046_v23  ;;  %4174 = vmatprep.subr.bf16.mxu1 %v12049_v2  ;;  %v12104_v23 = vld [vmem:[%s13422_s25 + $0xae8] ss:$24 sps:$4 sm:$0xff]   ;;  %v12112_v11 = vld [vmem:[%s13422_s25 + $0xb1c] ss:$24 sps:$4 sm:$0xff]  }
 0x25a   : > { %v1535_v31 = vadd.f32 %v1533_v27, %v1071_v13  ;;  %v12107_v2 = vld [vmem:[%s13422_s25 + $0xaf0] ss:$24 sps:$4 sm:$0xff]   ;;  %v12115_v13 = vld [vmem:[%s13422_s25 + $0xb24] ss:$24 sps:$4 sm:$0xff]   ;;  %v12121_v27 = vld [vmem:[%s13422_s25 + $0xb54] ss:$24 sps:$4 sm:$0xff]  }
 0x25b   : > { %3739 = vmatmul.mubr.bf16.vlgmr.msra.gmra.mrb[36].mxu0 %v13884_v26  ;;  %3780 = vmatmul.mubr.bf16.vlgmr.msra.gmra.mrb[36].mxu1 %v13884_v26 }
 0x25c   : > { %1536 = vst.msk [vmem:[#allocation2 + $0x1] ss:$8 sm:$0xf] %vm13828_vm1, %v1535_v31  ;;  %1537 = vst.msk [vmem:[#allocation2 + $0x1] ss:$8 sm:$0x30] %vm13828_vm1, %v1535_v31  ;;  %3789 = vmatpush1.bf16.msra.mxu0 %v12044_v24  ;;  %4175 = vmatpush1.bf16.msra.mxu1 %v12047_v25 }
 0x25d   : > { %3790 = vmatprep.subr.bf16.mxu0 %v12052_v28  ;;  %4176 = vmatprep.subr.bf16.mxu1 %v12055_v29  ;;  %v12110_v24 = vld [vmem:[%s13422_s25 + $0xb18] ss:$24 sps:$4 sm:$0xff]   ;;  %v12116_v28 = vld [vmem:[%s13422_s25 + $0xb48] ss:$24 sps:$4 sm:$0xff]   ;;  %v12124_v31 = vld [vmem:[%s13422_s25 + $0xb7c] ss:$24 sps:$4 sm:$0xff]  }
 0x25e   : > { %3820 = vmatprep.mubr.bf16.mxu0 %v13055_v3  ;;  %4206 = vmatprep.mubr.bf16.mxu1 %v13055_v3  ;;  %v12113_v25 = vld [vmem:[%s13422_s25 + $0xb20] ss:$24 sps:$4 sm:$0xff]   ;;  %v12119_v29 = vld [vmem:[%s13422_s25 + $0xb50] ss:$24 sps:$4 sm:$0xff]  }
 0x260   : > { %3791 = vmatpush1.bf16.msra.mxu0 %v12050_v37  ;;  %4177 = vmatpush1.bf16.msra.mxu1 %v12053_v32  ;;  %v12127_v37 = vld [vmem:[%s13422_s25 + $0xb84] ss:$24 sps:$4 sm:$0xff]   ;;  %v12122_v32 = vld [vmem:[%s13422_s25 + $0xb78] ss:$24 sps:$4 sm:$0xff]  }
 0x261   : > { %3792 = vmatprep.subr.bf16.mxu0 %v12058_v33  ;;  %4178 = vmatprep.subr.bf16.mxu1 %v12061_v34  ;;  %v12125_v33 = vld [vmem:[%s13422_s25 + $0xb80] ss:$24 sps:$4 sm:$0xff]   ;;  %v12130_v34 = vld [vmem:[%s13422_s25 + $0xbac] ss:$24 sps:$4 sm:$0xff]  }
 0x264   : > { %3793 = vmatpush1.bf16.msra.mxu0 %v12056_v35  ;;  %4179 = vmatpush1.bf16.msra.mxu1 %v12059_v36  ;;  %v12133_v35 = vld [vmem:[%s13422_s25 + $0xbb4] ss:$24 sps:$4 sm:$0xff]  }
 0x265   : > { %3794 = vmatprep.subr.bf16.mxu0 %v12064_v5  ;;  %4180 = vmatprep.subr.bf16.mxu1 %v12067_v38  ;;  %v12128_v38 = vld [vmem:[%s13422_s25 + $0xba8] ss:$24 sps:$4 sm:$0xff]  }
 0x268   : > { %3795 = vmatpush1.bf16.msra.mxu0 %v12062_v39  ;;  %4181 = vmatpush1.bf16.msra.mxu1 %v12065_v41  ;;  %v12131_v39 = vld [vmem:[%s13422_s25 + $0xbb0] ss:$24 sps:$4 sm:$0xff]  }
 0x269   : > { %3796 = vmatprep.subr.bf16.mxu0 %v12070_v40  ;;  %4182 = vmatprep.subr.bf16.mxu1 %v12073_v42  ;;  %v1539_v41 = vld [vmem:[#allocation2 + $0x2] ss:$8 sm:$0xf] }
 0x26a   : > { %v1540_v40 = vld [vmem:[#allocation2 + $0x2] ss:$8 sm:$0x30] }
 0x26c   : > { %3797 = vmatpush1.bf16.msra.mxu0 %v12068_v43  ;;  %4183 = vmatpush1.bf16.msra.mxu1 %v12071_v44 }
 0x26d   : > { %3798 = vmatprep.subr.bf16.mxu0 %v12076_v45  ;;  %4184 = vmatprep.subr.bf16.mxu1 %v12079_v46 }
 0x26e   : > { %v1868_v51 = vpop.f32.mrb[12].mxu0  ;;  %v1909_v52 = vpop.f32.mrb[12].mxu1 }
 0x26f   : > { %v1870_v53 = vpop.f32.mrb[13].mxu0  ;;  %v1911_v54 = vpop.f32.mrb[13].mxu1 }
 0x270   : > { %v1963_v55 = vcombine.low %v1868_v51, %v1870_v53  ;;  %v1964_v56 = vcombine.low %v1909_v52, %v1911_v54  ;;  %v1872_v57 = vpop.f32.mrb[14].mxu0  ;;  %v1913_v58 = vpop.f32.mrb[14].mxu1  ;;  %3799 = vmatpush1.bf16.msra.mxu0 %v12074_v47  ;;  %4185 = vmatpush1.bf16.msra.mxu1 %v12077_v48  ;;  %v12139_v51 = vld [vmem:[%s13422_s25 + $0xbe4] ss:$24 sps:$4 sm:$0xff]   ;;  %v12134_v53 = vld [vmem:[%s13422_s25 + $0xbd8] ss:$24 sps:$4 sm:$0xff]  }
 0x271   : > { %v1873_v61 = vpop.f32.mrb[15].mxu0  ;;  %v1914_v62 = vpop.f32.mrb[15].mxu1  ;;  %3800 = vmatprep.subr.bf16.mxu0 %v12082_v49  ;;  %4186 = vmatprep.subr.bf16.mxu1 %v12085_v50  ;;  %v12136_v50 = vld [vmem:[%s13422_s25 + $0xbdc] ss:$24 sps:$4 sm:$0xff]   ;;  %v12137_v54 = vld [vmem:[%s13422_s25 + $0xbe0] ss:$24 sps:$4 sm:$0xff]  }
 0x272   : > { %v13921_v1 = vrot.slane %v1963_v55, %v13758_v19  ;;  %v13924_v4 = vrot.slane %v1964_v56, %v13758_v19  ;;  %v1541_v56 = vor.u32 %v1540_v40, %v1539_v41  ;;  %v12142_v58 = vld [vmem:[%s13429_s26 + $0x4] ss:$24 sps:$4 sm:$0xff]   ;;  %v12140_v61 = vld [vmem:[%s13429_s26] ss:$24 sps:$4 sm:$0xff]  }
 0x273   : > { %v12143_v62 = vld [vmem:[%s13429_s26 + $0x8] ss:$24 sps:$4 sm:$0xff]  }
 0x274   : > { %v1987_v9 = vcombine.low %v13921_v1, %v13924_v4  ;;  %3801 = vmatpush1.bf16.msra.mxu0 %v12080_v59  ;;  %4187 = vmatpush1.bf16.msra.mxu1 %v12083_v60  ;;  %v12145_v59 = vld [vmem:[%s13429_s26 + $0xc] ss:$24 sps:$4 sm:$0xff]   ;;  %v12151_v1 = vld [vmem:[%s13429_s26 + $0x3c] ss:$24 sps:$4 sm:$0xff]   ;;  %v12146_v4 = vld [vmem:[%s13429_s26 + $0x30] ss:$24 sps:$4 sm:$0xff]  }
 0x275   : > { %3802 = vmatprep.subr.bf16.mxu0 %v12088_v63  ;;  %4188 = vmatprep.subr.bf16.mxu1 %v12091_v0  ;;  %v12148_v0 = vld [vmem:[%s13429_s26 + $0x34] ss:$24 sps:$4 sm:$0xff]  }
 0x276   : > { %v1994_v55 = vrot.slane %v1987_v9, %v13758_v19  ;;  %v12157_v9 = vld [vmem:[%s13429_s26 + $0x6c] ss:$24 sps:$4 sm:$0xff]  }
 0x278   : > { %3803 = vmatpush1.bf16.msra.mxu0 %v12086_v6  ;;  %4189 = vmatpush1.bf16.msra.mxu1 %v12089_v8  ;;  %v12149_v6 = vld [vmem:[%s13429_s26 + $0x38] ss:$24 sps:$4 sm:$0xff]   ;;  %v12154_v8 = vld [vmem:[%s13429_s26 + $0x64] ss:$24 sps:$4 sm:$0xff]  }
 0x279   : > { %4215 = vmatprep.subr.bf16.mxu0 %v12094_v10  ;;  %4256 = vmatprep.subr.bf16.mxu1 %v12097_v12  ;;  %v12152_v10 = vld [vmem:[%s13429_s26 + $0x60] ss:$24 sps:$4 sm:$0xff]  }
 0x27a   : > { %v12155_v12 = vld [vmem:[%s13429_s26 + $0x68] ss:$24 sps:$4 sm:$0xff]  }
 0x27b   : > { %3821 = vmatmul.mubr.bf16.vlgmr.msra.gmra.mrb[40].mxu0 %v13884_v26  ;;  %4207 = vmatmul.mubr.bf16.vlgmr.msra.gmra.mrb[40].mxu1 %v13935_v16  ;;  %v12118_v26 = vld [vmem:[%s13422_s25 + $0xb4c] ss:$24 sps:$4 sm:$0xff]  }
 0x27c   : > { %4216 = vmatpush1.bf16.msra.mxu0 %v12092_v14  ;;  %4257 = vmatpush1.bf16.msra.mxu1 %v12095_v15  ;;  %v12160_v14 = vld [vmem:[%s13429_s26 + $0x94] ss:$24 sps:$4 sm:$0xff]  }
 0x27d   : > { %4217 = vmatprep.subr.bf16.mxu0 %v12100_v17  ;;  %4258 = vmatprep.subr.bf16.mxu1 %v12103_v18  ;;  %v12163_v15 = vld [vmem:[%s13429_s26 + $0x9c] ss:$24 sps:$4 sm:$0xff]   ;;  %v12161_v17 = vld [vmem:[%s13429_s26 + $0x98] ss:$24 sps:$4 sm:$0xff]  }
 0x27e   : > { %4247 = vmatprep.mubr.bf16.mxu0 %v13055_v3  ;;  %4288 = vmatprep.mubr.bf16.mxu1 %v13055_v3  ;;  %v12166_v18 = vld [vmem:[%s13429_s26 + $0xc4] ss:$24 sps:$4 sm:$0xff]  }
 0x280   : > { %4218 = vmatpush1.bf16.msra.mxu0 %v12098_v20  ;;  %4259 = vmatpush1.bf16.msra.mxu1 %v12101_v7  ;;  %v12169_v20 = vld [vmem:[%s13429_s26 + $0xcc] ss:$24 sps:$4 sm:$0xff]   ;;  %v12164_v7 = vld [vmem:[%s13429_s26 + $0xc0] ss:$24 sps:$4 sm:$0xff]  }
 0x281   : > { %4219 = vmatprep.subr.bf16.mxu0 %v12106_v21  ;;  %4260 = vmatprep.subr.bf16.mxu1 %v12109_v22  ;;  %v12167_v21 = vld [vmem:[%s13429_s26 + $0xc8] ss:$24 sps:$4 sm:$0xff]   ;;  %v12172_v22 = vld [vmem:[%s13429_s26 + $0xf4] ss:$24 sps:$4 sm:$0xff]  }
 0x284   : > { %4220 = vmatpush1.bf16.msra.mxu0 %v12104_v23  ;;  %4261 = vmatpush1.bf16.msra.mxu1 %v12107_v2  ;;  %v12175_v23 = vld [vmem:[%s13429_s26 + $0xfc] ss:$24 sps:$4 sm:$0xff]   ;;  %v12170_v2 = vld [vmem:[%s13429_s26 + $0xf0] ss:$24 sps:$4 sm:$0xff]  }
 0x285   : > { %4221 = vmatprep.subr.bf16.mxu0 %v12112_v11  ;;  %4262 = vmatprep.subr.bf16.mxu1 %v12115_v13  ;;  %v12173_v11 = vld [vmem:[%s13429_s26 + $0xf8] ss:$24 sps:$4 sm:$0xff]   ;;  %v12178_v13 = vld [vmem:[%s13429_s26 + $0x124] ss:$24 sps:$4 sm:$0xff]  }
 0x288   : > { %4222 = vmatpush1.bf16.msra.mxu0 %v12110_v24  ;;  %4263 = vmatpush1.bf16.msra.mxu1 %v12113_v25  ;;  %v12181_v24 = vld [vmem:[%s13429_s26 + $0x12c] ss:$24 sps:$4 sm:$0xff]  }
 0x289   : > { %4223 = vmatprep.subr.bf16.mxu0 %v12118_v26  ;;  %4264 = vmatprep.subr.bf16.mxu1 %v12121_v27  ;;  %v12176_v27 = vld [vmem:[%s13429_s26 + $0x120] ss:$24 sps:$4 sm:$0xff]  }
 0x28c   : > { %4224 = vmatpush1.bf16.msra.mxu0 %v12116_v28  ;;  %4265 = vmatpush1.bf16.msra.mxu1 %v12119_v29  ;;  %v12179_v28 = vld [vmem:[%s13429_s26 + $0x128] ss:$24 sps:$4 sm:$0xff]  }
 0x28d   : > { %4225 = vmatprep.subr.bf16.mxu0 %v12124_v31  ;;  %4266 = vmatprep.subr.bf16.mxu1 %v12127_v37  ;;  %v12184_v37 = vld [vmem:[%s13429_s26 + $0x154] ss:$24 sps:$4 sm:$0xff]  }
 0x28e   : > { %v1950_v36 = vpop.f32.mrb[16].mxu0  ;;  %v13963_v5 = vpop.f32.mrb[16].mxu1 }
 0x28f   : > { %v1952_v42 = vpop.f32.mrb[17].mxu0  ;;  %v13967_v43 = vpop.f32.mrb[17].mxu1 }
 0x290   : > { %v1965_v44 = vcombine.low %v1950_v36, %v1952_v42  ;;  %v2431_v45 = vcombine.low %v13963_v5, %v13967_v43  ;;  %v1954_v46 = vpop.f32.mrb[18].mxu0  ;;  %v2340_v47 = vpop.f32.mrb[18].mxu1  ;;  %4226 = vmatpush1.bf16.msra.mxu0 %v12122_v32  ;;  %4267 = vmatpush1.bf16.msra.mxu1 %v12125_v33  ;;  %v12187_v32 = vld [vmem:[%s13429_s26 + $0x15c] ss:$24 sps:$4 sm:$0xff]  }
 0x291   : > { %v1955_v48 = vpop.f32.mrb[19].mxu0  ;;  %v2341_v49 = vpop.f32.mrb[19].mxu1  ;;  %4227 = vmatprep.subr.bf16.mxu0 %v12130_v34  ;;  %4268 = vmatprep.subr.bf16.mxu1 %v12133_v35  ;;  %v12182_v47 = vld [vmem:[%s13429_s26 + $0x150] ss:$24 sps:$4 sm:$0xff]   ;;  %v12190_v5 = vld [vmem:[%s13429_s26 + $0x14] ss:$24 sps:$4 sm:$0xff]  }
 0x292   : > { %v1986_v52 = vrot.slane %v1965_v44, %v13758_v19  ;;  %v2440_v42 = vrot.slane %v2431_v45, %v13758_v19  ;;  %v12185_v48 = vld [vmem:[%s13429_s26 + $0x158] ss:$24 sps:$4 sm:$0xff]   ;;  %v12193_v43 = vld [vmem:[%s13429_s26 + $0x184] ss:$24 sps:$4 sm:$0xff]  }
 0x294   : > { %v2001_v57 = vrot.slane %v1986_v52, %v13758_v19  ;;  %4228 = vmatpush1.bf16.msra.mxu0 %v12128_v38  ;;  %4269 = vmatpush1.bf16.msra.mxu1 %v12131_v39  ;;  %v2008_v38 = vld [vmem:[#allocation2 + $0x3] ss:$8 sm:$0xf] }
 0x295   : > { %4229 = vmatprep.subr.bf16.mxu0 %v12136_v50  ;;  %4270 = vmatprep.subr.bf16.mxu1 %v12139_v51  ;;  %v2009_v39 = vld [vmem:[#allocation2 + $0x3] ss:$8 sm:$0x30] }
 0x296   : > { %v2002_v60 = vcombine.low %v1994_v55, %v2001_v57  ;;  %v2010_v51 = vor.u32 %v2009_v39, %v2008_v38  ;;  %v12188_v52 = vld [vmem:[%s13429_s26 + $0x10] ss:$24 sps:$4 sm:$0xff]   ;;  %v12196_v57 = vld [vmem:[%s13429_s26 + $0x44] ss:$24 sps:$4 sm:$0xff]  }
 0x297   : > { %v12238_v39 = vld [vmem:[%s13429_s26 + $0x18c] ss:$24 sps:$4 sm:$0xff]  }
 0x298   : > { %v2004_v63 = vadd.f32 %v2002_v60, %v1541_v56  ;;  %4230 = vmatpush1.bf16.msra.mxu0 %v12134_v53  ;;  %4271 = vmatpush1.bf16.msra.mxu1 %v12137_v54  ;;  %v12191_v53 = vld [vmem:[%s13429_s26 + $0x180] ss:$24 sps:$4 sm:$0xff]  }
 0x299   : > { %4639 = vmatprep.subr.bf16.mxu0 %v12142_v58  ;;  %4680 = vmatprep.subr.bf16.mxu1 %v12145_v59  ;;  %v12716_v54 = vld [vmem:[%s13437_s29] sm:$0xff] }
 0x29a   : > { %2005 = vst.msk [vmem:[#allocation2 + $0x2] ss:$8 sm:$0xf] %vm13828_vm1, %v2004_v63  ;;  %2006 = vst.msk [vmem:[#allocation2 + $0x2] ss:$8 sm:$0x30] %vm13828_vm1, %v2004_v63  ;;  %v14034_v55 = vpack.c.bf16 %v12716_v54, %v12716_v54 }
 0x29b   : > { %4248 = vmatmul.mubr.bf16.vlgmr.msra.gmra.mrb[44].mxu0 %v13935_v16  ;;  %4289 = vmatmul.mubr.bf16.vlgmr.msra.gmra.mrb[44].mxu1 %v13935_v16  ;;  %v12158_v16 = vld [vmem:[%s13429_s26 + $0x90] ss:$24 sps:$4 sm:$0xff]   ;;  %v12199_v58 = vld [vmem:[%s13429_s26 + $0x1b4] ss:$24 sps:$4 sm:$0xff]   ;;  %v12194_v60 = vld [vmem:[%s13429_s26 + $0x40] ss:$24 sps:$4 sm:$0xff]  }
 0x29c   : > { %4640 = vmatpush1.bf16.msra.mxu0 %v12140_v61  ;;  %4681 = vmatpush1.bf16.msra.mxu1 %v12143_v62  ;;  %v12197_v61 = vld [vmem:[%s13429_s26 + $0x1b0] ss:$24 sps:$4 sm:$0xff]   ;;  %v12202_v62 = vld [vmem:[%s13429_s26 + $0x74] ss:$24 sps:$4 sm:$0xff]   ;;  %v12205_v63 = vld [vmem:[%s13429_s26 + $0x1e4] ss:$24 sps:$4 sm:$0xff]  }
 0x29d   : > { %4641 = vmatprep.subr.bf16.mxu0 %v12148_v0  ;;  %4682 = vmatprep.subr.bf16.mxu1 %v12151_v1  ;;  %v12200_v0 = vld [vmem:[%s13429_s26 + $0x70] ss:$24 sps:$4 sm:$0xff]   ;;  %v12203_v1 = vld [vmem:[%s13429_s26 + $0x1e0] ss:$24 sps:$4 sm:$0xff]  }
 0x29e   : > { %4671 = vmatprep.mubr.bf16.mxu0 %v13055_v3  ;;  %4712 = vmatprep.mubr.bf16.mxu1 %v13055_v3  ;;  %v12257_v54 = vld [vmem:[%s13429_s26 + $0x220] ss:$24 sps:$4 sm:$0xff]  }
 0x2a0   : > { %4642 = vmatpush1.bf16.msra.mxu0 %v12146_v4  ;;  %4683 = vmatpush1.bf16.msra.mxu1 %v12149_v6  ;;  %v12208_v4 = vld [vmem:[%s13429_s26 + $0xa4] ss:$24 sps:$4 sm:$0xff]   ;;  %v12211_v6 = vld [vmem:[%s13429_s26 + $0x214] ss:$24 sps:$4 sm:$0xff]  }
 0x2a1   : > { %4643 = vmatprep.subr.bf16.mxu0 %v12154_v8  ;;  %4684 = vmatprep.subr.bf16.mxu1 %v12157_v9  ;;  %v12206_v8 = vld [vmem:[%s13429_s26 + $0xa0] ss:$24 sps:$4 sm:$0xff]   ;;  %v12209_v9 = vld [vmem:[%s13429_s26 + $0x210] ss:$24 sps:$4 sm:$0xff]  }
 0x2a4   : > { %4644 = vmatpush1.bf16.msra.mxu0 %v12152_v10  ;;  %4685 = vmatpush1.bf16.msra.mxu1 %v12155_v12  ;;  %v12214_v10 = vld [vmem:[%s13429_s26 + $0xd4] ss:$24 sps:$4 sm:$0xff]   ;;  %v12217_v12 = vld [vmem:[%s13429_s26 + $0x244] ss:$24 sps:$4 sm:$0xff]  }
 0x2a5   : > { %4645 = vmatprep.subr.bf16.mxu0 %v12160_v14  ;;  %4686 = vmatprep.subr.bf16.mxu1 %v12163_v15  ;;  %v12212_v14 = vld [vmem:[%s13429_s26 + $0xd0] ss:$24 sps:$4 sm:$0xff]   ;;  %v12215_v15 = vld [vmem:[%s13429_s26 + $0x240] ss:$24 sps:$4 sm:$0xff]  }
 0x2a8   : > { %4646 = vmatpush1.bf16.msra.mxu0 %v12158_v16  ;;  %4687 = vmatpush1.bf16.msra.mxu1 %v12161_v17  ;;  %v12220_v16 = vld [vmem:[%s13429_s26 + $0x104] ss:$24 sps:$4 sm:$0xff]   ;;  %v12223_v17 = vld [vmem:[%s13429_s26 + $0x274] ss:$24 sps:$4 sm:$0xff]  }
 0x2a9   : > { %4647 = vmatprep.subr.bf16.mxu0 %v12166_v18  ;;  %4688 = vmatprep.subr.bf16.mxu1 %v12169_v20  ;;  %v12218_v18 = vld [vmem:[%s13429_s26 + $0x100] ss:$24 sps:$4 sm:$0xff]   ;;  %v12221_v20 = vld [vmem:[%s13429_s26 + $0x270] ss:$24 sps:$4 sm:$0xff]  }
 0x2ac   : > { %4648 = vmatpush1.bf16.msra.mxu0 %v12164_v7  ;;  %4689 = vmatpush1.bf16.msra.mxu1 %v12167_v21  ;;  %v12226_v7 = vld [vmem:[%s13429_s26 + $0x134] ss:$24 sps:$4 sm:$0xff]   ;;  %v12229_v21 = vld [vmem:[%s13429_s26 + $0x2a4] ss:$24 sps:$4 sm:$0xff]  }
 0x2ad   : > { %4649 = vmatprep.subr.bf16.mxu0 %v12172_v22  ;;  %4690 = vmatprep.subr.bf16.mxu1 %v12175_v23 }
 0x2ae   : > { %v2377_v25 = vpop.f32.mrb[20].mxu0  ;;  %v2418_v26 = vpop.f32.mrb[20].mxu1 }
 0x2af   : > { %v2379_v29 = vpop.f32.mrb[21].mxu0  ;;  %v2420_v31 = vpop.f32.mrb[21].mxu1 }
 0x2b0   : > { %v2432_v33 = vcombine.low %v2377_v25, %v2379_v29  ;;  %v2433_v34 = vcombine.low %v2418_v26, %v2420_v31  ;;  %v2381_v35 = vpop.f32.mrb[22].mxu0  ;;  %v2422_v36 = vpop.f32.mrb[22].mxu1  ;;  %4650 = vmatpush1.bf16.msra.mxu0 %v12170_v2  ;;  %4691 = vmatpush1.bf16.msra.mxu1 %v12173_v11 }
 0x2b1   : > { %v2382_v41 = vpop.f32.mrb[23].mxu0  ;;  %v2423_v40 = vpop.f32.mrb[23].mxu1  ;;  %4651 = vmatprep.subr.bf16.mxu0 %v12178_v13  ;;  %4692 = vmatprep.subr.bf16.mxu1 %v12181_v24  ;;  %v12230_v35 = vld [vmem:[%s13429_s26 + $0x160] ss:$24 sps:$4 sm:$0xff]   ;;  %v12233_v36 = vld [vmem:[%s13429_s26 + $0x2d0] ss:$24 sps:$4 sm:$0xff]  }
 0x2b2   : > { %v2447_v44 = vrot.slane %v2432_v33, %v13758_v19  ;;  %v2454_v46 = vrot.slane %v2433_v34, %v13758_v19  ;;  %v12241_v41 = vld [vmem:[%s13429_s26 + $0x194] ss:$24 sps:$4 sm:$0xff]   ;;  %v12236_v40 = vld [vmem:[%s13429_s26 + $0x188] ss:$24 sps:$4 sm:$0xff]  }
 0x2b4   : > { %v2455_v49 = vcombine.low %v2440_v42, %v2447_v44  ;;  %v2469_v50 = vrot.slane %v2454_v46, %v13758_v19  ;;  %4652 = vmatpush1.bf16.msra.mxu0 %v12176_v27  ;;  %4693 = vmatpush1.bf16.msra.mxu1 %v12179_v28  ;;  %v12224_v27 = vld [vmem:[%s13429_s26 + $0x130] ss:$24 sps:$4 sm:$0xff]   ;;  %v12227_v28 = vld [vmem:[%s13429_s26 + $0x2a0] ss:$24 sps:$4 sm:$0xff]   ;;  %v14085_v44 = vshrl.u32 %v14034_v55, 16 }
 0x2b5   : > { %4653 = vmatprep.subr.bf16.mxu0 %v12184_v37  ;;  %4694 = vmatprep.subr.bf16.mxu1 %v12187_v32  ;;  %v12232_v37 = vld [vmem:[%s13429_s26 + $0x164] ss:$24 sps:$4 sm:$0xff]   ;;  %v12235_v32 = vld [vmem:[%s13429_s26 + $0x2d4] ss:$24 sps:$4 sm:$0xff]   ;;  %v12239_v42 = vld [vmem:[%s13429_s26 + $0x190] ss:$24 sps:$4 sm:$0xff]  }
 0x2b6   : > { %v2462_v45 = vrot.slane %v2455_v49, %v13758_v19  ;;  %v12244_v46 = vld [vmem:[%s13429_s26 + $0x1bc] ss:$24 sps:$4 sm:$0xff]   ;;  %v12245_v49 = vld [vmem:[%s13429_s26 + $0x1c0] ss:$24 sps:$4 sm:$0xff]  }
 0x2b8   : > { %v2470_v56 = vcombine.low %v2462_v45, %v2469_v50  ;;  %4654 = vmatpush1.bf16.msra.mxu0 %v12182_v47  ;;  %4695 = vmatpush1.bf16.msra.mxu1 %v12185_v48  ;;  %v12247_v47 = vld [vmem:[%s13429_s26 + $0x1c4] ss:$24 sps:$4 sm:$0xff]   ;;  %v12242_v48 = vld [vmem:[%s13429_s26 + $0x1b8] ss:$24 sps:$4 sm:$0xff]  }
 0x2b9   : > { %4721 = vmatprep.subr.bf16.mxu0 %v12190_v5  ;;  %5109 = vmatprep.subr.bf16.mxu1 %v12193_v43  ;;  %v12250_v50 = vld [vmem:[%s13429_s26 + $0x1ec] ss:$24 sps:$4 sm:$0xff]   ;;  %v12248_v43 = vld [vmem:[%s13429_s26 + $0x1e8] ss:$24 sps:$4 sm:$0xff]  }
 0x2ba   : > { %v2472_v59 = vadd.f32 %v2470_v56, %v2010_v51  ;;  %v12253_v5 = vld [vmem:[%s13429_s26 + $0x1f4] ss:$24 sps:$4 sm:$0xff]   ;;  %v12251_v45 = vld [vmem:[%s13429_s26 + $0x1f0] ss:$24 sps:$4 sm:$0xff]  }
 0x2bb   : > { %4672 = vmatmul.mubr.bf16.vlgmr.msra.gmra.mrb[48].mxu0 %v14034_v55  ;;  %4713 = vmatmul.mubr.bf16.vlgmr.msra.gmra.mrb[48].mxu1 %v14034_v55  ;;  %v12256_v51 = vld [vmem:[%s13429_s26 + $0x21c] ss:$24 sps:$4 sm:$0xff]   ;;  %v12262_v56 = vld [vmem:[%s13429_s26 + $0x24c] ss:$24 sps:$4 sm:$0xff]  }
 0x2bc   : > { %2473 = vst.msk [vmem:[#allocation2 + $0x3] ss:$8 sm:$0xf] %vm13828_vm1, %v2472_v59  ;;  %2474 = vst.msk [vmem:[#allocation2 + $0x3] ss:$8 sm:$0x30] %vm13828_vm1, %v2472_v59  ;;  %4722 = vmatpush1.bf16.msra.mxu0 %v12188_v52  ;;  %5110 = vmatpush1.bf16.msra.mxu1 %v12191_v53 }
 0x2bd   : > { %4723 = vmatprep.subr.bf16.mxu0 %v12196_v57  ;;  %5111 = vmatprep.subr.bf16.mxu1 %v12199_v58  ;;  %v12259_v52 = vld [vmem:[%s13429_s26 + $0x224] ss:$24 sps:$4 sm:$0xff]   ;;  %v12254_v53 = vld [vmem:[%s13429_s26 + $0x218] ss:$24 sps:$4 sm:$0xff]   ;;  %v12265_v57 = vld [vmem:[%s13429_s26 + $0x254] ss:$24 sps:$4 sm:$0xff]  }
 0x2be   : > { %4753 = vmatprep.mubr.bf16.mxu0 %v13055_v3  ;;  %5141 = vmatprep.mubr.bf16.mxu1 %v13055_v3  ;;  %v12260_v58 = vld [vmem:[%s13429_s26 + $0x248] ss:$24 sps:$4 sm:$0xff]  }
 0x2bf   : > { %v12263_v59 = vld [vmem:[%s13429_s26 + $0x250] ss:$24 sps:$4 sm:$0xff]  }
 0x2c0   : > { %4724 = vmatpush1.bf16.msra.mxu0 %v12194_v60  ;;  %5112 = vmatpush1.bf16.msra.mxu1 %v12197_v61  ;;  %v12268_v60 = vld [vmem:[%s13429_s26 + $0x27c] ss:$24 sps:$4 sm:$0xff]  }
 0x2c1   : > { %4725 = vmatprep.subr.bf16.mxu0 %v12202_v62  ;;  %5113 = vmatprep.subr.bf16.mxu1 %v12205_v63  ;;  %v12271_v61 = vld [vmem:[%s13429_s26 + $0x284] ss:$24 sps:$4 sm:$0xff]   ;;  %v12266_v62 = vld [vmem:[%s13429_s26 + $0x278] ss:$24 sps:$4 sm:$0xff]  }
 0x2c2   : > { %v12269_v63 = vld [vmem:[%s13429_s26 + $0x280] ss:$24 sps:$4 sm:$0xff]  }
 0x2c4   : > { %4726 = vmatpush1.bf16.msra.mxu0 %v12200_v0  ;;  %5114 = vmatpush1.bf16.msra.mxu1 %v12203_v1  ;;  %v12274_v0 = vld [vmem:[%s13429_s26 + $0x2ac] ss:$24 sps:$4 sm:$0xff]  }
 0x2c5   : > { %4727 = vmatprep.subr.bf16.mxu0 %v12208_v4  ;;  %5115 = vmatprep.subr.bf16.mxu1 %v12211_v6  ;;  %v12277_v1 = vld [vmem:[%s13429_s26 + $0x2b4] ss:$24 sps:$4 sm:$0xff]  }
 0x2c8   : > { %4728 = vmatpush1.bf16.msra.mxu0 %v12206_v8  ;;  %5116 = vmatpush1.bf16.msra.mxu1 %v12209_v9  ;;  %v2476_v8 = vld [vmem:[#allocation2 + $0x4] ss:$8 sm:$0xf] }
 0x2c9   : > { %4729 = vmatprep.subr.bf16.mxu0 %v12214_v10  ;;  %5117 = vmatprep.subr.bf16.mxu1 %v12217_v12  ;;  %v2477_v9 = vld [vmem:[#allocation2 + $0x4] ss:$8 sm:$0x30] }
 0x2cc   : > { %4730 = vmatpush1.bf16.msra.mxu0 %v12212_v14  ;;  %5118 = vmatpush1.bf16.msra.mxu1 %v12215_v15 }
 0x2cd   : > { %4731 = vmatprep.subr.bf16.mxu0 %v12220_v16  ;;  %5119 = vmatprep.subr.bf16.mxu1 %v12223_v17 }
 0x2ce   : > { %v2804_v22 = vpop.f32.mrb[24].mxu0  ;;  %v2845_v23 = vpop.f32.mrb[24].mxu1 }
 0x2cf   : > { %v2806_v2 = vpop.f32.mrb[25].mxu0  ;;  %v2847_v11 = vpop.f32.mrb[25].mxu1 }
 0x2d0   : > { %v2899_v13 = vcombine.low %v2804_v22, %v2806_v2  ;;  %v2900_v24 = vcombine.low %v2845_v23, %v2847_v11  ;;  %v2808_v25 = vpop.f32.mrb[26].mxu0  ;;  %v2849_v26 = vpop.f32.mrb[26].mxu1  ;;  %4732 = vmatpush1.bf16.msra.mxu0 %v12218_v18  ;;  %5120 = vmatpush1.bf16.msra.mxu1 %v12221_v20  ;;  %v12272_v18 = vld [vmem:[%s13429_s26 + $0x2a8] ss:$24 sps:$4 sm:$0xff]   ;;  %v12280_v22 = vld [vmem:[%s13429_s26 + $0x2dc] ss:$24 sps:$4 sm:$0xff]  }
 0x2d1   : > { %v2809_v29 = vpop.f32.mrb[27].mxu0  ;;  %v2850_v31 = vpop.f32.mrb[27].mxu1  ;;  %4733 = vmatprep.subr.bf16.mxu0 %v12226_v7  ;;  %5121 = vmatprep.subr.bf16.mxu1 %v12229_v21  ;;  %v12275_v20 = vld [vmem:[%s13429_s26 + $0x2b0] ss:$24 sps:$4 sm:$0xff]   ;;  %v12283_v23 = vld [vmem:[%s13429_s26 + $0x2e4] ss:$24 sps:$4 sm:$0xff]  }
 0x2d2   : > { %v14071_v33 = vrot.slane %v2899_v13, %v13758_v19  ;;  %v14074_v34 = vrot.slane %v2900_v24, %v13758_v19  ;;  %v2478_v13 = vor.u32 %v2477_v9, %v2476_v8  ;;  %v12278_v25 = vld [vmem:[%s13429_s26 + $0x2d8] ss:$24 sps:$4 sm:$0xff]  }
 0x2d3   : > { %v12281_v26 = vld [vmem:[%s13429_s26 + $0x2e0] ss:$24 sps:$4 sm:$0xff]  }
 0x2d4   : > { %v2923_v38 = vcombine.low %v14071_v33, %v14074_v34  ;;  %4734 = vmatpush1.bf16.msra.mxu0 %v12224_v27  ;;  %5122 = vmatpush1.bf16.msra.mxu1 %v12227_v28  ;;  %v12286_v27 = vld [vmem:[%s13429_s26 + $0x304] ss:$24 sps:$4 sm:$0xff]   ;;  %v12292_v33 = vld [vmem:[%s13429_s26 + $0x334] ss:$24 sps:$4 sm:$0xff]  }
 0x2d5   : > { %4735 = vmatprep.subr.bf16.mxu0 %v12232_v37  ;;  %5123 = vmatprep.subr.bf16.mxu1 %v12235_v32  ;;  %v12289_v28 = vld [vmem:[%s13429_s26 + $0x30c] ss:$24 sps:$4 sm:$0xff]   ;;  %v12284_v37 = vld [vmem:[%s13429_s26 + $0x300] ss:$24 sps:$4 sm:$0xff]   ;;  %v12295_v34 = vld [vmem:[%s13429_s26 + $0x33c] ss:$24 sps:$4 sm:$0xff]  }
 0x2d6   : > { %v2930_v11 = vrot.slane %v2923_v38, %v13758_v19  ;;  %v12287_v32 = vld [vmem:[%s13429_s26 + $0x308] ss:$24 sps:$4 sm:$0xff]   ;;  %v12298_v38 = vld [vmem:[%s13429_s26 + $0x364] ss:$24 sps:$4 sm:$0xff]  }
 0x2d8   : > { %4736 = vmatpush1.bf16.msra.mxu0 %v12230_v35  ;;  %5124 = vmatpush1.bf16.msra.mxu1 %v12233_v36  ;;  %v12290_v35 = vld [vmem:[%s13429_s26 + $0x330] ss:$24 sps:$4 sm:$0xff]  }
 0x2d9   : > { %5150 = vmatprep.subr.bf16.mxu0 %v12238_v39  ;;  %5191 = vmatprep.subr.bf16.mxu1 %v12241_v41  ;;  %v12293_v36 = vld [vmem:[%s13429_s26 + $0x338] ss:$24 sps:$4 sm:$0xff]   ;;  %v12301_v39 = vld [vmem:[%s13429_s26 + $0x36c] ss:$24 sps:$4 sm:$0xff]  }
 0x2da   : > { %v12296_v41 = vld [vmem:[%s13429_s26 + $0x360] ss:$24 sps:$4 sm:$0xff]  }
 0x2db   : > { %4754 = vmatmul.mubr.bf16.vlgmr.msra.gmra.mrb[52].mxu0 %v14034_v55  ;;  %5142 = vmatmul.mubr.bf16.vlgmr.msra.gmra.mrb[52].mxu1 %v14085_v44 }
 0x2dc   : > { %5151 = vmatpush1.bf16.msra.mxu0 %v12236_v40  ;;  %5192 = vmatpush1.bf16.msra.mxu1 %v12239_v42  ;;  %v12299_v40 = vld [vmem:[%s13429_s26 + $0x368] ss:$24 sps:$4 sm:$0xff]   ;;  %v12304_v42 = vld [vmem:[%s13429_s26 + $0x394] ss:$24 sps:$4 sm:$0xff]  }
 0x2dd   : > { %5152 = vmatprep.subr.bf16.mxu0 %v12244_v46  ;;  %5193 = vmatprep.subr.bf16.mxu1 %v12247_v47  ;;  %v12307_v46 = vld [vmem:[%s13429_s26 + $0x39c] ss:$24 sps:$4 sm:$0xff]   ;;  %v12302_v47 = vld [vmem:[%s13429_s26 + $0x390] ss:$24 sps:$4 sm:$0xff]  }
 0x2de   : > { %5182 = vmatprep.mubr.bf16.mxu0 %v13055_v3  ;;  %5223 = vmatprep.mubr.bf16.mxu1 %v13055_v3 }
 0x2e0   : > { %5153 = vmatpush1.bf16.msra.mxu0 %v12242_v48  ;;  %5194 = vmatpush1.bf16.msra.mxu1 %v12245_v49  ;;  %v12305_v48 = vld [vmem:[%s13429_s26 + $0x398] ss:$24 sps:$4 sm:$0xff]   ;;  %v12310_v49 = vld [vmem:[%s13429_s26 + $0x3c4] ss:$24 sps:$4 sm:$0xff]  }
 0x2e1   : > { %5154 = vmatprep.subr.bf16.mxu0 %v12250_v50  ;;  %5195 = vmatprep.subr.bf16.mxu1 %v12253_v5  ;;  %v12313_v50 = vld [vmem:[%s13429_s26 + $0x3cc] ss:$24 sps:$4 sm:$0xff]   ;;  %v12308_v5 = vld [vmem:[%s13429_s26 + $0x3c0] ss:$24 sps:$4 sm:$0xff]  }
 0x2e4   : > { %5155 = vmatpush1.bf16.msra.mxu0 %v12248_v43  ;;  %5196 = vmatpush1.bf16.msra.mxu1 %v12251_v45  ;;  %v12311_v43 = vld [vmem:[%s13429_s26 + $0x3c8] ss:$24 sps:$4 sm:$0xff]   ;;  %v12316_v45 = vld [vmem:[%s13429_s26 + $0x3f4] ss:$24 sps:$4 sm:$0xff]  }
 0x2e5   : > { %5156 = vmatprep.subr.bf16.mxu0 %v12256_v51  ;;  %5197 = vmatprep.subr.bf16.mxu1 %v12259_v52  ;;  %v12319_v51 = vld [vmem:[%s13429_s26 + $0x3fc] ss:$24 sps:$4 sm:$0xff]   ;;  %v12314_v52 = vld [vmem:[%s13429_s26 + $0x3f0] ss:$24 sps:$4 sm:$0xff]  }
 0x2e8   : > { %5157 = vmatpush1.bf16.msra.mxu0 %v12254_v53  ;;  %5198 = vmatpush1.bf16.msra.mxu1 %v12257_v54  ;;  %v12317_v53 = vld [vmem:[%s13429_s26 + $0x3f8] ss:$24 sps:$4 sm:$0xff]   ;;  %v12322_v54 = vld [vmem:[%s13429_s26 + $0x424] ss:$24 sps:$4 sm:$0xff]  }
 0x2e9   : > { %5158 = vmatprep.subr.bf16.mxu0 %v12262_v56  ;;  %5199 = vmatprep.subr.bf16.mxu1 %v12265_v57  ;;  %v12325_v56 = vld [vmem:[%s13429_s26 + $0x42c] ss:$24 sps:$4 sm:$0xff]  }
 0x2ec   : > { %5159 = vmatpush1.bf16.msra.mxu0 %v12260_v58  ;;  %5200 = vmatpush1.bf16.msra.mxu1 %v12263_v59 }
 0x2ed   : > { %5160 = vmatprep.subr.bf16.mxu0 %v12268_v60  ;;  %5201 = vmatprep.subr.bf16.mxu1 %v12271_v61 }
 0x2ee   : > { %v2886_v4 = vpop.f32.mrb[28].mxu0  ;;  %v14113_v6 = vpop.f32.mrb[28].mxu1 }
 0x2ef   : > { %v2888_v10 = vpop.f32.mrb[29].mxu0  ;;  %v14115_v12 = vpop.f32.mrb[29].mxu1 }
 0x2f0   : > { %v2901_v14 = vcombine.low %v2886_v4, %v2888_v10  ;;  %v3367_v15 = vcombine.low %v14113_v6, %v14115_v12  ;;  %v2890_v16 = vpop.f32.mrb[30].mxu0  ;;  %v3276_v17 = vpop.f32.mrb[30].mxu1  ;;  %5161 = vmatpush1.bf16.msra.mxu0 %v12266_v62  ;;  %5202 = vmatpush1.bf16.msra.mxu1 %v12269_v63  ;;  %v12323_v4 = vld [vmem:[%s13429_s26 + $0x428] ss:$24 sps:$4 sm:$0xff]   ;;  %v12328_v10 = vld [vmem:[%s13429_s26 + $0x454] ss:$24 sps:$4 sm:$0xff]  }
 0x2f1   : > { %v2891_v7 = vpop.f32.mrb[31].mxu0  ;;  %v3277_v21 = vpop.f32.mrb[31].mxu1  ;;  %5162 = vmatprep.subr.bf16.mxu0 %v12274_v0  ;;  %5203 = vmatprep.subr.bf16.mxu1 %v12277_v1  ;;  %v12320_v1 = vld [vmem:[%s13429_s26 + $0x420] ss:$24 sps:$4 sm:$0xff]   ;;  %v12334_v6 = vld [vmem:[%s13429_s26 + $0x314] ss:$24 sps:$4 sm:$0xff]  }
 0x2f2   : > { %v2922_v2 = vrot.slane %v2901_v14, %v13758_v19  ;;  %v12331_v14 = vld [vmem:[%s13429_s26 + $0x45c] ss:$24 sps:$4 sm:$0xff]   ;;  %v3376_v16 = vrot.slane %v3367_v15, %v13758_v19 }
 0x2f3   : > { %v2945_v7 = vld [vmem:[#allocation2 + $0x5] ss:$8 sm:$0x30] }
 0x2f4   : > { %v2937_v24 = vrot.slane %v2922_v2, %v13758_v19  ;;  %5163 = vmatpush1.bf16.msra.mxu0 %v12272_v18  ;;  %5204 = vmatpush1.bf16.msra.mxu1 %v12275_v20  ;;  %v2944_v20 = vld [vmem:[#allocation2 + $0x5] ss:$8 sm:$0xf]  ;;  %v12329_v2 = vld [vmem:[%s13429_s26 + $0x458] ss:$24 sps:$4 sm:$0xff]  }
 0x2f5   : > { %5164 = vmatprep.subr.bf16.mxu0 %v12280_v22  ;;  %5205 = vmatprep.subr.bf16.mxu1 %v12283_v23  ;;  %v12326_v23 = vld [vmem:[%s13429_s26 + $0x450] ss:$24 sps:$4 sm:$0xff]   ;;  %v12337_v12 = vld [vmem:[%s13429_s26 + $0x484] ss:$24 sps:$4 sm:$0xff]  }
 0x2f6   : > { %v2938_v29 = vcombine.low %v2930_v11, %v2937_v24  ;;  %v2946_v11 = vor.u32 %v2945_v7, %v2944_v20  ;;  %v12380_v20 = vld [vmem:[%s13429_s26 + $0x488] ss:$24 sps:$4 sm:$0xff]  }
 0x2f7   : > { %v12383_v7 = vld [vmem:[%s13429_s26 + $0x490] ss:$24 sps:$4 sm:$0xff]  }
 0x2f8   : > { %v2940_v31 = vadd.f32 %v2938_v29, %v2478_v13  ;;  %5165 = vmatpush1.bf16.msra.mxu0 %v12278_v25  ;;  %5206 = vmatpush1.bf16.msra.mxu1 %v12281_v26  ;;  %v14182_v13 = vrot.slane %v14034_v55, 1  ;;  %v12332_v25 = vld [vmem:[%s13429_s26 + $0x310] ss:$24 sps:$4 sm:$0xff]   ;;  %v12335_v26 = vld [vmem:[%s13429_s26 + $0x480] ss:$24 sps:$4 sm:$0xff]  }
 0x2f9   : > { %5578 = vmatprep.subr.bf16.mxu0 %v12286_v27  ;;  %5619 = vmatprep.subr.bf16.mxu1 %v12289_v28  ;;  %v12340_v27 = vld [vmem:[%s13429_s26 + $0x344] ss:$24 sps:$4 sm:$0xff]   ;;  %v12343_v28 = vld [vmem:[%s13429_s26 + $0x4b4] ss:$24 sps:$4 sm:$0xff]  }
 0x2fa   : > { %2941 = vst.msk [vmem:[#allocation2 + $0x4] ss:$8 sm:$0xf] %vm13828_vm1, %v2940_v31  ;;  %2942 = vst.msk [vmem:[#allocation2 + $0x4] ss:$8 sm:$0x30] %vm13828_vm1, %v2940_v31 }
 0x2fb   : > { %5183 = vmatmul.mubr.bf16.vlgmr.msra.gmra.mrb[56].mxu0 %v14085_v44  ;;  %5224 = vmatmul.mubr.bf16.vlgmr.msra.gmra.mrb[56].mxu1 %v14085_v44  ;;  %v12338_v31 = vld [vmem:[%s13429_s26 + $0x340] ss:$24 sps:$4 sm:$0xff]  }
 0x2fc   : > { %5579 = vmatpush1.bf16.msra.mxu0 %v12284_v37  ;;  %5620 = vmatpush1.bf16.msra.mxu1 %v12287_v32  ;;  %v12341_v37 = vld [vmem:[%s13429_s26 + $0x4b0] ss:$24 sps:$4 sm:$0xff]   ;;  %v12346_v32 = vld [vmem:[%s13429_s26 + $0x374] ss:$24 sps:$4 sm:$0xff]  }
 0x2fd   : > { %5580 = vmatprep.subr.bf16.mxu0 %v12292_v33  ;;  %5621 = vmatprep.subr.bf16.mxu1 %v12295_v34  ;;  %v12349_v33 = vld [vmem:[%s13429_s26 + $0x4e4] ss:$24 sps:$4 sm:$0xff]   ;;  %v12344_v34 = vld [vmem:[%s13429_s26 + $0x370] ss:$24 sps:$4 sm:$0xff]  }
 0x2fe   : > { %5610 = vmatprep.mubr.bf16.mxu0 %v13055_v3  ;;  %5651 = vmatprep.mubr.bf16.mxu1 %v13055_v3 }
 0x300   : > { %5581 = vmatpush1.bf16.msra.mxu0 %v12290_v35  ;;  %5622 = vmatpush1.bf16.msra.mxu1 %v12293_v36  ;;  %v12347_v35 = vld [vmem:[%s13429_s26 + $0x4e0] ss:$24 sps:$4 sm:$0xff]   ;;  %v12352_v36 = vld [vmem:[%s13429_s26 + $0x3a4] ss:$24 sps:$4 sm:$0xff]  }
 0x301   : > { %5582 = vmatprep.subr.bf16.mxu0 %v12298_v38  ;;  %5623 = vmatprep.subr.bf16.mxu1 %v12301_v39  ;;  %v12355_v38 = vld [vmem:[%s13429_s26 + $0x514] ss:$24 sps:$4 sm:$0xff]   ;;  %v12350_v39 = vld [vmem:[%s13429_s26 + $0x3a0] ss:$24 sps:$4 sm:$0xff]  }
 0x304   : > { %5583 = vmatpush1.bf16.msra.mxu0 %v12296_v41  ;;  %5624 = vmatpush1.bf16.msra.mxu1 %v12299_v40  ;;  %v12353_v41 = vld [vmem:[%s13429_s26 + $0x510] ss:$24 sps:$4 sm:$0xff]   ;;  %v12358_v40 = vld [vmem:[%s13429_s26 + $0x3d4] ss:$24 sps:$4 sm:$0xff]  }
 0x305   : > { %5584 = vmatprep.subr.bf16.mxu0 %v12304_v42  ;;  %5625 = vmatprep.subr.bf16.mxu1 %v12307_v46  ;;  %v12361_v42 = vld [vmem:[%s13429_s26 + $0x544] ss:$24 sps:$4 sm:$0xff]   ;;  %v12356_v46 = vld [vmem:[%s13429_s26 + $0x3d0] ss:$24 sps:$4 sm:$0xff]  }
 0x308   : > { %5585 = vmatpush1.bf16.msra.mxu0 %v12302_v47  ;;  %5626 = vmatpush1.bf16.msra.mxu1 %v12305_v48  ;;  %v12359_v47 = vld [vmem:[%s13429_s26 + $0x540] ss:$24 sps:$4 sm:$0xff]   ;;  %v12364_v48 = vld [vmem:[%s13429_s26 + $0x404] ss:$24 sps:$4 sm:$0xff]  }
 0x309   : > { %5586 = vmatprep.subr.bf16.mxu0 %v12310_v49  ;;  %5627 = vmatprep.subr.bf16.mxu1 %v12313_v50  ;;  %v12367_v49 = vld [vmem:[%s13429_s26 + $0x574] ss:$24 sps:$4 sm:$0xff]   ;;  %v12362_v50 = vld [vmem:[%s13429_s26 + $0x400] ss:$24 sps:$4 sm:$0xff]  }
 0x30c   : > { %5587 = vmatpush1.bf16.msra.mxu0 %v12308_v5  ;;  %5628 = vmatpush1.bf16.msra.mxu1 %v12311_v43  ;;  %v12365_v5 = vld [vmem:[%s13429_s26 + $0x570] ss:$24 sps:$4 sm:$0xff]   ;;  %v12370_v43 = vld [vmem:[%s13429_s26 + $0x434] ss:$24 sps:$4 sm:$0xff]  }
 0x30d   : > { %5588 = vmatprep.subr.bf16.mxu0 %v12316_v45  ;;  %5629 = vmatprep.subr.bf16.mxu1 %v12319_v51  ;;  %v12373_v45 = vld [vmem:[%s13429_s26 + $0x5a4] ss:$24 sps:$4 sm:$0xff]  }
 0x30e   : > { %v3313_v57 = vpop.f32.mrb[32].mxu0  ;;  %v3354_v58 = vpop.f32.mrb[32].mxu1 }
 0x30f   : > { %v3315_v59 = vpop.f32.mrb[33].mxu0  ;;  %v3356_v60 = vpop.f32.mrb[33].mxu1 }
 0x310   : > { %v3368_v61 = vcombine.low %v3313_v57, %v3315_v59  ;;  %v3369_v62 = vcombine.low %v3354_v58, %v3356_v60  ;;  %v3317_v63 = vpop.f32.mrb[34].mxu0  ;;  %v3358_v0 = vpop.f32.mrb[34].mxu1  ;;  %5589 = vmatpush1.bf16.msra.mxu0 %v12314_v52  ;;  %5630 = vmatpush1.bf16.msra.mxu1 %v12317_v53  ;;  %v12368_v60 = vld [vmem:[%s13429_s26 + $0x430] ss:$24 sps:$4 sm:$0xff]  }
 0x311   : > { %v3318_v8 = vpop.f32.mrb[35].mxu0  ;;  %v3359_v9 = vpop.f32.mrb[35].mxu1  ;;  %5590 = vmatprep.subr.bf16.mxu0 %v12322_v54  ;;  %5631 = vmatprep.subr.bf16.mxu1 %v12325_v56  ;;  %v12376_v0 = vld [vmem:[%s13429_s26 + $0x464] ss:$24 sps:$4 sm:$0xff]  }
 0x312   : > { %v3383_v17 = vrot.slane %v3368_v61, %v13758_v19  ;;  %v3390_v18 = vrot.slane %v3369_v62, %v13758_v19  ;;  %v12371_v61 = vld [vmem:[%s13429_s26 + $0x5a0] ss:$24 sps:$4 sm:$0xff]  }
 0x314   : > { %v3391_v21 = vcombine.low %v3376_v16, %v3383_v17  ;;  %v3405_v22 = vrot.slane %v3390_v18, %v13758_v19  ;;  %5591 = vmatpush1.bf16.msra.mxu0 %v12320_v1  ;;  %5632 = vmatpush1.bf16.msra.mxu1 %v12323_v4  ;;  %v12379_v1 = vld [vmem:[%s13429_s26 + $0x5d4] ss:$24 sps:$4 sm:$0xff]   ;;  %v14233_v18 = vrot.slane %v14085_v44, 1 }
 0x315   : > { %5592 = vmatprep.subr.bf16.mxu0 %v12328_v10  ;;  %5633 = vmatprep.subr.bf16.mxu1 %v12331_v14  ;;  %v12374_v10 = vld [vmem:[%s13429_s26 + $0x460] ss:$24 sps:$4 sm:$0xff]   ;;  %v12377_v14 = vld [vmem:[%s13429_s26 + $0x5d0] ss:$24 sps:$4 sm:$0xff]   ;;  %v12382_v16 = vld [vmem:[%s13429_s26 + $0x48c] ss:$24 sps:$4 sm:$0xff]  }
 0x316   : > { %v3398_v15 = vrot.slane %v3391_v21, %v13758_v19  ;;  %v12385_v17 = vld [vmem:[%s13429_s26 + $0x494] ss:$24 sps:$4 sm:$0xff]  }
 0x317   : > { %v12388_v21 = vld [vmem:[%s13429_s26 + $0x4bc] ss:$24 sps:$4 sm:$0xff]  }
 0x318   : > { %v3406_v24 = vcombine.low %v3398_v15, %v3405_v22  ;;  %5593 = vmatpush1.bf16.msra.mxu0 %v12326_v23  ;;  %5634 = vmatpush1.bf16.msra.mxu1 %v12329_v2  ;;  %v12391_v22 = vld [vmem:[%s13429_s26 + $0x4c4] ss:$24 sps:$4 sm:$0xff]   ;;  %v12386_v23 = vld [vmem:[%s13429_s26 + $0x4b8] ss:$24 sps:$4 sm:$0xff]   ;;  %v12392_v15 = vld [vmem:[%s13429_s26 + $0x4e8] ss:$24 sps:$4 sm:$0xff]  }
 0x319   : > { %5660 = vmatprep.subr.bf16.mxu0 %v12334_v6  ;;  %6046 = vmatprep.subr.bf16.mxu1 %v12337_v12  ;;  %v12389_v2 = vld [vmem:[%s13429_s26 + $0x4c0] ss:$24 sps:$4 sm:$0xff]   ;;  %v12394_v6 = vld [vmem:[%s13429_s26 + $0x4ec] ss:$24 sps:$4 sm:$0xff]  }
 0x31a   : > { %v3408_v29 = vadd.f32 %v3406_v24, %v2946_v11  ;;  %v12397_v12 = vld [vmem:[%s13429_s26 + $0x4f4] ss:$24 sps:$4 sm:$0xff]   ;;  %v12395_v11 = vld [vmem:[%s13429_s26 + $0x4f0] ss:$24 sps:$4 sm:$0xff]   ;;  %v12403_v24 = vld [vmem:[%s13429_s26 + $0x524] ss:$24 sps:$4 sm:$0xff]  }
 0x31b   : > { %5611 = vmatmul.mubr.bf16.vlgmr.msra.gmra.mrb[60].mxu0 %v14182_v13  ;;  %5652 = vmatmul.mubr.bf16.vlgmr.msra.gmra.mrb[60].mxu1 %v14182_v13 }
 0x31c   : > { %3409 = vst.msk [vmem:[#allocation2 + $0x5] ss:$8 sm:$0xf] %vm13828_vm1, %v3408_v29  ;;  %3410 = vst.msk [vmem:[#allocation2 + $0x5] ss:$8 sm:$0x30] %vm13828_vm1, %v3408_v29  ;;  %5661 = vmatpush1.bf16.msra.mxu0 %v12332_v25  ;;  %6047 = vmatpush1.bf16.msra.mxu1 %v12335_v26 }
 0x31d   : > { %5662 = vmatprep.subr.bf16.mxu0 %v12340_v27  ;;  %6048 = vmatprep.subr.bf16.mxu1 %v12343_v28  ;;  %v12398_v25 = vld [vmem:[%s13429_s26 + $0x518] ss:$24 sps:$4 sm:$0xff]   ;;  %v12406_v27 = vld [vmem:[%s13429_s26 + $0x54c] ss:$24 sps:$4 sm:$0xff]   ;;  %v12404_v29 = vld [vmem:[%s13429_s26 + $0x548] ss:$24 sps:$4 sm:$0xff]  }
 0x31e   : > { %5692 = vmatprep.mubr.bf16.mxu0 %v13055_v3  ;;  %6078 = vmatprep.mubr.bf16.mxu1 %v13055_v3  ;;  %v12401_v26 = vld [vmem:[%s13429_s26 + $0x520] ss:$24 sps:$4 sm:$0xff]   ;;  %v12409_v28 = vld [vmem:[%s13429_s26 + $0x554] ss:$24 sps:$4 sm:$0xff]  }
 0x320   : > { %5663 = vmatpush1.bf16.msra.mxu0 %v12338_v31  ;;  %6049 = vmatpush1.bf16.msra.mxu1 %v12341_v37  ;;  %v12407_v31 = vld [vmem:[%s13429_s26 + $0x550] ss:$24 sps:$4 sm:$0xff]   ;;  %v12412_v37 = vld [vmem:[%s13429_s26 + $0x57c] ss:$24 sps:$4 sm:$0xff]  }
 0x321   : > { %5664 = vmatprep.subr.bf16.mxu0 %v12346_v32  ;;  %6050 = vmatprep.subr.bf16.mxu1 %v12349_v33  ;;  %v12415_v32 = vld [vmem:[%s13429_s26 + $0x584] ss:$24 sps:$4 sm:$0xff]   ;;  %v12410_v33 = vld [vmem:[%s13429_s26 + $0x578] ss:$24 sps:$4 sm:$0xff]  }
 0x324   : > { %5665 = vmatpush1.bf16.msra.mxu0 %v12344_v34  ;;  %6051 = vmatpush1.bf16.msra.mxu1 %v12347_v35  ;;  %v12413_v34 = vld [vmem:[%s13429_s26 + $0x580] ss:$24 sps:$4 sm:$0xff]   ;;  %v12418_v35 = vld [vmem:[%s13429_s26 + $0x5ac] ss:$24 sps:$4 sm:$0xff]  }
 0x325   : > { %5666 = vmatprep.subr.bf16.mxu0 %v12352_v36  ;;  %6052 = vmatprep.subr.bf16.mxu1 %v12355_v38  ;;  %v12421_v36 = vld [vmem:[%s13429_s26 + $0x5b4] ss:$24 sps:$4 sm:$0xff]  }
 0x328   : > { %5667 = vmatpush1.bf16.msra.mxu0 %v12350_v39  ;;  %6053 = vmatpush1.bf16.msra.mxu1 %v12353_v41  ;;  %v3412_v41 = vld [vmem:[#allocation2 + $0x6] ss:$8 sm:$0xf] }
 0x329   : > { %5668 = vmatprep.subr.bf16.mxu0 %v12358_v40  ;;  %6054 = vmatprep.subr.bf16.mxu1 %v12361_v42  ;;  %v3413_v40 = vld [vmem:[#allocation2 + $0x6] ss:$8 sm:$0x30] }
 0x32c   : > { %5669 = vmatpush1.bf16.msra.mxu0 %v12356_v46  ;;  %6055 = vmatpush1.bf16.msra.mxu1 %v12359_v47 }
 0x32d   : > { %5670 = vmatprep.subr.bf16.mxu0 %v12364_v48  ;;  %6056 = vmatprep.subr.bf16.mxu1 %v12367_v49 }
 0x32e   : > { %v3740_v51 = vpop.f32.mrb[36].mxu0  ;;  %v3781_v52 = vpop.f32.mrb[36].mxu1 }
 0x32f   : > { %v3742_v53 = vpop.f32.mrb[37].mxu0  ;;  %v3783_v54 = vpop.f32.mrb[37].mxu1 }
 0x330   : > { %v3835_v56 = vcombine.low %v3740_v51, %v3742_v53  ;;  %v3836_v57 = vcombine.low %v3781_v52, %v3783_v54  ;;  %v3744_v58 = vpop.f32.mrb[38].mxu0  ;;  %v3785_v59 = vpop.f32.mrb[38].mxu1  ;;  %5671 = vmatpush1.bf16.msra.mxu0 %v12362_v50  ;;  %6057 = vmatpush1.bf16.msra.mxu1 %v12365_v5  ;;  %v12416_v5 = vld [vmem:[%s13429_s26 + $0x5a8] ss:$24 sps:$4 sm:$0xff]   ;;  %v12424_v52 = vld [vmem:[%s13429_s26 + $0x5dc] ss:$24 sps:$4 sm:$0xff]  }
 0x331   : > { %v3745_v62 = vpop.f32.mrb[39].mxu0  ;;  %v3786_v63 = vpop.f32.mrb[39].mxu1  ;;  %5672 = vmatprep.subr.bf16.mxu0 %v12370_v43  ;;  %6058 = vmatprep.subr.bf16.mxu1 %v12373_v45  ;;  %v12419_v43 = vld [vmem:[%s13429_s26 + $0x5b0] ss:$24 sps:$4 sm:$0xff]   ;;  %v12427_v53 = vld [vmem:[%s13429_s26 + $0x5e4] ss:$24 sps:$4 sm:$0xff]  }
 0x332   : > { %v14221_v4 = vrot.slane %v3835_v56, %v13758_v19  ;;  %v14224_v8 = vrot.slane %v3836_v57, %v13758_v19  ;;  %v3414_v57 = vor.u32 %v3413_v40, %v3412_v41  ;;  %v12422_v59 = vld [vmem:[%s13429_s26 + $0x5d8] ss:$24 sps:$4 sm:$0xff]   ;;  %v12433_v62 = vld [vmem:[%s13429_s26 + $0x60c] ss:$24 sps:$4 sm:$0xff]  }
 0x334   : > { %v3859_v9 = vcombine.low %v14221_v4, %v14224_v8  ;;  %5673 = vmatpush1.bf16.msra.mxu0 %v12368_v60  ;;  %6059 = vmatpush1.bf16.msra.mxu1 %v12371_v61  ;;  %v12425_v60 = vld [vmem:[%s13429_s26 + $0x5e0] ss:$24 sps:$4 sm:$0xff]   ;;  %v12430_v61 = vld [vmem:[%s13429_s26 + $0x604] ss:$24 sps:$4 sm:$0xff]   ;;  %v12436_v8 = vld [vmem:[%s13429_s26 + $0x634] ss:$24 sps:$4 sm:$0xff]  }
 0x335   : > { %5674 = vmatprep.subr.bf16.mxu0 %v12376_v0  ;;  %6060 = vmatprep.subr.bf16.mxu1 %v12379_v1  ;;  %v12428_v1 = vld [vmem:[%s13429_s26 + $0x600] ss:$24 sps:$4 sm:$0xff]  }
 0x336   : > { %v3866_v56 = vrot.slane %v3859_v9, %v13758_v19  ;;  %v12431_v4 = vld [vmem:[%s13429_s26 + $0x608] ss:$24 sps:$4 sm:$0xff]   ;;  %v12439_v9 = vld [vmem:[%s13429_s26 + $0x63c] ss:$24 sps:$4 sm:$0xff]  }
 0x338   : > { %5675 = vmatpush1.bf16.msra.mxu0 %v12374_v10  ;;  %6061 = vmatpush1.bf16.msra.mxu1 %v12377_v14  ;;  %v12434_v10 = vld [vmem:[%s13429_s26 + $0x630] ss:$24 sps:$4 sm:$0xff]  }
 0x339   : > { %6087 = vmatprep.subr.bf16.mxu0 %v12382_v16  ;;  %6128 = vmatprep.subr.bf16.mxu1 %v12385_v17  ;;  %v12437_v14 = vld [vmem:[%s13429_s26 + $0x638] ss:$24 sps:$4 sm:$0xff]   ;;  %v12442_v16 = vld [vmem:[%s13429_s26 + $0x664] ss:$24 sps:$4 sm:$0xff]  }
 0x33a   : > { %v12445_v17 = vld [vmem:[%s13429_s26 + $0x66c] ss:$24 sps:$4 sm:$0xff]  }
 0x33b   : > { %5693 = vmatmul.mubr.bf16.vlgmr.msra.gmra.mrb[64].mxu0 %v14182_v13  ;;  %6079 = vmatmul.mubr.bf16.vlgmr.msra.gmra.mrb[64].mxu1 %v14233_v18  ;;  %v12400_v13 = vld [vmem:[%s13429_s26 + $0x51c] ss:$24 sps:$4 sm:$0xff]  }
 0x33c   : > { %6088 = vmatpush1.bf16.msra.mxu0 %v12380_v20  ;;  %6129 = vmatpush1.bf16.msra.mxu1 %v12383_v7  ;;  %v12443_v20 = vld [vmem:[%s13429_s26 + $0x668] ss:$24 sps:$4 sm:$0xff]   ;;  %v12448_v7 = vld [vmem:[%s13429_s26 + $0x694] ss:$24 sps:$4 sm:$0xff]  }
 0x33d   : > { %6089 = vmatprep.subr.bf16.mxu0 %v12388_v21  ;;  %6130 = vmatprep.subr.bf16.mxu1 %v12391_v22  ;;  %v12451_v21 = vld [vmem:[%s13429_s26 + $0x69c] ss:$24 sps:$4 sm:$0xff]   ;;  %v12446_v22 = vld [vmem:[%s13429_s26 + $0x690] ss:$24 sps:$4 sm:$0xff]  }
 0x33e   : > { %6119 = vmatprep.mubr.bf16.mxu0 %v13055_v3  ;;  %6160 = vmatprep.mubr.bf16.mxu1 %v13055_v3 }
 0x340   : > { %6090 = vmatpush1.bf16.msra.mxu0 %v12386_v23  ;;  %6131 = vmatpush1.bf16.msra.mxu1 %v12389_v2  ;;  %v12449_v23 = vld [vmem:[%s13429_s26 + $0x698] ss:$24 sps:$4 sm:$0xff]   ;;  %v12454_v2 = vld [vmem:[%s13429_s26 + $0x6c4] ss:$24 sps:$4 sm:$0xff]  }
 0x341   : > { %6091 = vmatprep.subr.bf16.mxu0 %v12394_v6  ;;  %6132 = vmatprep.subr.bf16.mxu1 %v12397_v12  ;;  %v12457_v6 = vld [vmem:[%s13429_s26 + $0x6cc] ss:$24 sps:$4 sm:$0xff]   ;;  %v12452_v12 = vld [vmem:[%s13429_s26 + $0x6c0] ss:$24 sps:$4 sm:$0xff]  }
 0x344   : > { %6092 = vmatpush1.bf16.msra.mxu0 %v12392_v15  ;;  %6133 = vmatpush1.bf16.msra.mxu1 %v12395_v11  ;;  %v12455_v15 = vld [vmem:[%s13429_s26 + $0x6c8] ss:$24 sps:$4 sm:$0xff]   ;;  %v12460_v11 = vld [vmem:[%s13429_s26 + $0x6f4] ss:$24 sps:$4 sm:$0xff]  }
 0x345   : > { %6093 = vmatprep.subr.bf16.mxu0 %v12400_v13  ;;  %6134 = vmatprep.subr.bf16.mxu1 %v12403_v24  ;;  %v12463_v13 = vld [vmem:[%s13429_s26 + $0x6fc] ss:$24 sps:$4 sm:$0xff]   ;;  %v12458_v24 = vld [vmem:[%s13429_s26 + $0x6f0] ss:$24 sps:$4 sm:$0xff]  }
 0x348   : > { %6094 = vmatpush1.bf16.msra.mxu0 %v12398_v25  ;;  %6135 = vmatpush1.bf16.msra.mxu1 %v12401_v26  ;;  %v12461_v25 = vld [vmem:[%s13429_s26 + $0x6f8] ss:$24 sps:$4 sm:$0xff]   ;;  %v12466_v26 = vld [vmem:[%s13429_s26 + $0x724] ss:$24 sps:$4 sm:$0xff]  }
 0x349   : > { %6095 = vmatprep.subr.bf16.mxu0 %v12406_v27  ;;  %6136 = vmatprep.subr.bf16.mxu1 %v12409_v28  ;;  %v12469_v27 = vld [vmem:[%s13429_s26 + $0x72c] ss:$24 sps:$4 sm:$0xff]  }
 0x34c   : > { %6096 = vmatpush1.bf16.msra.mxu0 %v12404_v29  ;;  %6137 = vmatpush1.bf16.msra.mxu1 %v12407_v31 }
 0x34d   : > { %6097 = vmatprep.subr.bf16.mxu0 %v12412_v37  ;;  %6138 = vmatprep.subr.bf16.mxu1 %v12415_v32 }
 0x34e   : > { %v3822_v38 = vpop.f32.mrb[40].mxu0  ;;  %v14263_v39 = vpop.f32.mrb[40].mxu1 }
 0x34f   : > { %v3824_v42 = vpop.f32.mrb[41].mxu0  ;;  %v14265_v46 = vpop.f32.mrb[41].mxu1 }
 0x350   : > { %v3837_v47 = vcombine.low %v3822_v38, %v3824_v42  ;;  %v4303_v48 = vcombine.low %v14263_v39, %v14265_v46  ;;  %v3826_v49 = vpop.f32.mrb[42].mxu0  ;;  %v4212_v50 = vpop.f32.mrb[42].mxu1  ;;  %6098 = vmatpush1.bf16.msra.mxu0 %v12410_v33  ;;  %6139 = vmatpush1.bf16.msra.mxu1 %v12413_v34  ;;  %v12467_v38 = vld [vmem:[%s13429_s26 + $0x728] ss:$24 sps:$4 sm:$0xff]   ;;  %v12472_v42 = vld [vmem:[%s13429_s26 + $0x754] ss:$24 sps:$4 sm:$0xff]  }
 0x351   : > { %v3827_v45 = vpop.f32.mrb[43].mxu0  ;;  %v4213_v51 = vpop.f32.mrb[43].mxu1  ;;  %6099 = vmatprep.subr.bf16.mxu0 %v12418_v35  ;;  %6140 = vmatprep.subr.bf16.mxu1 %v12421_v36  ;;  %v12464_v36 = vld [vmem:[%s13429_s26 + $0x720] ss:$24 sps:$4 sm:$0xff]   ;;  %v12478_v39 = vld [vmem:[%s13429_s26 + $0x614] ss:$24 sps:$4 sm:$0xff]  }
 0x352   : > { %v3858_v54 = vrot.slane %v3837_v47, %v13758_v19  ;;  %v12475_v47 = vld [vmem:[%s13429_s26 + $0x75c] ss:$24 sps:$4 sm:$0xff]   ;;  %v4312_v49 = vrot.slane %v4303_v48, %v13758_v19 }
 0x353   : > { %v3881_v45 = vld [vmem:[#allocation2 + $0x7] ss:$8 sm:$0x30] }
 0x354   : > { %v3873_v58 = vrot.slane %v3858_v54, %v13758_v19  ;;  %6100 = vmatpush1.bf16.msra.mxu0 %v12416_v5  ;;  %6141 = vmatpush1.bf16.msra.mxu1 %v12419_v43  ;;  %v3880_v43 = vld [vmem:[#allocation2 + $0x7] ss:$8 sm:$0xf]  ;;  %v12473_v54 = vld [vmem:[%s13429_s26 + $0x758] ss:$24 sps:$4 sm:$0xff]  }
 0x355   : > { %6101 = vmatprep.subr.bf16.mxu0 %v12424_v52  ;;  %6142 = vmatprep.subr.bf16.mxu1 %v12427_v53  ;;  %v12470_v53 = vld [vmem:[%s13429_s26 + $0x750] ss:$24 sps:$4 sm:$0xff]   ;;  %v12481_v46 = vld [vmem:[%s13429_s26 + $0x784] ss:$24 sps:$4 sm:$0xff]  }
 0x356   : > { %v3874_v63 = vcombine.low %v3866_v56, %v3873_v58  ;;  %v3882_v56 = vor.u32 %v3881_v45, %v3880_v43  ;;  %v12524_v43 = vld [vmem:[%s13429_s26 + $0x788] ss:$24 sps:$4 sm:$0xff]  }
 0x357   : > { %v12527_v45 = vld [vmem:[%s13429_s26 + $0x790] ss:$24 sps:$4 sm:$0xff]  }
 0x358   : > { %v3876_v0 = vadd.f32 %v3874_v63, %v3414_v57  ;;  %6102 = vmatpush1.bf16.msra.mxu0 %v12422_v59  ;;  %6143 = vmatpush1.bf16.msra.mxu1 %v12425_v60  ;;  %v14332_v57 = vrot.slane %v14034_v55, 2  ;;  %v12476_v59 = vld [vmem:[%s13429_s26 + $0x610] ss:$24 sps:$4 sm:$0xff]   ;;  %v12479_v60 = vld [vmem:[%s13429_s26 + $0x780] ss:$24 sps:$4 sm:$0xff]  }
 0x359   : > { %6514 = vmatprep.subr.bf16.mxu0 %v12430_v61  ;;  %6555 = vmatprep.subr.bf16.mxu1 %v12433_v62  ;;  %v12484_v61 = vld [vmem:[%s13429_s26 + $0x644] ss:$24 sps:$4 sm:$0xff]   ;;  %v12487_v62 = vld [vmem:[%s13429_s26 + $0x7b4] ss:$24 sps:$4 sm:$0xff]  }
 0x35a   : > { %3877 = vst.msk [vmem:[#allocation2 + $0x6] ss:$8 sm:$0xf] %vm13828_vm1, %v3876_v0  ;;  %3878 = vst.msk [vmem:[#allocation2 + $0x6] ss:$8 sm:$0x30] %vm13828_vm1, %v3876_v0 }
 0x35b   : > { %6120 = vmatmul.mubr.bf16.vlgmr.msra.gmra.mrb[68].mxu0 %v14233_v18  ;;  %6161 = vmatmul.mubr.bf16.vlgmr.msra.gmra.mrb[68].mxu1 %v14233_v18  ;;  %v12440_v18 = vld [vmem:[%s13429_s26 + $0x660] ss:$24 sps:$4 sm:$0xff]  }
 0x35c   : > { %6515 = vmatpush1.bf16.msra.mxu0 %v12428_v1  ;;  %6556 = vmatpush1.bf16.msra.mxu1 %v12431_v4  ;;  %v12482_v0 = vld [vmem:[%s13429_s26 + $0x640] ss:$24 sps:$4 sm:$0xff]   ;;  %v12485_v1 = vld [vmem:[%s13429_s26 + $0x7b0] ss:$24 sps:$4 sm:$0xff]   ;;  %v12490_v4 = vld [vmem:[%s13429_s26 + $0x674] ss:$24 sps:$4 sm:$0xff]  }
 0x35d   : > { %6516 = vmatprep.subr.bf16.mxu0 %v12436_v8  ;;  %6557 = vmatprep.subr.bf16.mxu1 %v12439_v9  ;;  %v12493_v8 = vld [vmem:[%s13429_s26 + $0x7e4] ss:$24 sps:$4 sm:$0xff]   ;;  %v12488_v9 = vld [vmem:[%s13429_s26 + $0x670] ss:$24 sps:$4 sm:$0xff]  }
 0x35e   : > { %6546 = vmatprep.mubr.bf16.mxu0 %v13055_v3  ;;  %6587 = vmatprep.mubr.bf16.mxu1 %v13055_v3 }
 0x360   : > { %6517 = vmatpush1.bf16.msra.mxu0 %v12434_v10  ;;  %6558 = vmatpush1.bf16.msra.mxu1 %v12437_v14  ;;  %v12491_v10 = vld [vmem:[%s13429_s26 + $0x7e0] ss:$24 sps:$4 sm:$0xff]   ;;  %v12496_v14 = vld [vmem:[%s13429_s26 + $0x6a4] ss:$24 sps:$4 sm:$0xff]  }
 0x361   : > { %6518 = vmatprep.subr.bf16.mxu0 %v12442_v16  ;;  %6559 = vmatprep.subr.bf16.mxu1 %v12445_v17  ;;  %v12499_v16 = vld [vmem:[%s13429_s26 + $0x814] ss:$24 sps:$4 sm:$0xff]   ;;  %v12494_v17 = vld [vmem:[%s13429_s26 + $0x6a0] ss:$24 sps:$4 sm:$0xff]  }
 0x364   : > { %6519 = vmatpush1.bf16.msra.mxu0 %v12440_v18  ;;  %6560 = vmatpush1.bf16.msra.mxu1 %v12443_v20  ;;  %v12497_v18 = vld [vmem:[%s13429_s26 + $0x810] ss:$24 sps:$4 sm:$0xff]   ;;  %v12502_v20 = vld [vmem:[%s13429_s26 + $0x6d4] ss:$24 sps:$4 sm:$0xff]  }
 0x365   : > { %6520 = vmatprep.subr.bf16.mxu0 %v12448_v7  ;;  %6561 = vmatprep.subr.bf16.mxu1 %v12451_v21  ;;  %v12505_v7 = vld [vmem:[%s13429_s26 + $0x844] ss:$24 sps:$4 sm:$0xff]   ;;  %v12500_v21 = vld [vmem:[%s13429_s26 + $0x6d0] ss:$24 sps:$4 sm:$0xff]  }
 0x368   : > { %6521 = vmatpush1.bf16.msra.mxu0 %v12446_v22  ;;  %6562 = vmatpush1.bf16.msra.mxu1 %v12449_v23  ;;  %v12503_v22 = vld [vmem:[%s13429_s26 + $0x840] ss:$24 sps:$4 sm:$0xff]   ;;  %v12508_v23 = vld [vmem:[%s13429_s26 + $0x704] ss:$24 sps:$4 sm:$0xff]  }
 0x369   : > { %6522 = vmatprep.subr.bf16.mxu0 %v12454_v2  ;;  %6563 = vmatprep.subr.bf16.mxu1 %v12457_v6  ;;  %v12511_v2 = vld [vmem:[%s13429_s26 + $0x874] ss:$24 sps:$4 sm:$0xff]   ;;  %v12506_v6 = vld [vmem:[%s13429_s26 + $0x700] ss:$24 sps:$4 sm:$0xff]  }
 0x36c   : > { %6523 = vmatpush1.bf16.msra.mxu0 %v12452_v12  ;;  %6564 = vmatpush1.bf16.msra.mxu1 %v12455_v15  ;;  %v12509_v12 = vld [vmem:[%s13429_s26 + $0x870] ss:$24 sps:$4 sm:$0xff]   ;;  %v12514_v15 = vld [vmem:[%s13429_s26 + $0x734] ss:$24 sps:$4 sm:$0xff]  }
 0x36d   : > { %6524 = vmatprep.subr.bf16.mxu0 %v12460_v11  ;;  %6565 = vmatprep.subr.bf16.mxu1 %v12463_v13  ;;  %v12517_v11 = vld [vmem:[%s13429_s26 + $0x8a4] ss:$24 sps:$4 sm:$0xff]  }
 0x36e   : > { %v4249_v28 = vpop.f32.mrb[44].mxu0  ;;  %v4290_v29 = vpop.f32.mrb[44].mxu1 }
 0x36f   : > { %v4251_v31 = vpop.f32.mrb[45].mxu0  ;;  %v4292_v37 = vpop.f32.mrb[45].mxu1 }
 0x370   : > { %v4304_v32 = vcombine.low %v4249_v28, %v4251_v31  ;;  %v4305_v33 = vcombine.low %v4290_v29, %v4292_v37  ;;  %v4253_v34 = vpop.f32.mrb[46].mxu0  ;;  %v4294_v35 = vpop.f32.mrb[46].mxu1  ;;  %6525 = vmatpush1.bf16.msra.mxu0 %v12458_v24  ;;  %6566 = vmatpush1.bf16.msra.mxu1 %v12461_v25  ;;  %v12512_v37 = vld [vmem:[%s13429_s26 + $0x730] ss:$24 sps:$4 sm:$0xff]  }
 0x371   : > { %v4254_v41 = vpop.f32.mrb[47].mxu0  ;;  %v4295_v40 = vpop.f32.mrb[47].mxu1  ;;  %6526 = vmatprep.subr.bf16.mxu0 %v12466_v26  ;;  %6567 = vmatprep.subr.bf16.mxu1 %v12469_v27  ;;  %v12520_v35 = vld [vmem:[%s13429_s26 + $0x764] ss:$24 sps:$4 sm:$0xff]  }
 0x372   : > { %v4319_v50 = vrot.slane %v4304_v32, %v13758_v19  ;;  %v4326_v5 = vrot.slane %v4305_v33, %v13758_v19  ;;  %v12515_v32 = vld [vmem:[%s13429_s26 + $0x8a0] ss:$24 sps:$4 sm:$0xff]  }
 0x374   : > { %v4327_v51 = vcombine.low %v4312_v49, %v4319_v50  ;;  %v4341_v52 = vrot.slane %v4326_v5, %v13758_v19  ;;  %6527 = vmatpush1.bf16.msra.mxu0 %v12464_v36  ;;  %6568 = vmatpush1.bf16.msra.mxu1 %v12467_v38  ;;  %v12523_v36 = vld [vmem:[%s13429_s26 + $0x8d4] ss:$24 sps:$4 sm:$0xff]   ;;  %v14383_v5 = vrot.slane %v14085_v44, 2 }
 0x375   : > { %6528 = vmatprep.subr.bf16.mxu0 %v12472_v42  ;;  %6569 = vmatprep.subr.bf16.mxu1 %v12475_v47  ;;  %v12518_v42 = vld [vmem:[%s13429_s26 + $0x760] ss:$24 sps:$4 sm:$0xff]   ;;  %v12521_v47 = vld [vmem:[%s13429_s26 + $0x8d0] ss:$24 sps:$4 sm:$0xff]   ;;  %v12526_v49 = vld [vmem:[%s13429_s26 + $0x78c] ss:$24 sps:$4 sm:$0xff]  }
 0x376   : > { %v4334_v48 = vrot.slane %v4327_v51, %v13758_v19  ;;  %v12529_v50 = vld [vmem:[%s13429_s26 + $0x794] ss:$24 sps:$4 sm:$0xff]  }
 0x377   : > { %v12532_v51 = vld [vmem:[%s13429_s26 + $0x7bc] ss:$24 sps:$4 sm:$0xff]  }
 0x378   : > { %v4342_v58 = vcombine.low %v4334_v48, %v4341_v52  ;;  %6529 = vmatpush1.bf16.msra.mxu0 %v12470_v53  ;;  %6570 = vmatpush1.bf16.msra.mxu1 %v12473_v54  ;;  %v12535_v52 = vld [vmem:[%s13429_s26 + $0x7c4] ss:$24 sps:$4 sm:$0xff]   ;;  %v12530_v53 = vld [vmem:[%s13429_s26 + $0x7b8] ss:$24 sps:$4 sm:$0xff]   ;;  %v12536_v48 = vld [vmem:[%s13429_s26 + $0x7e8] ss:$24 sps:$4 sm:$0xff]  }
 0x379   : > { %6596 = vmatprep.subr.bf16.mxu0 %v12478_v39  ;;  %6982 = vmatprep.subr.bf16.mxu1 %v12481_v46  ;;  %v12533_v54 = vld [vmem:[%s13429_s26 + $0x7c0] ss:$24 sps:$4 sm:$0xff]   ;;  %v12538_v39 = vld [vmem:[%s13429_s26 + $0x7ec] ss:$24 sps:$4 sm:$0xff]  }
 0x37a   : > { %v4344_v63 = vadd.f32 %v4342_v58, %v3882_v56  ;;  %v12541_v46 = vld [vmem:[%s13429_s26 + $0x7f4] ss:$24 sps:$4 sm:$0xff]   ;;  %v12539_v56 = vld [vmem:[%s13429_s26 + $0x7f0] ss:$24 sps:$4 sm:$0xff]   ;;  %v12547_v58 = vld [vmem:[%s13429_s26 + $0x824] ss:$24 sps:$4 sm:$0xff]  }
 0x37b   : > { %6547 = vmatmul.mubr.bf16.vlgmr.msra.gmra.mrb[72].mxu0 %v14332_v57  ;;  %6588 = vmatmul.mubr.bf16.vlgmr.msra.gmra.mrb[72].mxu1 %v14332_v57 }
 0x37c   : > { %4345 = vst.msk [vmem:[#allocation2 + $0x7] ss:$8 sm:$0xf] %vm13828_vm1, %v4344_v63  ;;  %4346 = vst.msk [vmem:[#allocation2 + $0x7] ss:$8 sm:$0x30] %vm13828_vm1, %v4344_v63  ;;  %6597 = vmatpush1.bf16.msra.mxu0 %v12476_v59  ;;  %6983 = vmatpush1.bf16.msra.mxu1 %v12479_v60 }
 0x37d   : > { %6598 = vmatprep.subr.bf16.mxu0 %v12484_v61  ;;  %6984 = vmatprep.subr.bf16.mxu1 %v12487_v62  ;;  %v12542_v59 = vld [vmem:[%s13429_s26 + $0x818] ss:$24 sps:$4 sm:$0xff]   ;;  %v12550_v61 = vld [vmem:[%s13429_s26 + $0x84c] ss:$24 sps:$4 sm:$0xff]   ;;  %v12548_v63 = vld [vmem:[%s13429_s26 + $0x848] ss:$24 sps:$4 sm:$0xff]  }
 0x37e   : > { %6628 = vmatprep.mubr.bf16.mxu0 %v13055_v3  ;;  %7014 = vmatprep.mubr.bf16.mxu1 %v13055_v3  ;;  %v12545_v60 = vld [vmem:[%s13429_s26 + $0x820] ss:$24 sps:$4 sm:$0xff]   ;;  %v12553_v62 = vld [vmem:[%s13429_s26 + $0x854] ss:$24 sps:$4 sm:$0xff]  }
 0x380   : > { %6599 = vmatpush1.bf16.msra.mxu0 %v12482_v0  ;;  %6985 = vmatpush1.bf16.msra.mxu1 %v12485_v1  ;;  %v12551_v0 = vld [vmem:[%s13429_s26 + $0x850] ss:$24 sps:$4 sm:$0xff]   ;;  %v12556_v1 = vld [vmem:[%s13429_s26 + $0x87c] ss:$24 sps:$4 sm:$0xff]  }
 0x381   : > { %6600 = vmatprep.subr.bf16.mxu0 %v12490_v4  ;;  %6986 = vmatprep.subr.bf16.mxu1 %v12493_v8  ;;  %v12559_v4 = vld [vmem:[%s13429_s26 + $0x884] ss:$24 sps:$4 sm:$0xff]   ;;  %v12554_v8 = vld [vmem:[%s13429_s26 + $0x878] ss:$24 sps:$4 sm:$0xff]  }
 0x384   : > { %6601 = vmatpush1.bf16.msra.mxu0 %v12488_v9  ;;  %6987 = vmatpush1.bf16.msra.mxu1 %v12491_v10  ;;  %v12557_v9 = vld [vmem:[%s13429_s26 + $0x880] ss:$24 sps:$4 sm:$0xff]   ;;  %v12562_v10 = vld [vmem:[%s13429_s26 + $0x8ac] ss:$24 sps:$4 sm:$0xff]  }
 0x385   : > { %6602 = vmatprep.subr.bf16.mxu0 %v12496_v14  ;;  %6988 = vmatprep.subr.bf16.mxu1 %v12499_v16  ;;  %v12565_v14 = vld [vmem:[%s13429_s26 + $0x8b4] ss:$24 sps:$4 sm:$0xff]  }
 0x388   : > { %6603 = vmatpush1.bf16.msra.mxu0 %v12494_v17  ;;  %6989 = vmatpush1.bf16.msra.mxu1 %v12497_v18  ;;  %v4348_v18 = vld [vmem:[#allocation3] ss:$8 sm:$0xf] }
 0x389   : > { %6604 = vmatprep.subr.bf16.mxu0 %v12502_v20  ;;  %6990 = vmatprep.subr.bf16.mxu1 %v12505_v7  ;;  %v4349_v20 = vld [vmem:[#allocation3] ss:$8 sm:$0x30] }
 0x38c   : > { %6605 = vmatpush1.bf16.msra.mxu0 %v12500_v21  ;;  %6991 = vmatpush1.bf16.msra.mxu1 %v12503_v22 }
 0x38d   : > { %6606 = vmatprep.subr.bf16.mxu0 %v12508_v23  ;;  %6992 = vmatprep.subr.bf16.mxu1 %v12511_v2 }
 0x38e   : > { %v4673_v13 = vpop.f32.mrb[48].mxu0  ;;  %v4714_v24 = vpop.f32.mrb[48].mxu1 }
 0x38f   : > { %v4675_v25 = vpop.f32.mrb[49].mxu0  ;;  %v4716_v26 = vpop.f32.mrb[49].mxu1 }
 0x390   : > { %v4768_v27 = vcombine.low %v4673_v13, %v4675_v25  ;;  %v4769_v28 = vcombine.low %v4714_v24, %v4716_v26  ;;  %v4677_v29 = vpop.f32.mrb[50].mxu0  ;;  %v4718_v31 = vpop.f32.mrb[50].mxu1  ;;  %6607 = vmatpush1.bf16.msra.mxu0 %v12506_v6  ;;  %6993 = vmatpush1.bf16.msra.mxu1 %v12509_v12  ;;  %v12560_v12 = vld [vmem:[%s13429_s26 + $0x8a8] ss:$24 sps:$4 sm:$0xff]   ;;  %v12568_v24 = vld [vmem:[%s13429_s26 + $0x8dc] ss:$24 sps:$4 sm:$0xff]  }
 0x391   : > { %v4678_v33 = vpop.f32.mrb[51].mxu0  ;;  %v4719_v34 = vpop.f32.mrb[51].mxu1  ;;  %6608 = vmatprep.subr.bf16.mxu0 %v12514_v15  ;;  %6994 = vmatprep.subr.bf16.mxu1 %v12517_v11  ;;  %v12563_v15 = vld [vmem:[%s13429_s26 + $0x8b0] ss:$24 sps:$4 sm:$0xff]   ;;  %v12571_v25 = vld [vmem:[%s13429_s26 + $0x8e4] ss:$24 sps:$4 sm:$0xff]  }
 0x392   : > { %v14371_v38 = vrot.slane %v4768_v27, %v13758_v19  ;;  %v14374_v41 = vrot.slane %v4769_v28, %v13758_v19  ;;  %v4350_v28 = vor.u32 %v4349_v20, %v4348_v18  ;;  %v12566_v31 = vld [vmem:[%s13429_s26 + $0x8d8] ss:$24 sps:$4 sm:$0xff]   ;;  %v12577_v33 = vld [vmem:[%s13429_s26 + $0x90c] ss:$24 sps:$4 sm:$0xff]  }
 0x394   : > { %v4792_v40 = vcombine.low %v14371_v38, %v14374_v41  ;;  %6609 = vmatpush1.bf16.msra.mxu0 %v12512_v37  ;;  %6995 = vmatpush1.bf16.msra.mxu1 %v12515_v32  ;;  %v12569_v37 = vld [vmem:[%s13429_s26 + $0x8e0] ss:$24 sps:$4 sm:$0xff]   ;;  %v12574_v32 = vld [vmem:[%s13429_s26 + $0x904] ss:$24 sps:$4 sm:$0xff]   ;;  %v12580_v41 = vld [vmem:[%s13429_s26 + $0x934] ss:$24 sps:$4 sm:$0xff]  }
 0x395   : > { %6610 = vmatprep.subr.bf16.mxu0 %v12520_v35  ;;  %6996 = vmatprep.subr.bf16.mxu1 %v12523_v36  ;;  %v12572_v36 = vld [vmem:[%s13429_s26 + $0x900] ss:$24 sps:$4 sm:$0xff]  }
 0x396   : > { %v4799_v27 = vrot.slane %v4792_v40, %v13758_v19  ;;  %v12575_v38 = vld [vmem:[%s13429_s26 + $0x908] ss:$24 sps:$4 sm:$0xff]   ;;  %v12583_v40 = vld [vmem:[%s13429_s26 + $0x93c] ss:$24 sps:$4 sm:$0xff]  }
 0x398   : > { %6611 = vmatpush1.bf16.msra.mxu0 %v12518_v42  ;;  %6997 = vmatpush1.bf16.msra.mxu1 %v12521_v47  ;;  %v12578_v42 = vld [vmem:[%s13429_s26 + $0x930] ss:$24 sps:$4 sm:$0xff]  }
 0x399   : > { %7023 = vmatprep.subr.bf16.mxu0 %v12526_v49  ;;  %7064 = vmatprep.subr.bf16.mxu1 %v12529_v50  ;;  %v12581_v47 = vld [vmem:[%s13429_s26 + $0x938] ss:$24 sps:$4 sm:$0xff]   ;;  %v12586_v49 = vld [vmem:[%s13429_s26 + $0x964] ss:$24 sps:$4 sm:$0xff]  }
 0x39a   : > { %v12589_v50 = vld [vmem:[%s13429_s26 + $0x96c] ss:$24 sps:$4 sm:$0xff]  }
 0x39b   : > { %6629 = vmatmul.mubr.bf16.vlgmr.msra.gmra.mrb[76].mxu0 %v14332_v57  ;;  %7015 = vmatmul.mubr.bf16.vlgmr.msra.gmra.mrb[76].mxu1 %v14383_v5  ;;  %v12544_v57 = vld [vmem:[%s13429_s26 + $0x81c] ss:$24 sps:$4 sm:$0xff]  }
 0x39c   : > { %7024 = vmatpush1.bf16.msra.mxu0 %v12524_v43  ;;  %7065 = vmatpush1.bf16.msra.mxu1 %v12527_v45  ;;  %v12587_v43 = vld [vmem:[%s13429_s26 + $0x968] ss:$24 sps:$4 sm:$0xff]   ;;  %v12592_v45 = vld [vmem:[%s13429_s26 + $0x994] ss:$24 sps:$4 sm:$0xff]  }
 0x39d   : > { %7025 = vmatprep.subr.bf16.mxu0 %v12532_v51  ;;  %7066 = vmatprep.subr.bf16.mxu1 %v12535_v52  ;;  %v12595_v51 = vld [vmem:[%s13429_s26 + $0x99c] ss:$24 sps:$4 sm:$0xff]   ;;  %v12590_v52 = vld [vmem:[%s13429_s26 + $0x990] ss:$24 sps:$4 sm:$0xff]  }
 0x39e   : > { %7055 = vmatprep.mubr.bf16.mxu0 %v13055_v3  ;;  %7096 = vmatprep.mubr.bf16.mxu1 %v13055_v3 }
 0x3a0   : > { %7026 = vmatpush1.bf16.msra.mxu0 %v12530_v53  ;;  %7067 = vmatpush1.bf16.msra.mxu1 %v12533_v54  ;;  %v12593_v53 = vld [vmem:[%s13429_s26 + $0x998] ss:$24 sps:$4 sm:$0xff]   ;;  %v12598_v54 = vld [vmem:[%s13429_s26 + $0x9c4] ss:$24 sps:$4 sm:$0xff]  }
 0x3a1   : > { %7027 = vmatprep.subr.bf16.mxu0 %v12538_v39  ;;  %7068 = vmatprep.subr.bf16.mxu1 %v12541_v46  ;;  %v12601_v39 = vld [vmem:[%s13429_s26 + $0x9cc] ss:$24 sps:$4 sm:$0xff]   ;;  %v12596_v46 = vld [vmem:[%s13429_s26 + $0x9c0] ss:$24 sps:$4 sm:$0xff]  }
 0x3a4   : > { %7028 = vmatpush1.bf16.msra.mxu0 %v12536_v48  ;;  %7069 = vmatpush1.bf16.msra.mxu1 %v12539_v56  ;;  %v12599_v48 = vld [vmem:[%s13429_s26 + $0x9c8] ss:$24 sps:$4 sm:$0xff]   ;;  %v12604_v56 = vld [vmem:[%s13429_s26 + $0x9f4] ss:$24 sps:$4 sm:$0xff]  }
 0x3a5   : > { %7029 = vmatprep.subr.bf16.mxu0 %v12544_v57  ;;  %7070 = vmatprep.subr.bf16.mxu1 %v12547_v58  ;;  %v12607_v57 = vld [vmem:[%s13429_s26 + $0x9fc] ss:$24 sps:$4 sm:$0xff]   ;;  %v12602_v58 = vld [vmem:[%s13429_s26 + $0x9f0] ss:$24 sps:$4 sm:$0xff]  }
 0x3a8   : > { %7030 = vmatpush1.bf16.msra.mxu0 %v12542_v59  ;;  %7071 = vmatpush1.bf16.msra.mxu1 %v12545_v60  ;;  %v12605_v59 = vld [vmem:[%s13429_s26 + $0x9f8] ss:$24 sps:$4 sm:$0xff]   ;;  %v12610_v60 = vld [vmem:[%s13429_s26 + $0xa24] ss:$24 sps:$4 sm:$0xff]  }
 0x3a9   : > { %7031 = vmatprep.subr.bf16.mxu0 %v12550_v61  ;;  %7072 = vmatprep.subr.bf16.mxu1 %v12553_v62  ;;  %v12613_v61 = vld [vmem:[%s13429_s26 + $0xa2c] ss:$24 sps:$4 sm:$0xff]  }
 0x3ac   : > { %7032 = vmatpush1.bf16.msra.mxu0 %v12548_v63  ;;  %7073 = vmatpush1.bf16.msra.mxu1 %v12551_v0 }
 0x3ad   : > { %7033 = vmatprep.subr.bf16.mxu0 %v12556_v1  ;;  %7074 = vmatprep.subr.bf16.mxu1 %v12559_v4 }
 0x3ae   : > { %v4755_v16 = vpop.f32.mrb[52].mxu0  ;;  %v14413_v17 = vpop.f32.mrb[52].mxu1 }
 0x3af   : > { %v4757_v7 = vpop.f32.mrb[53].mxu0  ;;  %v14415_v21 = vpop.f32.mrb[53].mxu1 }
 0x3b0   : > { %v4770_v22 = vcombine.low %v4755_v16, %v4757_v7  ;;  %v5238_v23 = vcombine.low %v14413_v17, %v14415_v21  ;;  %v4759_v2 = vpop.f32.mrb[54].mxu0  ;;  %v5147_v6 = vpop.f32.mrb[54].mxu1  ;;  %7034 = vmatpush1.bf16.msra.mxu0 %v12554_v8  ;;  %7075 = vmatpush1.bf16.msra.mxu1 %v12557_v9  ;;  %v12611_v16 = vld [vmem:[%s13429_s26 + $0xa28] ss:$24 sps:$4 sm:$0xff]   ;;  %v12616_v7 = vld [vmem:[%s13429_s26 + $0xa54] ss:$24 sps:$4 sm:$0xff]  }
 0x3b1   : > { %v4760_v11 = vpop.f32.mrb[55].mxu0  ;;  %v5148_v13 = vpop.f32.mrb[55].mxu1  ;;  %7035 = vmatprep.subr.bf16.mxu0 %v12562_v10  ;;  %7076 = vmatprep.subr.bf16.mxu1 %v12565_v14  ;;  %v12608_v14 = vld [vmem:[%s13429_s26 + $0xa20] ss:$24 sps:$4 sm:$0xff]   ;;  %v12622_v17 = vld [vmem:[%s13429_s26 + $0x914] ss:$24 sps:$4 sm:$0xff]  }
 0x3b2   : > { %v4791_v26 = vrot.slane %v4770_v22, %v13758_v19  ;;  %v12619_v22 = vld [vmem:[%s13429_s26 + $0xa5c] ss:$24 sps:$4 sm:$0xff]   ;;  %v5247_v2 = vrot.slane %v5238_v23, %v13758_v19  ;;  %v4814_v11 = vld [vmem:[#allocation3 + $0x1] ss:$8 sm:$0x30] }
 0x3b3   : > { %v12625_v21 = vld [vmem:[%s13429_s26 + $0xa84] ss:$24 sps:$4 sm:$0xff]  }
 0x3b4   : > { %v4806_v29 = vrot.slane %v4791_v26, %v13758_v19  ;;  %7036 = vmatpush1.bf16.msra.mxu0 %v12560_v12  ;;  %7077 = vmatpush1.bf16.msra.mxu1 %v12563_v15  ;;  %v4813_v15 = vld [vmem:[#allocation3 + $0x1] ss:$8 sm:$0xf] }
 0x3b5   : > { %7037 = vmatprep.subr.bf16.mxu0 %v12568_v24  ;;  %7078 = vmatprep.subr.bf16.mxu1 %v12571_v25  ;;  %v12614_v25 = vld [vmem:[%s13429_s26 + $0xa50] ss:$24 sps:$4 sm:$0xff]  }
 0x3b6   : > { %v4807_v34 = vcombine.low %v4799_v27, %v4806_v29  ;;  %v12617_v26 = vld [vmem:[%s13429_s26 + $0xa58] ss:$24 sps:$4 sm:$0xff]   ;;  %v4815_v27 = vor.u32 %v4814_v11, %v4813_v15  ;;  %v12676_v11 = vld [vmem:[%s13429_s26 + $0xabc] ss:$24 sps:$4 sm:$0xff]  }
 0x3b7   : > { %v12671_v15 = vld [vmem:[%s13429_s26 + $0xa90] ss:$24 sps:$4 sm:$0xff]  }
 0x3b8   : > { %v4809_v35 = vadd.f32 %v4807_v34, %v4350_v28  ;;  %7038 = vmatpush1.bf16.msra.mxu0 %v12566_v31  ;;  %7079 = vmatpush1.bf16.msra.mxu1 %v12569_v37  ;;  %v14482_v28 = vrot.slane %v14034_v55, 3  ;;  %v12620_v31 = vld [vmem:[%s13429_s26 + $0x910] ss:$24 sps:$4 sm:$0xff]   ;;  %v12623_v37 = vld [vmem:[%s13429_s26 + $0xa80] ss:$24 sps:$4 sm:$0xff]  }
 0x3b9   : > { %7450 = vmatprep.subr.bf16.mxu0 %v12574_v32  ;;  %7491 = vmatprep.subr.bf16.mxu1 %v12577_v33  ;;  %v12628_v32 = vld [vmem:[%s13429_s26 + $0x944] ss:$24 sps:$4 sm:$0xff]   ;;  %v12631_v33 = vld [vmem:[%s13429_s26 + $0xab4] ss:$24 sps:$4 sm:$0xff]   ;;  %v12626_v55 = vld [vmem:[%s13429_s26 + $0x940] ss:$24 sps:$4 sm:$0xff]  }
 0x3ba   : > { %4810 = vst.msk [vmem:[#allocation3] ss:$8 sm:$0xf] %vm13828_vm1, %v4809_v35  ;;  %4811 = vst.msk [vmem:[#allocation3] ss:$8 sm:$0x30] %vm13828_vm1, %v4809_v35 }
 0x3bb   : > { %7056 = vmatmul.mubr.bf16.vlgmr.msra.gmra.mrb[80].mxu0 %v14383_v5  ;;  %7097 = vmatmul.mubr.bf16.vlgmr.msra.gmra.mrb[80].mxu1 %v14383_v5  ;;  %v12584_v5 = vld [vmem:[%s13429_s26 + $0x960] ss:$24 sps:$4 sm:$0xff]   ;;  %v12629_v35 = vld [vmem:[%s13429_s26 + $0xab0] ss:$24 sps:$4 sm:$0xff]  }
 0x3bc   : > { %7451 = vmatpush1.bf16.msra.mxu0 %v12572_v36  ;;  %7492 = vmatpush1.bf16.msra.mxu1 %v12575_v38  ;;  %v12634_v36 = vld [vmem:[%s13429_s26 + $0x974] ss:$24 sps:$4 sm:$0xff]   ;;  %v12637_v38 = vld [vmem:[%s13429_s26 + $0xae4] ss:$24 sps:$4 sm:$0xff]  }
 0x3bd   : > { %7452 = vmatprep.subr.bf16.mxu0 %v12580_v41  ;;  %7493 = vmatprep.subr.bf16.mxu1 %v12583_v40  ;;  %v12632_v41 = vld [vmem:[%s13429_s26 + $0x970] ss:$24 sps:$4 sm:$0xff]   ;;  %v12635_v40 = vld [vmem:[%s13429_s26 + $0xae0] ss:$24 sps:$4 sm:$0xff]  }
 0x3be   : > { %7482 = vmatprep.mubr.bf16.mxu0 %v13055_v3  ;;  %7523 = vmatprep.mubr.bf16.mxu1 %v13055_v3 }
 0x3c0   : > { %7453 = vmatpush1.bf16.msra.mxu0 %v12578_v42  ;;  %7494 = vmatpush1.bf16.msra.mxu1 %v12581_v47  ;;  %v12640_v42 = vld [vmem:[%s13429_s26 + $0x9a4] ss:$24 sps:$4 sm:$0xff]   ;;  %v12643_v47 = vld [vmem:[%s13429_s26 + $0xb14] ss:$24 sps:$4 sm:$0xff]  }
 0x3c1   : > { %7454 = vmatprep.subr.bf16.mxu0 %v12586_v49  ;;  %7495 = vmatprep.subr.bf16.mxu1 %v12589_v50  ;;  %v12638_v49 = vld [vmem:[%s13429_s26 + $0x9a0] ss:$24 sps:$4 sm:$0xff]   ;;  %v12641_v50 = vld [vmem:[%s13429_s26 + $0xb10] ss:$24 sps:$4 sm:$0xff]  }
 0x3c4   : > { %7455 = vmatpush1.bf16.msra.mxu0 %v12584_v5  ;;  %7496 = vmatpush1.bf16.msra.mxu1 %v12587_v43  ;;  %v12646_v5 = vld [vmem:[%s13429_s26 + $0x9d4] ss:$24 sps:$4 sm:$0xff]   ;;  %v12649_v43 = vld [vmem:[%s13429_s26 + $0xb44] ss:$24 sps:$4 sm:$0xff]  }
 0x3c5   : > { %7456 = vmatprep.subr.bf16.mxu0 %v12592_v45  ;;  %7497 = vmatprep.subr.bf16.mxu1 %v12595_v51  ;;  %v12644_v45 = vld [vmem:[%s13429_s26 + $0x9d0] ss:$24 sps:$4 sm:$0xff]   ;;  %v12647_v51 = vld [vmem:[%s13429_s26 + $0xb40] ss:$24 sps:$4 sm:$0xff]  }
 0x3c8   : > { %7457 = vmatpush1.bf16.msra.mxu0 %v12590_v52  ;;  %7498 = vmatpush1.bf16.msra.mxu1 %v12593_v53  ;;  %v12652_v52 = vld [vmem:[%s13429_s26 + $0xa04] ss:$24 sps:$4 sm:$0xff]   ;;  %v12655_v53 = vld [vmem:[%s13429_s26 + $0xb74] ss:$24 sps:$4 sm:$0xff]  }
 0x3c9   : > { %7458 = vmatprep.subr.bf16.mxu0 %v12598_v54  ;;  %7499 = vmatprep.subr.bf16.mxu1 %v12601_v39  ;;  %v12650_v54 = vld [vmem:[%s13429_s26 + $0xa00] ss:$24 sps:$4 sm:$0xff]   ;;  %v12653_v39 = vld [vmem:[%s13429_s26 + $0xb70] ss:$24 sps:$4 sm:$0xff]  }
 0x3cc   : > { %7459 = vmatpush1.bf16.msra.mxu0 %v12596_v46  ;;  %7500 = vmatpush1.bf16.msra.mxu1 %v12599_v48  ;;  %v12658_v46 = vld [vmem:[%s13429_s26 + $0xa34] ss:$24 sps:$4 sm:$0xff]   ;;  %v12661_v48 = vld [vmem:[%s13429_s26 + $0xba4] ss:$24 sps:$4 sm:$0xff]  }
 0x3cd   : > { %7460 = vmatprep.subr.bf16.mxu0 %v12604_v56  ;;  %7501 = vmatprep.subr.bf16.mxu1 %v12607_v57 }
 0x3ce   : > { %v5184_v62 = vpop.f32.mrb[56].mxu0  ;;  %v5225_v63 = vpop.f32.mrb[56].mxu1 }
 0x3cf   : > { %v5186_v0 = vpop.f32.mrb[57].mxu0  ;;  %v5227_v1 = vpop.f32.mrb[57].mxu1 }
 0x3d0   : > { %v5239_v4 = vcombine.low %v5184_v62, %v5186_v0  ;;  %v5240_v8 = vcombine.low %v5225_v63, %v5227_v1  ;;  %v5188_v9 = vpop.f32.mrb[58].mxu0  ;;  %v5229_v10 = vpop.f32.mrb[58].mxu1  ;;  %7461 = vmatpush1.bf16.msra.mxu0 %v12602_v58  ;;  %7502 = vmatpush1.bf16.msra.mxu1 %v12605_v59  ;;  %v12656_v0 = vld [vmem:[%s13429_s26 + $0xa30] ss:$24 sps:$4 sm:$0xff]   ;;  %v12659_v1 = vld [vmem:[%s13429_s26 + $0xba0] ss:$24 sps:$4 sm:$0xff]  }
 0x3d1   : > { %v5189_v18 = vpop.f32.mrb[59].mxu0  ;;  %v5230_v20 = vpop.f32.mrb[59].mxu1  ;;  %7462 = vmatprep.subr.bf16.mxu0 %v12610_v60  ;;  %7503 = vmatprep.subr.bf16.mxu1 %v12613_v61  ;;  %v12664_v9 = vld [vmem:[%s13429_s26 + $0xa64] ss:$24 sps:$4 sm:$0xff]   ;;  %v12667_v10 = vld [vmem:[%s13429_s26 + $0xbd4] ss:$24 sps:$4 sm:$0xff]  }
 0x3d2   : > { %v5254_v6 = vrot.slane %v5239_v4, %v13758_v19  ;;  %v5261_v12 = vrot.slane %v5240_v8, %v13758_v19  ;;  %v12662_v20 = vld [vmem:[%s13429_s26 + $0xa60] ss:$24 sps:$4 sm:$0xff]  }
 0x3d4   : > { %v5262_v13 = vcombine.low %v5247_v2, %v5254_v6  ;;  %v5276_v24 = vrot.slane %v5261_v12, %v13758_v19  ;;  %7463 = vmatpush1.bf16.msra.mxu0 %v12608_v14  ;;  %7504 = vmatpush1.bf16.msra.mxu1 %v12611_v16  ;;  %v12673_v2 = vld [vmem:[%s13429_s26 + $0xa94] ss:$24 sps:$4 sm:$0xff]   ;;  %v14533_v6 = vrot.slane %v14085_v44, 3  ;;  %v12668_v12 = vld [vmem:[%s13429_s26 + $0xa88] ss:$24 sps:$4 sm:$0xff]  }
 0x3d5   : > { %7464 = vmatprep.subr.bf16.mxu0 %v12616_v7  ;;  %7505 = vmatprep.subr.bf16.mxu1 %v12619_v22  ;;  %v12665_v7 = vld [vmem:[%s13429_s26 + $0xbd0] ss:$24 sps:$4 sm:$0xff]   ;;  %v12670_v22 = vld [vmem:[%s13429_s26 + $0xa8c] ss:$24 sps:$4 sm:$0xff]  }
 0x3d6   : > { %v5269_v23 = vrot.slane %v5262_v13, %v13758_v19  ;;  %v12679_v13 = vld [vmem:[%s13429_s26 + $0xac4] ss:$24 sps:$4 sm:$0xff]   ;;  %v12674_v44 = vld [vmem:[%s13429_s26 + $0xab8] ss:$24 sps:$4 sm:$0xff]  }
 0x3d8   : > { %v5277_v29 = vcombine.low %v5269_v23, %v5276_v24  ;;  %7465 = vmatpush1.bf16.msra.mxu0 %v12614_v25  ;;  %7506 = vmatpush1.bf16.msra.mxu1 %v12617_v26  ;;  %v12677_v24 = vld [vmem:[%s13429_s26 + $0xac0] ss:$24 sps:$4 sm:$0xff]   ;;  %v12682_v25 = vld [vmem:[%s13429_s26 + $0xaec] ss:$24 sps:$4 sm:$0xff]   ;;  %v12688_v23 = vld [vmem:[%s13429_s26 + $0xb1c] ss:$24 sps:$4 sm:$0xff]  }
 0x3d9   : > { %7532 = vmatprep.subr.bf16.mxu0 %v12622_v17  ;;  %7918 = vmatprep.subr.bf16.mxu1 %v12625_v21  ;;  %v12685_v26 = vld [vmem:[%s13429_s26 + $0xaf4] ss:$24 sps:$4 sm:$0xff]   ;;  %v12680_v17 = vld [vmem:[%s13429_s26 + $0xae8] ss:$24 sps:$4 sm:$0xff]  }
 0x3da   : > { %v5279_v34 = vadd.f32 %v5277_v29, %v4815_v27  ;;  %v12683_v21 = vld [vmem:[%s13429_s26 + $0xaf0] ss:$24 sps:$4 sm:$0xff]   ;;  %v12691_v27 = vld [vmem:[%s13429_s26 + $0xb24] ss:$24 sps:$4 sm:$0xff]   ;;  %v12689_v29 = vld [vmem:[%s13429_s26 + $0xb20] ss:$24 sps:$4 sm:$0xff]  }
 0x3db   : > { %7483 = vmatmul.mubr.bf16.vlgmr.msra.gmra.mrb[84].mxu0 %v14482_v28  ;;  %7524 = vmatmul.mubr.bf16.vlgmr.msra.gmra.mrb[84].mxu1 %v14482_v28 }
 0x3dc   : > { %5280 = vst.msk [vmem:[#allocation3 + $0x1] ss:$8 sm:$0xf] %vm13828_vm1, %v5279_v34  ;;  %5281 = vst.msk [vmem:[#allocation3 + $0x1] ss:$8 sm:$0x30] %vm13828_vm1, %v5279_v34  ;;  %7533 = vmatpush1.bf16.msra.mxu0 %v12620_v31  ;;  %7919 = vmatpush1.bf16.msra.mxu1 %v12623_v37 }
 0x3dd   : > { %7534 = vmatprep.subr.bf16.mxu0 %v12628_v32  ;;  %7920 = vmatprep.subr.bf16.mxu1 %v12631_v33  ;;  %v12697_v31 = vld [vmem:[%s13429_s26 + $0xb54] ss:$24 sps:$4 sm:$0xff]   ;;  %v12692_v37 = vld [vmem:[%s13429_s26 + $0xb48] ss:$24 sps:$4 sm:$0xff]   ;;  %v12703_v34 = vld [vmem:[%s13429_s26 + $0xb84] ss:$24 sps:$4 sm:$0xff]  }
 0x3de   : > { %7564 = vmatprep.mubr.bf16.mxu0 %v13055_v3  ;;  %7950 = vmatprep.mubr.bf16.mxu1 %v13055_v3  ;;  %v12695_v32 = vld [vmem:[%s13429_s26 + $0xb50] ss:$24 sps:$4 sm:$0xff]   ;;  %v12700_v33 = vld [vmem:[%s13429_s26 + $0xb7c] ss:$24 sps:$4 sm:$0xff]  }
 0x3e0   : > { %7535 = vmatpush1.bf16.msra.mxu0 %v12626_v55  ;;  %7921 = vmatpush1.bf16.msra.mxu1 %v12629_v35  ;;  %v12698_v55 = vld [vmem:[%s13429_s26 + $0xb78] ss:$24 sps:$4 sm:$0xff]  }
 0x3e1   : > { %7536 = vmatprep.subr.bf16.mxu0 %v12634_v36  ;;  %7922 = vmatprep.subr.bf16.mxu1 %v12637_v38  ;;  %v12701_v35 = vld [vmem:[%s13429_s26 + $0xb80] ss:$24 sps:$4 sm:$0xff]   ;;  %v12706_v36 = vld [vmem:[%s13429_s26 + $0xbac] ss:$24 sps:$4 sm:$0xff]  }
 0x3e2   : > { %v12709_v38 = vld [vmem:[%s13429_s26 + $0xbb4] ss:$24 sps:$4 sm:$0xff]  }
 0x3e4   : > { %7537 = vmatpush1.bf16.msra.mxu0 %v12632_v41  ;;  %7923 = vmatpush1.bf16.msra.mxu1 %v12635_v40 }
 0x3e5   : > { %7538 = vmatprep.subr.bf16.mxu0 %v12640_v42  ;;  %7924 = vmatprep.subr.bf16.mxu1 %v12643_v47  ;;  %v5283_v42 = vld [vmem:[#allocation3 + $0x2] ss:$8 sm:$0xf] }
 0x3e6   : > { %v5284_v47 = vld [vmem:[#allocation3 + $0x2] ss:$8 sm:$0x30] }
 0x3e8   : > { %7539 = vmatpush1.bf16.msra.mxu0 %v12638_v49  ;;  %7925 = vmatpush1.bf16.msra.mxu1 %v12641_v50 }
 0x3e9   : > { %7540 = vmatprep.subr.bf16.mxu0 %v12646_v5  ;;  %7926 = vmatprep.subr.bf16.mxu1 %v12649_v43 }
 0x3ec   : > { %7541 = vmatpush1.bf16.msra.mxu0 %v12644_v45  ;;  %7927 = vmatpush1.bf16.msra.mxu1 %v12647_v51 }
 0x3ed   : > { %7542 = vmatprep.subr.bf16.mxu0 %v12652_v52  ;;  %7928 = vmatprep.subr.bf16.mxu1 %v12655_v53  ;;  %v12704_v52 = vld [vmem:[%s13429_s26 + $0xba8] ss:$24 sps:$4 sm:$0xff]  }
 0x3ee   : > { %v5612_v56 = vpop.f32.mrb[60].mxu0  ;;  %v5653_v57 = vpop.f32.mrb[60].mxu1  ;;  %v12707_v53 = vld [vmem:[%s13429_s26 + $0xbb0] ss:$24 sps:$4 sm:$0xff]  }
 0x3ef   : > { %v5614_v58 = vpop.f32.mrb[61].mxu0  ;;  %v5655_v59 = vpop.f32.mrb[61].mxu1 }
 0x3f0   : > { %v5707_v60 = vcombine.low %v5612_v56, %v5614_v58  ;;  %v5708_v61 = vcombine.low %v5653_v57, %v5655_v59  ;;  %v5616_v62 = vpop.f32.mrb[62].mxu0  ;;  %v5657_v63 = vpop.f32.mrb[62].mxu1  ;;  %7543 = vmatpush1.bf16.msra.mxu0 %v12650_v54  ;;  %7929 = vmatpush1.bf16.msra.mxu1 %v12653_v39  ;;  %v5285_v58 = vor.u32 %v5284_v47, %v5283_v42 }
 0x3f1   : > { %v5617_v4 = vpop.f32.mrb[63].mxu0  ;;  %v5658_v8 = vpop.f32.mrb[63].mxu1  ;;  %7544 = vmatprep.subr.bf16.mxu0 %v12658_v46  ;;  %7930 = vmatprep.subr.bf16.mxu1 %v12661_v48  ;;  %v12712_v46 = vld [vmem:[%s13429_s26 + $0xbdc] ss:$24 sps:$4 sm:$0xff]  }
 0x3f2   : > { %v14521_v14 = vrot.slane %v5707_v60, %v13758_v19  ;;  %v14524_v16 = vrot.slane %v5708_v61, %v13758_v19  ;;  %v12715_v48 = vld [vmem:[%s13429_s26 + $0xbe4] ss:$24 sps:$4 sm:$0xff]   ;;  %v12710_v60 = vld [vmem:[%s13429_s26 + $0xbd8] ss:$24 sps:$4 sm:$0xff]  }
 0x3f3   : > { %v12713_v61 = vld [vmem:[%s13429_s26 + $0xbe0] ss:$24 sps:$4 sm:$0xff]  }
 0x3f4   : > { %v5731_v18 = vcombine.low %v14521_v14, %v14524_v16  ;;  %7545 = vmatpush1.bf16.msra.mxu0 %v12656_v0  ;;  %7931 = vmatpush1.bf16.msra.mxu1 %v12659_v1 }
 0x3f5   : > { %7546 = vmatprep.subr.bf16.mxu0 %v12664_v9  ;;  %7932 = vmatprep.subr.bf16.mxu1 %v12667_v10 }
 0x3f6   : > { %v5738_v57 = vrot.slane %v5731_v18, %v13758_v19 }
 0x3f8   : > { %7547 = vmatpush1.bf16.msra.mxu0 %v12662_v20  ;;  %7933 = vmatpush1.bf16.msra.mxu1 %v12665_v7 }
 0x3f9   : > { %7959 = vmatprep.subr.bf16.mxu0 %v12670_v22  ;;  %8000 = vmatprep.subr.bf16.mxu1 %v12673_v2 }
 0x3fb   : > { %7565 = vmatmul.mubr.bf16.vlgmr.msra.gmra.mrb[88].mxu0 %v14482_v28  ;;  %7951 = vmatmul.mubr.bf16.vlgmr.msra.gmra.mrb[88].mxu1 %v14533_v6  ;;  %v12686_v28 = vld [vmem:[%s13429_s26 + $0xb18] ss:$24 sps:$4 sm:$0xff]  }
 0x3fc   : > { %7960 = vmatpush1.bf16.msra.mxu0 %v12668_v12  ;;  %8001 = vmatpush1.bf16.msra.mxu1 %v12671_v15  ;;  %v5752_v12 = vld [vmem:[#allocation3 + $0x3] ss:$8 sm:$0xf] }
 0x3fd   : > { %7961 = vmatprep.subr.bf16.mxu0 %v12676_v11  ;;  %8002 = vmatprep.subr.bf16.mxu1 %v12679_v13  ;;  %v5753_v15 = vld [vmem:[#allocation3 + $0x3] ss:$8 sm:$0x30] }
 0x3fe   : > { %7991 = vmatprep.mubr.bf16.mxu0 %v13055_v3  ;;  %8032 = vmatprep.mubr.bf16.mxu1 %v13055_v3  ;;  %v12694_v3 = vld [vmem:[%s13429_s26 + $0xb4c] ss:$24 sps:$4 sm:$0xff]  }
 0x400   : > { %7962 = vmatpush1.bf16.msra.mxu0 %v12674_v44  ;;  %8003 = vmatpush1.bf16.msra.mxu1 %v12677_v24  ;;  %v5754_v44 = vor.u32 %v5753_v15, %v5752_v12 }
 0x401   : > { %7963 = vmatprep.subr.bf16.mxu0 %v12682_v25  ;;  %8004 = vmatprep.subr.bf16.mxu1 %v12685_v26 }
 0x404   : > { %7964 = vmatpush1.bf16.msra.mxu0 %v12680_v17  ;;  %8005 = vmatpush1.bf16.msra.mxu1 %v12683_v21 }
 0x405   : > { %7965 = vmatprep.subr.bf16.mxu0 %v12688_v23  ;;  %8006 = vmatprep.subr.bf16.mxu1 %v12691_v27 }
 0x408   : > { %7966 = vmatpush1.bf16.msra.mxu0 %v12686_v28  ;;  %8007 = vmatpush1.bf16.msra.mxu1 %v12689_v29 }
 0x409   : > { %7967 = vmatprep.subr.bf16.mxu0 %v12694_v3  ;;  %8008 = vmatprep.subr.bf16.mxu1 %v12697_v31 }
 0x40c   : > { %7968 = vmatpush1.bf16.msra.mxu0 %v12692_v37  ;;  %8009 = vmatpush1.bf16.msra.mxu1 %v12695_v32 }
 0x40d   : > { %7969 = vmatprep.subr.bf16.mxu0 %v12700_v33  ;;  %8010 = vmatprep.subr.bf16.mxu1 %v12703_v34 }
 0x40e   : > { %v5694_v41 = vpop.f32.mrb[64].mxu0  ;;  %v6080_v40 = vpop.f32.mrb[64].mxu1 }
 0x40f   : > { %v5696_v49 = vpop.f32.mrb[65].mxu0  ;;  %v6082_v50 = vpop.f32.mrb[65].mxu1 }
 0x410   : > { %v5709_v5 = vcombine.low %v5694_v41, %v5696_v49  ;;  %v6175_v43 = vcombine.low %v6080_v40, %v6082_v50  ;;  %v5698_v45 = vpop.f32.mrb[66].mxu0  ;;  %v6084_v51 = vpop.f32.mrb[66].mxu1  ;;  %7970 = vmatpush1.bf16.msra.mxu0 %v12698_v55  ;;  %8011 = vmatpush1.bf16.msra.mxu1 %v12701_v35  ;;  %v6220_v41 = vld [vmem:[#allocation3 + $0x4] ss:$8 sm:$0xf] }
 0x411   : > { %v5699_v54 = vpop.f32.mrb[67].mxu0  ;;  %v6085_v39 = vpop.f32.mrb[67].mxu1  ;;  %7971 = vmatprep.subr.bf16.mxu0 %v12706_v36  ;;  %8012 = vmatprep.subr.bf16.mxu1 %v12709_v38  ;;  %v6221_v50 = vld [vmem:[#allocation3 + $0x4] ss:$8 sm:$0x30] }
 0x412   : > { %v5730_v56 = vrot.slane %v5709_v5, %v13758_v19  ;;  %v6184_v7 = vrot.slane %v6175_v43, %v13758_v19  ;;  %v8091_v54 = vld [vmem:[#allocation4] sm:$0xff]  ;;  %v8093_v39 = vpop.xlane.xlu0 %8092 }
 0x414   : > { %v5745_v59 = vrot.slane %v5730_v56, %v13758_v19  ;;  %7972 = vmatpush1.bf16.msra.mxu0 %v12704_v52  ;;  %8013 = vmatpush1.bf16.msra.mxu1 %v12707_v53  ;;  %v6222_v52 = vor.u32 %v6221_v50, %v6220_v41 }
 0x415   : > { %7973 = vmatprep.subr.bf16.mxu0 %v12712_v46  ;;  %8014 = vmatprep.subr.bf16.mxu1 %v12715_v48  ;;  %v8094_v48 = vadd.f32 %v8093_v39, %v8091_v54 }
 0x416   : > { %v5746_v62 = vcombine.low %v5738_v57, %v5745_v59  ;;  %v8097_v57 = vld [vmem:[#allocation5] sm:$0xff] }
 0x417   : > { %8096 = vst.msk [vmem:[#allocation4] sm:$0xff] %vm8095_vm2, %v8094_v48 }
 0x418   : > { %v5748_v63 = vadd.f32 %v5746_v62, %v5285_v58  ;;  %7974 = vmatpush1.bf16.msra.mxu0 %v12710_v60  ;;  %8015 = vmatpush1.bf16.msra.mxu1 %v12713_v61  ;;  %v8099_v58 = vpop.xlane.xlu0 %8098 }
 0x419   : > { %v8100_v59 = vadd.f32 %v8099_v58, %v8097_v57 }
 0x41a   : > { %5749 = vst.msk [vmem:[#allocation3 + $0x2] ss:$8 sm:$0xf] %vm13828_vm1, %v5748_v63  ;;  %5750 = vst.msk [vmem:[#allocation3 + $0x2] ss:$8 sm:$0x30] %vm13828_vm1, %v5748_v63 }
 0x41b   : > { %7992 = vmatmul.mubr.bf16.vlgmr.msra.gmra.mrb[92].mxu0 %v14533_v6  ;;  %8033 = vmatmul.mubr.bf16.vlgmr.msra.gmra.mrb[92].mxu1 %v14533_v6  ;;  %8101 = vst.msk [vmem:[#allocation5] sm:$0xff] %vm8095_vm2, %v8100_v59 }
 0x42e   : > { %v6121_v0 = vpop.f32.mrb[68].mxu0  ;;  %v6162_v1 = vpop.f32.mrb[68].mxu1 }
 0x42f   : > { %v6123_v4 = vpop.f32.mrb[69].mxu0  ;;  %v6164_v8 = vpop.f32.mrb[69].mxu1 }
 0x430   : > { %v6176_v9 = vcombine.low %v6121_v0, %v6123_v4  ;;  %v6177_v10 = vcombine.low %v6162_v1, %v6164_v8  ;;  %v6125_v14 = vpop.f32.mrb[70].mxu0  ;;  %v6166_v16 = vpop.f32.mrb[70].mxu1 }
 0x431   : > { %v6126_v18 = vpop.f32.mrb[71].mxu0  ;;  %v6167_v20 = vpop.f32.mrb[71].mxu1 }
 0x432   : > { %v6191_v22 = vrot.slane %v6176_v9, %v13758_v19  ;;  %v6198_v2 = vrot.slane %v6177_v10, %v13758_v19  ;;  %v6688_v20 = vld [vmem:[#allocation3 + $0x5] ss:$8 sm:$0xf] }
 0x434   : > { %v6199_v11 = vcombine.low %v6184_v7, %v6191_v22  ;;  %v6213_v6 = vrot.slane %v6198_v2, %v13758_v19  ;;  %v6689_v7 = vld [vmem:[#allocation3 + $0x5] ss:$8 sm:$0x30] }
 0x435   : > { %v6690_v15 = vor.u32 %v6689_v7, %v6688_v20  ;;  %v8270_v20 = vld [vmem:[#allocation15 + $0x80] sm:$0xff] (!%p10772_p6)  ;;  %v13057_v7 = vmov (!%p10772_p6), 0  }
 0x436   : > { %v6206_v13 = vrot.slane %v6199_v11, %v13758_v19  ;;  %12717 = vset.pattern.permute.xlu0 (!%p10772_p6), %v13057_v7  ;;  %v8312_v7 = vld [vmem:[#allocation15 + $0x1d0] sm:$0xff] (!%p10772_p6) }
 0x438   : > { %v6214_v24 = vcombine.low %v6206_v13, %v6213_v6 }
 0x43a   : > { %v6216_v25 = vadd.f32 %v6214_v24, %v5754_v44 }
 0x43c   : > { %6217 = vst.msk [vmem:[#allocation3 + $0x3] ss:$8 sm:$0xf] %vm13828_vm1, %v6216_v25  ;;  %6218 = vst.msk [vmem:[#allocation3 + $0x3] ss:$8 sm:$0x30] %vm13828_vm1, %v6216_v25 }
 0x44e   : > { %v6548_v26 = vpop.f32.mrb[72].mxu0  ;;  %v6589_v17 = vpop.f32.mrb[72].mxu1 }
 0x44f   : > { %v6550_v21 = vpop.f32.mrb[73].mxu0  ;;  %v6591_v23 = vpop.f32.mrb[73].mxu1 }
 0x450   : > { %v6643_v27 = vcombine.low %v6548_v26, %v6550_v21  ;;  %v6644_v28 = vcombine.low %v6589_v17, %v6591_v23  ;;  %v6552_v29 = vpop.f32.mrb[74].mxu0  ;;  %v6593_v3 = vpop.f32.mrb[74].mxu1 }
 0x451   : > { %v6553_v31 = vpop.f32.mrb[75].mxu0  ;;  %v6594_v37 = vpop.f32.mrb[75].mxu1 }
 0x452   : > { %v6652_v32 = vrot.slane %v6643_v27, %v13758_v19  ;;  %v6659_v33 = vrot.slane %v6644_v28, %v13758_v19 }
 0x454   : > { %v6667_v34 = vcombine.low %v6652_v32, %v6659_v33 }
 0x456   : > { %v6674_v51 = vrot.slane %v6667_v34, %v13758_v19 }
 0x46e   : > { %v6630_v55 = vpop.f32.mrb[76].mxu0  ;;  %v7016_v35 = vpop.f32.mrb[76].mxu1 }
 0x46f   : > { %v6632_v36 = vpop.f32.mrb[77].mxu0  ;;  %v7018_v38 = vpop.f32.mrb[77].mxu1 }
 0x470   : > { %v6645_v40 = vcombine.low %v6630_v55, %v6632_v36  ;;  %v7111_v42 = vcombine.low %v7016_v35, %v7018_v38  ;;  %v6634_v47 = vpop.f32.mrb[78].mxu0  ;;  %v7020_v49 = vpop.f32.mrb[78].mxu1  ;;  %v7156_v55 = vld [vmem:[#allocation3 + $0x6] ss:$8 sm:$0xf] }
 0x471   : > { %v6635_v5 = vpop.f32.mrb[79].mxu0  ;;  %v7021_v43 = vpop.f32.mrb[79].mxu1 }
 0x472   : > { %v6666_v45 = vrot.slane %v6645_v40, %v13758_v19  ;;  %v7120_v14 = vrot.slane %v7111_v42, %v13758_v19  ;;  %v7157_v40 = vld [vmem:[#allocation3 + $0x6] ss:$8 sm:$0x30] }
 0x473   : > { %v7158_v5 = vor.u32 %v7157_v40, %v7156_v55  ;;  %v8275_v55 = vld [vmem:[#allocation15 + $0xa8] sm:$0xff] (!%p10772_p6)  ;;  %v8258_v40 = vld [vmem:[#allocation15 + $0x20] sm:$0xff] (!%p10772_p6) }
 0x474   : > { %v6681_v53 = vrot.slane %v6666_v45, %v13758_v19 }
 0x476   : > { %v6682_v46 = vcombine.low %v6674_v51, %v6681_v53 }
 0x478   : > { %v6684_v56 = vadd.f32 %v6682_v46, %v6222_v52 }
 0x47a   : > { %6685 = vst.msk [vmem:[#allocation3 + $0x4] ss:$8 sm:$0xf] %vm13828_vm1, %v6684_v56  ;;  %6686 = vst.msk [vmem:[#allocation3 + $0x4] ss:$8 sm:$0x30] %vm13828_vm1, %v6684_v56 }
 0x48e   : > { %v7057_v60 = vpop.f32.mrb[80].mxu0  ;;  %v7098_v61 = vpop.f32.mrb[80].mxu1 }
 0x48f   : > { %v7059_v62 = vpop.f32.mrb[81].mxu0  ;;  %v7100_v63 = vpop.f32.mrb[81].mxu1 }
 0x490   : > { %v7112_v0 = vcombine.low %v7057_v60, %v7059_v62  ;;  %v7113_v1 = vcombine.low %v7098_v61, %v7100_v63  ;;  %v7061_v4 = vpop.f32.mrb[82].mxu0  ;;  %v7102_v8 = vpop.f32.mrb[82].mxu1  ;;  %v7624_v63 = vld [vmem:[#allocation3 + $0x7] ss:$8 sm:$0xf] }
 0x491   : > { %v7062_v9 = vpop.f32.mrb[83].mxu0  ;;  %v7103_v10 = vpop.f32.mrb[83].mxu1 }
 0x492   : > { %v7127_v16 = vrot.slane %v7112_v0, %v13758_v19  ;;  %v7134_v18 = vrot.slane %v7113_v1, %v13758_v19  ;;  %v7625_v0 = vld [vmem:[#allocation3 + $0x7] ss:$8 sm:$0x30] }
 0x493   : > { %v7626_v9 = vor.u32 %v7625_v0, %v7624_v63 }
 0x494   : > { %v7135_v22 = vcombine.low %v7120_v14, %v7127_v16  ;;  %v7149_v2 = vrot.slane %v7134_v18, %v13758_v19  ;;  %v8109_v16 = vld [vmem:[#allocation5] sm:$0xff] (!%p10772_p6)  ;;  %v8106_v18 = vld [vmem:[#allocation4] sm:$0xff] (!%p10772_p6) }
 0x496   : > { %v7142_v12 = vrot.slane %v7135_v22, %v13758_v19  ;;  %v8110_v22 = vmax.f32 (!%p10772_p6), %v8109_v16, -1e-09  ;;  %v8295_v16 = vld [vmem:[#allocation15 + $0x148] sm:$0xff] (!%p10772_p6) }
 0x498   : > { %v7150_v11 = vcombine.low %v7142_v12, %v7149_v2  ;;  %v8107_v2 = vmax.f32 (!%p10772_p6), %v8106_v18, -1e-09  ;;  %v8302_v12 = vld [vmem:[#allocation15 + $0x180] sm:$0xff] (!%p10772_p6)  ;;  %12718 = vrcp.f32 (!%p10772_p6), %v8110_v22  ;;  %v8280_v18 = vld [vmem:[#allocation15 + $0xd0] sm:$0xff] (!%p10772_p6)  ;;  %v8313_v22 = vld [vmem:[#allocation15 + $0x1d8] sm:$0xff] (!%p10772_p6) }
 0x49a   : > { %v7152_v6 = vadd.f32 %v7150_v11, %v6690_v15  ;;  %v8303_v11 = vld [vmem:[#allocation15 + $0x188] sm:$0xff] (!%p10772_p6)  ;;  %12720 = vrcp.f32 (!%p10772_p6), %v8107_v2 }
 0x49c   : > { %7153 = vst.msk [vmem:[#allocation3 + $0x5] ss:$8 sm:$0xf] %vm13828_vm1, %v7152_v6  ;;  %7154 = vst.msk [vmem:[#allocation3 + $0x5] ss:$8 sm:$0x30] %vm13828_vm1, %v7152_v6 }
 0x49d   : > { %v8254_v6 = vld [vmem:[#allocation15] sm:$0xff] (!%p10772_p6) }
 0x4ae   : > { %v7484_v13 = vpop.f32.mrb[84].mxu0  ;;  %v7525_v44 = vpop.f32.mrb[84].mxu1 }
 0x4af   : > { %v7486_v24 = vpop.f32.mrb[85].mxu0  ;;  %v7527_v25 = vpop.f32.mrb[85].mxu1 }
 0x4b0   : > { %v7579_v26 = vcombine.low %v7484_v13, %v7486_v24  ;;  %v7580_v17 = vcombine.low %v7525_v44, %v7527_v25  ;;  %v7488_v21 = vpop.f32.mrb[86].mxu0  ;;  %v7529_v23 = vpop.f32.mrb[86].mxu1  ;;  %v8255_v13 = vld [vmem:[#allocation15 + $0x8] sm:$0xff] (!%p10772_p6)  ;;  %v11125_v44 = vpack.c.bf16 (!%p10772_p6), %v8303_v11, %v8302_v12  ;;  %v8286_v24 = vld [vmem:[#allocation15 + $0x100] sm:$0xff] (!%p10772_p6)  ;;  %v8265_v11 = vld [vmem:[#allocation15 + $0x58] sm:$0xff] (!%p10772_p6) }
 0x4b1   : > { %v7489_v27 = vpop.f32.mrb[87].mxu0  ;;  %v7530_v28 = vpop.f32.mrb[87].mxu1  ;;  %v11095_v30 = vpack.c.bf16 (!%p10772_p6), %v8255_v13, %v8254_v6  ;;  %v8287_v25 = vld [vmem:[#allocation15 + $0x108] sm:$0xff] (!%p10772_p6)  ;;  %v8273_v21 = vld [vmem:[#allocation15 + $0x98] sm:$0xff] (!%p10772_p6)  ;;  %v8304_v23 = vld [vmem:[#allocation15 + $0x190] sm:$0xff] (!%p10772_p6)  ;;  %v11145_v13 = vpack.c.bf16 (!%p10772_p6), %v8313_v22, %v8312_v7 }
 0x4b2   : > { %v7588_v29 = vrot.slane %v7579_v26, %v13758_v19  ;;  %v7595_v3 = vrot.slane %v7580_v17, %v13758_v19  ;;  %v8272_v26 = vld [vmem:[#allocation15 + $0x90] sm:$0xff] (!%p10772_p6)  ;;  %v11127_v17 = vpack.c.bf16 (!%p10772_p6), %v8287_v25, %v8286_v24  ;;  %v8305_v27 = vld [vmem:[#allocation15 + $0x198] sm:$0xff] (!%p10772_p6)  ;;  %11126 = vmatprep.subr.bf16.mxu1 (!%p10772_p6), %v11125_v44  ;;  %v8283_v24 = vld [vmem:[#allocation15 + $0xe8] sm:$0xff] (!%p10772_p6) }
 0x4b3   : > { %v11097_v28 = vpack.c.bf16 (!%p10772_p6), %v8273_v21, %v8272_v26  ;;  %v8296_v6 = vld [vmem:[#allocation15 + $0x150] sm:$0xff] (!%p10772_p6)  ;;  %v8297_v44 = vld [vmem:[#allocation15 + $0x158] sm:$0xff] (!%p10772_p6)  ;;  %v8314_v25 = vld [vmem:[#allocation15 + $0x1e0] sm:$0xff] (!%p10772_p6) }
 0x4b4   : > { %v7603_v31 = vcombine.low %v7588_v29, %v7595_v3  ;;  %v11129_v29 = vpack.c.bf16 (!%p10772_p6), %v8305_v27, %v8304_v23  ;;  %v8256_v3 = vld [vmem:[#allocation15 + $0x10] sm:$0xff] (!%p10772_p6)  ;;  %11128 = vmatpush3.bf16.msra.mxu1 (!%p10772_p6), %v11127_v17  ;;  %v8315_v26 = vld [vmem:[#allocation15 + $0x1e8] sm:$0xff] (!%p10772_p6)  ;;  %v11147_v21 = vpack.c.bf16 (!%p10772_p6), %v8297_v44, %v8296_v6  ;;  %v8266_v27 = vld [vmem:[#allocation15 + $0x60] sm:$0xff] (!%p10772_p6) }
 0x4b5   : > { %v8321_v7 = vld [vmem:[#allocation15 + $0x218] sm:$0xff] (!%p10772_p6)  ;;  %v8178_v6 = vld [vmem:[#allocation14 + $0xa0] sm:$0xff] (!%p10772_p6) }
 0x4b6   : > { %v7610_v50 = vrot.slane %v7603_v31, %v13758_v19  ;;  %v8257_v31 = vld [vmem:[#allocation15 + $0x18] sm:$0xff] (!%p10772_p6)  ;;  %11130 = vmatprep.subr.bf16.mxu1 (!%p10772_p6), %v11129_v29  ;;  %v8298_v29 = vld [vmem:[#allocation15 + $0x160] sm:$0xff] (!%p10772_p6) }
 0x4ce   : > { %v7566_v37 = vpop.f32.mrb[88].mxu0  ;;  %v7952_v32 = vpop.f32.mrb[88].mxu1 }
 0x4cf   : > { %v7568_v33 = vpop.f32.mrb[89].mxu0  ;;  %v7954_v34 = vpop.f32.mrb[89].mxu1 }
 0x4d0   : > { %v7581_v35 = vcombine.low %v7566_v37, %v7568_v33  ;;  %v8047_v36 = vcombine.low %v7952_v32, %v7954_v34  ;;  %v7570_v38 = vpop.f32.mrb[90].mxu0  ;;  %v7956_v41 = vpop.f32.mrb[90].mxu1  ;;  %v8288_v37 = vld [vmem:[#allocation15 + $0x110] sm:$0xff] (!%p10772_p6)  ;;  %v11099_v32 = vpack.c.bf16 (!%p10772_p6), %v8257_v31, %v8256_v3  ;;  %v8289_v33 = vld [vmem:[#allocation15 + $0x118] sm:$0xff] (!%p10772_p6)  ;;  %v8274_v34 = vld [vmem:[#allocation15 + $0xa0] sm:$0xff] (!%p10772_p6)  ;;  %v11149_v3 = vpack.c.bf16 (!%p10772_p6), %v8315_v26, %v8314_v25 }
 0x4d1   : > { %v7571_v42 = vpop.f32.mrb[91].mxu0  ;;  %v7957_v47 = vpop.f32.mrb[91].mxu1  ;;  %v8306_v38 = vld [vmem:[#allocation15 + $0x1a0] sm:$0xff] (!%p10772_p6)  ;;  %v8307_v41 = vld [vmem:[#allocation15 + $0x1a8] sm:$0xff] (!%p10772_p6) }
 0x4d2   : > { %v7602_v49 = vrot.slane %v7581_v35, %v13758_v19  ;;  %v8056_v60 = vrot.slane %v8047_v36, %v13758_v19  ;;  %v11131_v35 = vpack.c.bf16 (!%p10772_p6), %v8289_v33, %v8288_v37  ;;  %v11101_v36 = vpack.c.bf16 (!%p10772_p6), %v8275_v55, %v8274_v34  ;;  %v8259_v47 = vld [vmem:[#allocation15 + $0x28] sm:$0xff] (!%p10772_p6)  ;;  %v8284_v37 = vld [vmem:[#allocation15 + $0xf0] sm:$0xff] (!%p10772_p6)  ;;  %v8317_v34 = vld [vmem:[#allocation15 + $0x1f8] sm:$0xff] (!%p10772_p6) }
 0x4d3   : > { %v11133_v42 = vpack.c.bf16 (!%p10772_p6), %v8307_v41, %v8306_v38  ;;  %v8299_v31 = vld [vmem:[#allocation15 + $0x168] sm:$0xff] (!%p10772_p6)  ;;  %v8316_v33 = vld [vmem:[#allocation15 + $0x1f0] sm:$0xff] (!%p10772_p6)  ;;  %v8269_v41 = vld [vmem:[#allocation15 + $0x78] sm:$0xff] (!%p10772_p6) }
 0x4d4   : > { %v7617_v43 = vrot.slane %v7602_v49, %v13758_v19  ;;  %v8290_v49 = vld [vmem:[#allocation15 + $0x120] sm:$0xff] (!%p10772_p6)  ;;  %11132 = vmatpush3.bf16.msra.mxu1 (!%p10772_p6), %v11131_v35  ;;  %v11151_v35 = vpack.c.bf16 (!%p10772_p6), %v8299_v31, %v8298_v29  ;;  %v8268_v38 = vld [vmem:[#allocation15 + $0x70] sm:$0xff] (!%p10772_p6)  ;;  %v8163_v29 = vld [vmem:[#allocation14 + $0x28] sm:$0xff] (!%p10772_p6) }
 0x4d5   : > { %11134 = vmatprep.subr.bf16.mxu1 (!%p10772_p6), %v11133_v42  ;;  %v11153_v42 = vpack.c.bf16 (!%p10772_p6), %v8317_v34, %v8316_v33  ;;  %v8341_v31 = vld [vmem:[#allocation15 + $0x2b8] sm:$0xff] (!%p10772_p6) }
 0x4d6   : > { %v7618_v45 = vcombine.low %v7610_v50, %v7617_v43  ;;  %v8291_v50 = vld [vmem:[#allocation15 + $0x128] sm:$0xff] (!%p10772_p6)  ;;  %v8276_v43 = vld [vmem:[#allocation15 + $0xb0] sm:$0xff] (!%p10772_p6) }
 0x4d8   : > { %v7620_v51 = vadd.f32 %v7618_v45, %v7158_v5  ;;  %v11103_v5 = vpack.c.bf16 (!%p10772_p6), %v8259_v47, %v8258_v40  ;;  %v8277_v45 = vld [vmem:[#allocation15 + $0xb8] sm:$0xff] (!%p10772_p6)  ;;  %v8300_v40 = vld [vmem:[#allocation15 + $0x170] sm:$0xff] (!%p10772_p6) }
 0x4d9   : > { %v8301_v47 = vld [vmem:[#allocation15 + $0x178] sm:$0xff] (!%p10772_p6) }
 0x4da   : > { %7621 = vst.msk [vmem:[#allocation3 + $0x6] ss:$8 sm:$0xf] %vm13828_vm1, %v7620_v51  ;;  %7622 = vst.msk [vmem:[#allocation3 + $0x6] ss:$8 sm:$0x30] %vm13828_vm1, %v7620_v51 }
 0x4db   : > { %v8308_v51 = vld [vmem:[#allocation15 + $0x1b0] sm:$0xff] (!%p10772_p6) }
 0x4ee   : > { %v7993_v52 = vpop.f32.mrb[92].mxu0  ;;  %v8034_v53 = vpop.f32.mrb[92].mxu1 }
 0x4ef   : > { %v7995_v54 = vpop.f32.mrb[93].mxu0  ;;  %v8036_v39 = vpop.f32.mrb[93].mxu1 }
 0x4f0   : > { %v8048_v46 = vcombine.low %v7993_v52, %v7995_v54  ;;  %v8049_v48 = vcombine.low %v8034_v53, %v8036_v39  ;;  %v7997_v56 = vpop.f32.mrb[94].mxu0  ;;  %v8038_v57 = vpop.f32.mrb[94].mxu1  ;;  %v11135_v52 = vpack.c.bf16 (!%p10772_p6), %v8291_v50, %v8290_v49  ;;  %v8309_v53 = vld [vmem:[#allocation15 + $0x1b8] sm:$0xff] (!%p10772_p6)  ;;  %v8260_v54 = vld [vmem:[#allocation15 + $0x30] sm:$0xff] (!%p10772_p6)  ;;  %v8334_v49 = vld [vmem:[#allocation15 + $0x280] sm:$0xff] (!%p10772_p6) }
 0x4f1   : > { %v7998_v58 = vpop.f32.mrb[95].mxu0  ;;  %v8039_v59 = vpop.f32.mrb[95].mxu1  ;;  %v8261_v39 = vld [vmem:[#allocation15 + $0x38] sm:$0xff] (!%p10772_p6)  ;;  %v8292_v56 = vld [vmem:[#allocation15 + $0x130] sm:$0xff] (!%p10772_p6)  ;;  %v8335_v50 = vld [vmem:[#allocation15 + $0x288] sm:$0xff] (!%p10772_p6) }
 0x4f2   : > { %v8063_v61 = vrot.slane %v8048_v46, %v13758_v19  ;;  %v8070_v62 = vrot.slane %v8049_v48, %v13758_v19  ;;  %v11105_v46 = vpack.c.bf16 (!%p10772_p6), %v8277_v45, %v8276_v43  ;;  %v11137_v48 = vpack.c.bf16 (!%p10772_p6), %v8309_v53, %v8308_v51  ;;  %v8293_v57 = vld [vmem:[#allocation15 + $0x138] sm:$0xff] (!%p10772_p6)  ;;  %v8278_v58 = vld [vmem:[#allocation15 + $0xc0] sm:$0xff] (!%p10772_p6)  ;;  %v8279_v59 = vld [vmem:[#allocation15 + $0xc8] sm:$0xff] (!%p10772_p6)  ;;  %11136 = vmatpush3.bf16.msra.mxu1 (!%p10772_p6), %v11135_v52 }
 0x4f3   : > { %v11107_v63 = vpack.c.bf16 (!%p10772_p6), %v8261_v39, %v8260_v54  ;;  %v11139_v0 = vpack.c.bf16 (!%p10772_p6), %v8293_v57, %v8292_v56  ;;  %v8175_v43 = vld [vmem:[#allocation14 + $0x88] sm:$0xff] (!%p10772_p6)  ;;  %v11123_v45 = vpack.c.bf16 (!%p10772_p6), %v8269_v41, %v8268_v38  ;;  %v11155_v51 = vpack.c.bf16 (!%p10772_p6), %v8301_v47, %v8300_v40  ;;  %v8318_v39 = vld [vmem:[#allocation15 + $0x200] sm:$0xff] (!%p10772_p6)  ;;  %v8164_v41 = vld [vmem:[#allocation14 + $0x30] sm:$0xff] (!%p10772_p6) }
 0x4f4   : > { %v8071_v1 = vcombine.low %v8056_v60, %v8063_v61  ;;  %v8085_v4 = vrot.slane %v8070_v62, %v13758_v19  ;;  %v8310_v60 = vld [vmem:[#allocation15 + $0x1c0] sm:$0xff] (!%p10772_p6)  ;;  %v8311_v61 = vld [vmem:[#allocation15 + $0x1c8] sm:$0xff] (!%p10772_p6)  ;;  %v12719_v62 = vpop.eup (!%p10772_p6), %12718  ;;  %11138 = vmatprep.subr.bf16.mxu1 (!%p10772_p6), %v11137_v48  ;;  %v11157_v52 = vpack.c.bf16 (!%p10772_p6), %v8335_v50, %v8334_v49  ;;  %v8165_v40 = vld [vmem:[#allocation14 + $0x38] sm:$0xff] (!%p10772_p6) }
 0x4f5   : > { %8137 = vperm.xlu0 (!%p10772_p6), %12717, %v12719_v62   ;;  %v8158_v48 = vld [vmem:[#allocation14] sm:$0xff] (!%p10772_p6)  ;;  %v8159_v56 = vld [vmem:[#allocation14 + $0x8] sm:$0xff] (!%p10772_p6) }
 0x4f6   : > { %v8078_v8 = vrot.slane %v8071_v1, %v13758_v19  ;;  %8105 = sbr.rel (%p10772_p6) target bundleno = 1750 (0x6d6), region = 92  ;;  %v8271_v19 = vld [vmem:[#allocation15 + $0x88] sm:$0xff] (!%p10772_p6)  ;;  %v8262_v1 = vld [vmem:[#allocation15 + $0x40] sm:$0xff] (!%p10772_p6)  ;;  %11140 = vmatpush3.bf16.msra.mxu1 (!%p10772_p6), %v11139_v0  ;;  %v11191_v0 = vpack.c.bf16 (!%p10772_p6), %v8159_v56, %v8158_v48  ;;  %v8345_v48 = vld [vmem:[#allocation15 + $0x2d8] sm:$0xff] (!%p10772_p6) }
 0x4f7   : > { %v11093_v15 = vpack.c.bf16 (!%p10772_p6), %v8271_v19, %v8270_v20  ;;  %v8281_v20 = vld [vmem:[#allocation15 + $0xd8] sm:$0xff] (!%p10772_p6)  ;;  %v8343_v47 = vld [vmem:[#allocation15 + $0x2c8] sm:$0xff] (!%p10772_p6)  ;;  %v8182_v49 = vld [vmem:[#allocation14 + $0xc0] sm:$0xff] (!%p10772_p6) }
 0x4f8   : > { %v8086_v10 = vcombine.low %v8078_v8, %v8085_v4  ;;  %v8263_v4 = vld [vmem:[#allocation15 + $0x48] sm:$0xff] (!%p10772_p6)  ;;  %v8294_v8 = vld [vmem:[#allocation15 + $0x140] sm:$0xff] (!%p10772_p6)  ;;  %v11113_v12 = vpack.c.bf16 (!%p10772_p6), %v8281_v20, %v8280_v18  ;;  %v8113_v18 = vld [vmem:[#allocation2 + $0x8] sm:$0xff] (!%p10772_p6) }
 0x4f9   : > { %11094 = vmatprep.subr.bf16.mxu0 (!%p10772_p6), %v11093_v15  ;;  %v11111_v2 = vpack.c.bf16 (!%p10772_p6), %v8263_v4, %v8262_v1  ;;  %v11143_v19 = vpack.c.bf16 (!%p10772_p6), %v8295_v16, %v8294_v8  ;;  %v8264_v15 = vld [vmem:[#allocation15 + $0x50] sm:$0xff] (!%p10772_p6)  ;;  %v8177_v8 = vld [vmem:[#allocation14 + $0x98] sm:$0xff] (!%p10772_p6)  ;;  %v8183_v50 = vld [vmem:[#allocation14 + $0xc8] sm:$0xff] (!%p10772_p6) }
 0x4fa   : > { %v8088_v14 = vadd.f32 %v8086_v10, %v7626_v9  ;;  %11096 = vmatpush3.bf16.msra.mxu0 (!%p10772_p6), %v11095_v30  ;;  %v12721_v9 = vpop.eup (!%p10772_p6), %12720  ;;  %v11109_v10 = vpack.c.bf16 (!%p10772_p6), %v8279_v59, %v8278_v58  ;;  %v8282_v30 = vld [vmem:[#allocation15 + $0xe0] sm:$0xff] (!%p10772_p6)  ;;  %v11115_v17 = vpack.c.bf16 (!%p10772_p6), %v8265_v11, %v8264_v15  ;;  %v8176_v4 = vld [vmem:[#allocation14 + $0x90] sm:$0xff] (!%p10772_p6)  ;;  %v8339_v11 = vld [vmem:[#allocation15 + $0x2a8] sm:$0xff] (!%p10772_p6) }
 0x4fb   : > { %11098 = vmatprep.subr.bf16.mxu0 (!%p10772_p6), %v11097_v28  ;;  %8120 = vperm.xlu0 (!%p10772_p6), %12717, %v12721_v9   ;;  %v11117_v23 = vpack.c.bf16 (!%p10772_p6), %v8283_v24, %v8282_v30  ;;  %v8267_v28 = vld [vmem:[#allocation15 + $0x68] sm:$0xff] (!%p10772_p6)  ;;  %v8320_v20 = vld [vmem:[#allocation15 + $0x210] sm:$0xff] (!%p10772_p6)  ;;  %v11193_v15 = vpack.c.bf16 (!%p10772_p6), %v8177_v8, %v8176_v4  ;;  %v8169_v4 = vld [vmem:[#allocation14 + $0x58] sm:$0xff] (!%p10772_p6) }
 0x4fc   : > { %8089 = vst.msk [vmem:[#allocation3 + $0x7] ss:$8 sm:$0xf] %vm13828_vm1, %v8088_v14  ;;  %8090 = vst.msk [vmem:[#allocation3 + $0x7] ss:$8 sm:$0x30] %vm13828_vm1, %v8088_v14  ;;  %v11141_v14 = vpack.c.bf16 (!%p10772_p6), %v8311_v61, %v8310_v60  ;;  %v11119_v55 = vpack.c.bf16 (!%p10772_p6), %v8267_v28, %v8266_v27  ;;  %v11163_v25 = vpack.c.bf16 (!%p10772_p6), %v8321_v7, %v8320_v20 }
 0x4fd   : > { %v8336_v60 = vld [vmem:[#allocation15 + $0x290] sm:$0xff]  ;;  %v8337_v61 = vld [vmem:[#allocation15 + $0x298] sm:$0xff]  ;;  %v8162_v28 = vld [vmem:[#allocation14 + $0x20] sm:$0xff] }
 0x4fe   : > { %11100 = vmatpush3.bf16.msra.mxu0 %v11099_v32  ;;  %11142 = vmatprep.subr.bf16.mxu1 %v11141_v14  ;;  %v8285_v32 = vld [vmem:[#allocation15 + $0xf8] sm:$0xff]  ;;  %v11161_v22 = vpack.c.bf16 %v8337_v61, %v8336_v60  ;;  %v11199_v34 = vpack.c.bf16 %v8163_v29, %v8162_v28  ;;  %v8184_v56 = vld [vmem:[#allocation14 + $0xd0] sm:$0xff]  ;;  %v8346_v8 = vld [vmem:[#allocation15 + $0x2e0] sm:$0xff] }
 0x4ff   : > { %11102 = vmatprep.subr.bf16.mxu0 %v11101_v36  ;;  %11144 = vmatpush3.bf16.msra.mxu1 %v11143_v19  ;;  %v11121_v36 = vpack.c.bf16 %v8285_v32, %v8284_v37  ;;  %v8161_v19 = vld [vmem:[#allocation14 + $0x18] sm:$0xff]  ;;  %v8180_v37 = vld [vmem:[#allocation14 + $0xb0] sm:$0xff]  ;;  %v8186_v20 = vld [vmem:[#allocation14 + $0xe0] sm:$0xff] }
 0x500   : > { %11146 = vmatprep.subr.bf16.mxu1 %v11145_v13  ;;  %v8179_v13 = vld [vmem:[#allocation14 + $0xa8] sm:$0xff]  ;;  %v8181_v32 = vld [vmem:[#allocation14 + $0xb8] sm:$0xff]  ;;  %v8328_v60 = vld [vmem:[#allocation15 + $0x250] sm:$0xff] }
 0x501   : > { %v11197_v27 = vpack.c.bf16 %v8179_v13, %v8178_v6  ;;  %v11201_v38 = vpack.c.bf16 %v8181_v32, %v8180_v37  ;;  %v8329_v61 = vld [vmem:[#allocation15 + $0x258] sm:$0xff]  ;;  %v8187_v7 = vld [vmem:[#allocation14 + $0xe8] sm:$0xff]  ;;  %v8170_v6 = vld [vmem:[#allocation14 + $0x60] sm:$0xff] }
 0x502   : > { %11104 = vmatpush3.bf16.msra.mxu0 %v11103_v5  ;;  %v8174_v5 = vld [vmem:[#allocation14 + $0x80] sm:$0xff]  ;;  %v8171_v13 = vld [vmem:[#allocation14 + $0x68] sm:$0xff]  ;;  %v8332_v28 = vld [vmem:[#allocation15 + $0x270] sm:$0xff] }
 0x503   : > { %11106 = vmatprep.subr.bf16.mxu0 %v11105_v46  ;;  %11148 = vmatpush3.bf16.msra.mxu1 %v11147_v21  ;;  %v11189_v53 = vpack.c.bf16 %v8175_v43, %v8174_v5  ;;  %v8130_v54 = vld [vmem:[#allocation3 + $0x8] sm:$0xff]  ;;  %v8132_v57 = vld [vmem:[#allocation3 + $0x18] sm:$0xff]  ;;  %v8129_v58 = vld [vmem:[#allocation3] sm:$0xff]  ;;  %v11203_v43 = vpack.c.bf16 %v8165_v40, %v8164_v41 }
 0x504   : > { %11150 = vmatprep.subr.bf16.mxu1 %v11149_v3  ;;  %v8319_v46 = vld [vmem:[#allocation15 + $0x208] sm:$0xff]  ;;  %v8131_v59 = vld [vmem:[#allocation3 + $0x10] sm:$0xff]  ;;  %v8333_v29 = vld [vmem:[#allocation15 + $0x278] sm:$0xff] }
 0x505   : > { %v8134_v1 = vld [vmem:[#allocation3 + $0x28] sm:$0xff]  ;;  %v8340_v3 = vld [vmem:[#allocation15 + $0x2b0] sm:$0xff]  ;;  %v8173_v32 = vld [vmem:[#allocation14 + $0x78] sm:$0xff] }
 0x506   : > { %11108 = vmatpush3.bf16.msra.mxu0 %v11107_v63  ;;  %v11159_v63 = vpack.c.bf16 %v8319_v46, %v8318_v39  ;;  %v8323_v21 = vld [vmem:[#allocation15 + $0x228] sm:$0xff]  ;;  %v8344_v46 = vld [vmem:[#allocation15 + $0x2d0] sm:$0xff]  ;;  %v8133_v41 = vld [vmem:[#allocation3 + $0x20] sm:$0xff] }
 0x507   : > { %11110 = vmatprep.subr.bf16.mxu0 %v11109_v10  ;;  %11152 = vmatpush3.bf16.msra.mxu1 %v11151_v35  ;;  %v8325_v35 = vld [vmem:[#allocation15 + $0x238] sm:$0xff]  ;;  %v8167_v39 = vld [vmem:[#allocation14 + $0x48] sm:$0xff]  ;;  %v8172_v37 = vld [vmem:[#allocation14 + $0x70] sm:$0xff] }
 0x508   : > { %11154 = vmatprep.subr.bf16.mxu1 %v11153_v42  ;;  %v8342_v42 = vld [vmem:[#allocation15 + $0x2c0] sm:$0xff]  ;;  %v8112_v40 = vld [vmem:[#allocation2] sm:$0xff] }
 0x50a   : > { %11112 = vmatpush3.bf16.msra.mxu0 %v11111_v2  ;;  %v8160_v2 = vld [vmem:[#allocation14 + $0x10] sm:$0xff] }
 0x50b   : > { %11114 = vmatprep.subr.bf16.mxu0 %v11113_v12  ;;  %11156 = vmatpush3.bf16.msra.mxu1 %v11155_v51  ;;  %v8338_v12 = vld [vmem:[#allocation15 + $0x2a0] sm:$0xff]  ;;  %v11195_v26 = vpack.c.bf16 %v8161_v19, %v8160_v2  ;;  %v8327_v51 = vld [vmem:[#allocation15 + $0x248] sm:$0xff] }
 0x50c   : > { %11190 = vmatprep.subr.bf16.mxu1 %v11189_v53  ;;  %v11205_v53 = vpack.c.bf16 %v8183_v50, %v8182_v49  ;;  %v8330_v19 = vld [vmem:[#allocation15 + $0x260] sm:$0xff]  ;;  %v8191_v50 = vld [vmem:[#allocation14 + $0x108] sm:$0xff] }
 0x50d   : > { %v8190_v49 = vld [vmem:[#allocation14 + $0x100] sm:$0xff] }
 0x50e   : > { %11116 = vmatpush3.bf16.msra.mxu0 %v11115_v17  ;;  %v8322_v17 = vld [vmem:[#allocation15 + $0x220] sm:$0xff] }
 0x50f   : > { %11118 = vmatprep.subr.bf16.mxu0 %v11117_v23  ;;  %v11165_v23 = vpack.c.bf16 %v8339_v11, %v8338_v12  ;;  %v11167_v33 = vpack.c.bf16 %v8323_v21, %v8322_v17  ;;  %v8331_v12 = vld [vmem:[#allocation15 + $0x268] sm:$0xff]  ;;  %v11213_v11 = vpack.c.bf16 %v8187_v7, %v8186_v20  ;;  %v8188_v17 = vld [vmem:[#allocation14 + $0xf0] sm:$0xff]  ;;  %v8189_v21 = vld [vmem:[#allocation14 + $0xf8] sm:$0xff] }
 0x510   : > { %v8243_v20 = vld [vmem:[#allocation14 + $0x2a8] sm:$0xff] }
 0x512   : > { %11120 = vmatpush3.bf16.msra.mxu0 %v11119_v55  ;;  %v8324_v55 = vld [vmem:[#allocation15 + $0x230] sm:$0xff] }
 0x513   : > { %11122 = vmatprep.subr.bf16.mxu0 %v11121_v36  ;;  %v11169_v36 = vpack.c.bf16 %v8341_v31, %v8340_v3  ;;  %v11171_v5 = vpack.c.bf16 %v8325_v35, %v8324_v55  ;;  %v11217_v31 = vpack.c.bf16 %v8189_v21, %v8188_v17  ;;  %v8238_v55 = vld [vmem:[#allocation14 + $0x280] sm:$0xff]  ;;  %v8239_v35 = vld [vmem:[#allocation14 + $0x288] sm:$0xff]  ;;  %v8245_v17 = vld [vmem:[#allocation14 + $0x2b8] sm:$0xff] }
 0x516   : > { %11124 = vmatpush3.bf16.msra.mxu0 %v11123_v45  ;;  %v8326_v45 = vld [vmem:[#allocation15 + $0x240] sm:$0xff] }
 0x517   : > { %11158 = vmatprep.subr.bf16.mxu0 %v11157_v52  ;;  %v11173_v52 = vpack.c.bf16 %v8343_v47, %v8342_v42  ;;  %v11253_v47 = vpack.c.bf16 %v8239_v35, %v8238_v55  ;;  %v8247_v55 = vld [vmem:[#allocation14 + $0x2c8] sm:$0xff] }
 0x574   : > { %v14627_v62 = vpop.permute.xlu0 %8137 }
 0x575   : > { %v14630_v9 = vmul.f32 %v14627_v62, %v8130_v54  ;;  %v14633_v10 = vmul.f32 %v14627_v62, %v8132_v57  ;;  %v14636_v14 = vmul.f32 %v14627_v62, %v8129_v58  ;;  %v14639_v16 = vmul.f32 %v14627_v62, %v8131_v59  ;;  %v8166_v54 = vld [vmem:[#allocation14 + $0x40] sm:$0xff]  ;;  %v8185_v57 = vld [vmem:[#allocation14 + $0xd8] sm:$0xff] }
 0x576   : > { %v14648_v30 = vmul.f32 %v14627_v62, %v8134_v1  ;;  %v11175_v58 = vpack.c.bf16 %v8327_v51, %v8326_v45  ;;  %v11207_v59 = vpack.c.bf16 %v8167_v39, %v8166_v54  ;;  %v8168_v1 = vld [vmem:[#allocation14 + $0x50] sm:$0xff]  ;;  %v8223_v45 = vld [vmem:[#allocation14 + $0x208] sm:$0xff]  ;;  %v8241_v54 = vld [vmem:[#allocation14 + $0x298] sm:$0xff]  ;;  %v11223_v39 = vpack.c.bf16 %v8191_v50, %v8190_v49 }
 0x577   : > { %8414 = vmatprep.mubr.f32.mxu0 %v14630_v9  ;;  %8484 = vmatprep.mubr.f32.mxu1 %v14633_v10  ;;  %v11211_v2 = vpack.c.bf16 %v8169_v4, %v8168_v1  ;;  %v8208_v51 = vld [vmem:[#allocation14 + $0x190] sm:$0xff]  ;;  %v8225_v1 = vld [vmem:[#allocation14 + $0x218] sm:$0xff]  ;;  %v8210_v4 = vld [vmem:[#allocation14 + $0x1a0] sm:$0xff] }
 0x578   : > { %8415 = vmatmul.mubr.f32.vlgmr.msra.gmra.mrb[0].mxu0 %v14636_v14  ;;  %8485 = vmatmul.mubr.f32.vlgmr.msra.gmra.mrb[0].mxu1 %v14639_v16  ;;  %v8231_v49 = vld [vmem:[#allocation14 + $0x248] sm:$0xff]  ;;  %v8216_v50 = vld [vmem:[#allocation14 + $0x1d0] sm:$0xff] }
 0x579   : > { %11160 = vmatpush3.bf16.msra.mxu0 %v11159_v63  ;;  %11192 = vmatpush3.bf16.msra.mxu1 %v11191_v0  ;;  %v11177_v63 = vpack.c.bf16 %v8345_v48, %v8344_v46  ;;  %v11209_v0 = vpack.c.bf16 %v8185_v57, %v8184_v56  ;;  %v8117_v46 = vld [vmem:[#allocation2 + $0x28] sm:$0xff]  ;;  %v14656_v48 = vmul.f32 %v14627_v62, %v8133_v41  ;;  %v8198_v41 = vld [vmem:[#allocation14 + $0x140] sm:$0xff] }
 0x57a   : > { %v14645_v44 = vpop.permute.xlu0 %8120  ;;  %8554 = vmatprep.mubr.f32.mxu0 %v14648_v30  ;;  %11162 = vmatprep.subr.bf16.mxu0 %v11161_v22  ;;  %v11179_v22 = vpack.c.bf16 %v8329_v61, %v8328_v60  ;;  %v8224_v60 = vld [vmem:[#allocation14 + $0x210] sm:$0xff] }
 0x57b   : > { %v14651_v24 = vmul.f32 %v14645_v44, %v8113_v18  ;;  %11194 = vmatprep.subr.bf16.mxu1 %v11193_v15  ;;  %v8347_v18 = vld [vmem:[#allocation15 + $0x2e8] sm:$0xff]  ;;  %v14659_v56 = vmul.f32 %v14645_v44, %v8112_v40  ;;  %v14667_v62 = vmul.f32 %v14645_v44, %v8117_v46  ;;  %v8232_v46 = vld [vmem:[#allocation14 + $0x250] sm:$0xff] }
 0x57c   : > { %v11181_v15 = vpack.c.bf16 %v8347_v18, %v8346_v8  ;;  %v8211_v8 = vld [vmem:[#allocation14 + $0x1a8] sm:$0xff]  ;;  %v8242_v18 = vld [vmem:[#allocation14 + $0x2a0] sm:$0xff] }
 0x57d   : > { %8624 = vmatprep.mubr.f32.mxu1 %v14651_v24  ;;  %11164 = vmatpush3.bf16.msra.mxu0 %v11163_v25  ;;  %v8348_v25 = vld [vmem:[#allocation15 + $0x2f0] sm:$0xff]  ;;  %v8199_v40 = vld [vmem:[#allocation14 + $0x148] sm:$0xff] }
 0x57e   : > { %11196 = vmatpush3.bf16.msra.mxu1 %v11195_v26  ;;  %11166 = vmatprep.subr.bf16.mxu0 %v11165_v23  ;;  %v8349_v26 = vld [vmem:[#allocation15 + $0x2f8] sm:$0xff]  ;;  %v11183_v23 = vpack.c.bf16 %v8331_v12, %v8330_v19  ;;  %v8194_v19 = vld [vmem:[#allocation14 + $0x120] sm:$0xff]  ;;  %v8195_v12 = vld [vmem:[#allocation14 + $0x128] sm:$0xff] }
 0x57f   : > { %11198 = vmatprep.subr.bf16.mxu1 %v11197_v27  ;;  %v11215_v27 = vpack.c.bf16 %v8171_v13, %v8170_v6  ;;  %v11185_v3 = vpack.c.bf16 %v8349_v26, %v8348_v25  ;;  %v8227_v6 = vld [vmem:[#allocation14 + $0x228] sm:$0xff]  ;;  %v8212_v13 = vld [vmem:[#allocation14 + $0x1b0] sm:$0xff]  ;;  %v8213_v25 = vld [vmem:[#allocation14 + $0x1b8] sm:$0xff]  ;;  %v11231_v21 = vpack.c.bf16 %v8195_v12, %v8194_v19 }
 0x580   : > { %v8244_v26 = vld [vmem:[#allocation14 + $0x2b0] sm:$0xff]  ;;  %v8221_v12 = vld [vmem:[#allocation14 + $0x1f8] sm:$0xff] }
 0x581   : > { %11168 = vmatpush3.bf16.msra.mxu0 %v11167_v33  ;;  %v8206_v33 = vld [vmem:[#allocation14 + $0x180] sm:$0xff]  ;;  %v8220_v19 = vld [vmem:[#allocation14 + $0x1f0] sm:$0xff] }
 0x582   : > { %11200 = vmatpush3.bf16.msra.mxu1 %v11199_v34  ;;  %11170 = vmatprep.subr.bf16.mxu0 %v11169_v36  ;;  %v8207_v34 = vld [vmem:[#allocation14 + $0x188] sm:$0xff]  ;;  %v11187_v36 = vpack.c.bf16 %v8333_v29, %v8332_v28  ;;  %v8196_v28 = vld [vmem:[#allocation14 + $0x130] sm:$0xff]  ;;  %v8197_v29 = vld [vmem:[#allocation14 + $0x138] sm:$0xff] }
 0x583   : > { %11202 = vmatprep.subr.bf16.mxu1 %v11201_v38  ;;  %v11219_v38 = vpack.c.bf16 %v8173_v32, %v8172_v37  ;;  %v11221_v42 = vpack.c.bf16 %v8207_v34, %v8206_v33  ;;  %v8229_v37 = vld [vmem:[#allocation14 + $0x238] sm:$0xff]  ;;  %v8214_v32 = vld [vmem:[#allocation14 + $0x1c0] sm:$0xff]  ;;  %v8215_v33 = vld [vmem:[#allocation14 + $0x1c8] sm:$0xff]  ;;  %v11235_v35 = vpack.c.bf16 %v8197_v29, %v8196_v28 }
 0x584   : > { %v8246_v34 = vld [vmem:[#allocation14 + $0x2c0] sm:$0xff]  ;;  %v8787_v29 = vld [vmem:[#allocation17 + $0x88] sm:$0xff] }
 0x585   : > { %11172 = vmatpush3.bf16.msra.mxu0 %v11171_v5  ;;  %v8115_v5 = vld [vmem:[#allocation2 + $0x18] sm:$0xff]  ;;  %v8786_v28 = vld [vmem:[#allocation17 + $0x80] sm:$0xff] }
 0x586   : > { %11204 = vmatpush3.bf16.msra.mxu1 %v11203_v43  ;;  %11174 = vmatprep.subr.bf16.mxu0 %v11173_v52  ;;  %v8222_v43 = vld [vmem:[#allocation14 + $0x200] sm:$0xff]  ;;  %v8209_v52 = vld [vmem:[#allocation14 + $0x198] sm:$0xff]  ;;  %v14662_v61 = vmul.f32 %v14645_v44, %v8115_v5 }
 0x587   : > { %11206 = vmatprep.subr.bf16.mxu1 %v11205_v53  ;;  %v8240_v53 = vld [vmem:[#allocation14 + $0x290] sm:$0xff]  ;;  %v11255_v57 = vpack.c.bf16 %v8223_v45, %v8222_v43  ;;  %v8217_v5 = vld [vmem:[#allocation14 + $0x1d8] sm:$0xff] }
 0x588   : > { %v8248_v43 = vld [vmem:[#allocation14 + $0x2d0] sm:$0xff]  ;;  %v8249_v45 = vld [vmem:[#allocation14 + $0x2d8] sm:$0xff] }
 0x589   : > { %11176 = vmatpush3.bf16.msra.mxu0 %v11175_v58  ;;  %v8192_v58 = vld [vmem:[#allocation14 + $0x110] sm:$0xff] }
 0x58a   : > { %11208 = vmatpush3.bf16.msra.mxu1 %v11207_v59  ;;  %11178 = vmatprep.subr.bf16.mxu0 %v11177_v63  ;;  %v8193_v59 = vld [vmem:[#allocation14 + $0x118] sm:$0xff]  ;;  %v11225_v63 = vpack.c.bf16 %v8209_v52, %v8208_v51  ;;  %v11239_v51 = vpack.c.bf16 %v8199_v40, %v8198_v41  ;;  %v8803_v41 = vld [vmem:[#allocation17 + $0x108] sm:$0xff]  ;;  %v8116_v40 = vld [vmem:[#allocation2 + $0x20] sm:$0xff] }
 0x58b   : > { %11210 = vmatprep.subr.bf16.mxu1 %v11209_v0  ;;  %v11257_v0 = vpack.c.bf16 %v8241_v54, %v8240_v53  ;;  %v11227_v7 = vpack.c.bf16 %v8193_v59, %v8192_v58  ;;  %v11241_v53 = vpack.c.bf16 %v8217_v5, %v8216_v50  ;;  %v8200_v54 = vld [vmem:[#allocation14 + $0x150] sm:$0xff]  ;;  %v8233_v58 = vld [vmem:[#allocation14 + $0x258] sm:$0xff]  ;;  %v8218_v59 = vld [vmem:[#allocation14 + $0x1e0] sm:$0xff]  ;;  %v8149_v5 = vsub.f32 %v14662_v61, %v14633_v10 }
 0x58d   : > { %11180 = vmatpush3.bf16.msra.mxu0 %v11179_v22  ;;  %v11259_v22 = vpack.c.bf16 %v8225_v1, %v8224_v60  ;;  %v8219_v60 = vld [vmem:[#allocation14 + $0x1e8] sm:$0xff] }
 0x58e   : > { %11212 = vmatpush3.bf16.msra.mxu1 %v11211_v2  ;;  %11182 = vmatprep.subr.bf16.mxu0 %v11181_v15  ;;  %v11229_v2 = vpack.c.bf16 %v8211_v8, %v8210_v4  ;;  %v8226_v15 = vld [vmem:[#allocation14 + $0x220] sm:$0xff]  ;;  %v11275_v4 = vpack.c.bf16 %v8233_v58, %v8232_v46  ;;  %v11245_v8 = vpack.c.bf16 %v8219_v60, %v8218_v59  ;;  %v8805_v46 = vld [vmem:[#allocation17 + $0x118] sm:$0xff]  ;;  %v8791_v58 = vld [vmem:[#allocation17 + $0xa8] sm:$0xff] }
 0x58f   : > { %11214 = vmatprep.subr.bf16.mxu1 %v11213_v11  ;;  %v11261_v11 = vpack.c.bf16 %v8243_v20, %v8242_v18  ;;  %v8202_v18 = vld [vmem:[#allocation14 + $0x160] sm:$0xff]  ;;  %v8203_v20 = vld [vmem:[#allocation14 + $0x168] sm:$0xff] }
 0x590   : > { %v8822_v59 = vld [vmem:[#allocation17 + $0x1a0] sm:$0xff]  ;;  %v8823_v60 = vld [vmem:[#allocation17 + $0x1a8] sm:$0xff] }
 0x591   : > { %11184 = vmatpush3.bf16.msra.mxu0 %v11183_v23  ;;  %v11263_v23 = vpack.c.bf16 %v8227_v6, %v8226_v15  ;;  %v8252_v15 = vld [vmem:[#allocation14 + $0x2f0] sm:$0xff]  ;;  %v11247_v6 = vpack.c.bf16 %v8203_v20, %v8202_v18  ;;  %v8806_v18 = vld [vmem:[#allocation17 + $0x120] sm:$0xff]  ;;  %v11325_v20 = vpack.c.bf16 %v8823_v60, %v8822_v59 }
 0x592   : > { %11216 = vmatpush3.bf16.msra.mxu1 %v11215_v27  ;;  %11186 = vmatprep.subr.bf16.mxu0 %v11185_v3  ;;  %v11233_v27 = vpack.c.bf16 %v8213_v25, %v8212_v13  ;;  %v8228_v3 = vld [vmem:[#allocation14 + $0x230] sm:$0xff]  ;;  %v11249_v25 = vpack.c.bf16 %v8221_v12, %v8220_v19  ;;  %v8825_v12 = vld [vmem:[#allocation17 + $0x1b8] sm:$0xff]  ;;  %v8814_v59 = vld [vmem:[#allocation17 + $0x160] sm:$0xff] }
 0x593   : > { %11218 = vmatprep.subr.bf16.mxu1 %v11217_v31  ;;  %v11265_v31 = vpack.c.bf16 %v8245_v17, %v8244_v26  ;;  %v8204_v26 = vld [vmem:[#allocation14 + $0x170] sm:$0xff]  ;;  %v8205_v17 = vld [vmem:[#allocation14 + $0x178] sm:$0xff] }
 0x594   : > { %v8824_v19 = vld [vmem:[#allocation17 + $0x1b0] sm:$0xff] }
 0x595   : > { %11188 = vmatpush3.bf16.msra.mxu0 %v11187_v36  ;;  %v11267_v36 = vpack.c.bf16 %v8229_v37, %v8228_v3  ;;  %v8818_v3 = vld [vmem:[#allocation17 + $0x180] sm:$0xff]  ;;  %v11251_v37 = vpack.c.bf16 %v8205_v17, %v8204_v26  ;;  %v8808_v26 = vld [vmem:[#allocation17 + $0x130] sm:$0xff]  ;;  %v11329_v17 = vpack.c.bf16 %v8825_v12, %v8824_v19  ;;  %v8817_v12 = vld [vmem:[#allocation17 + $0x178] sm:$0xff] }
 0x596   : > { %11220 = vmatpush3.bf16.msra.mxu1 %v11219_v38  ;;  %11222 = vmatprep.subr.bf16.mxu0 %v11221_v42  ;;  %v11237_v38 = vpack.c.bf16 %v8215_v33, %v8214_v32  ;;  %v8230_v42 = vld [vmem:[#allocation14 + $0x240] sm:$0xff]  ;;  %v11285_v33 = vpack.c.bf16 %v8787_v29, %v8786_v28  ;;  %v8827_v29 = vld [vmem:[#allocation17 + $0x1c8] sm:$0xff] }
 0x597   : > { %11254 = vmatprep.subr.bf16.mxu1 %v11253_v47  ;;  %v11269_v47 = vpack.c.bf16 %v8247_v55, %v8246_v34  ;;  %v11271_v52 = vpack.c.bf16 %v8231_v49, %v8230_v42  ;;  %v8770_v34 = vld [vmem:[#allocation17] sm:$0xff]  ;;  %v8771_v55 = vld [vmem:[#allocation17 + $0x8] sm:$0xff]  ;;  %v8147_v42 = vsub.f32 %v14651_v24, %v14630_v9  ;;  %v8789_v49 = vld [vmem:[#allocation17 + $0x98] sm:$0xff]  ;;  %v14679_v9 = vmul.f32 %v14645_v44, %v8116_v40 }
 0x598   : > { %8555 = vmatmul.mubr.f32.vlgmr.msra.gmra.mrb[2].mxu0 %v14656_v48  ;;  %v11287_v50 = vpack.c.bf16 %v8771_v55, %v8770_v34  ;;  %v8826_v28 = vld [vmem:[#allocation17 + $0x1c0] sm:$0xff]  ;;  %v8829_v40 = vld [vmem:[#allocation17 + $0x1d8] sm:$0xff] }
 0x599   : > { %8625 = vmatmul.mubr.f32.vlgmr.msra.gmra.mrb[2].mxu1 %v14659_v56  ;;  %11224 = vmatpush3.bf16.msra.mxu0 %v11223_v39  ;;  %v8201_v39 = vld [vmem:[#allocation14 + $0x158] sm:$0xff]  ;;  %v8153_v10 = vand.u32 2147483647, %v8147_v42  ;;  %v8810_v34 = vld [vmem:[#allocation17 + $0x140] sm:$0xff]  ;;  %v11333_v55 = vpack.c.bf16 %v8827_v29, %v8826_v28  ;;  %v8151_v29 = vsub.f32 %v14667_v62, %v14648_v30 }
 0x59a   : > { %8694 = vmatprep.mubr.f32.mxu0 %v14662_v61  ;;  %11256 = vmatpush3.bf16.msra.mxu1 %v11255_v57  ;;  %v11273_v57 = vpack.c.bf16 %v8249_v45, %v8248_v43  ;;  %v11243_v1 = vpack.c.bf16 %v8201_v39, %v8200_v54  ;;  %v8820_v43 = vld [vmem:[#allocation17 + $0x190] sm:$0xff]  ;;  %v8821_v45 = vld [vmem:[#allocation17 + $0x198] sm:$0xff]  ;;  %v8838_v30 = vld [vmem:[#allocation17 + $0x220] sm:$0xff] }
 0x59b   : > { %8764 = vmatprep.mubr.f32.mxu1 %v14667_v62  ;;  %11226 = vmatprep.subr.bf16.mxu0 %v11225_v63  ;;  %v8250_v63 = vld [vmem:[#allocation14 + $0x2e0] sm:$0xff]  ;;  %v8773_v54 = vld [vmem:[#allocation17 + $0x18] sm:$0xff]  ;;  %v8804_v39 = vld [vmem:[#allocation17 + $0x110] sm:$0xff]  ;;  %v11321_v61 = vpack.c.bf16 %v8821_v45, %v8820_v43 }
 0x59c   : > { %11258 = vmatprep.subr.bf16.mxu1 %v11257_v0  ;;  %v8251_v0 = vld [vmem:[#allocation14 + $0x2e8] sm:$0xff]  ;;  %v8812_v43 = vld [vmem:[#allocation17 + $0x150] sm:$0xff]  ;;  %v8853_v28 = vld [vmem:[#allocation17 + $0x298] sm:$0xff] }
 0x59d   : > { %11228 = vmatpush3.bf16.msra.mxu0 %v11227_v7  ;;  %v8234_v7 = vld [vmem:[#allocation14 + $0x260] sm:$0xff]  ;;  %v8839_v62 = vld [vmem:[#allocation17 + $0x228] sm:$0xff] }
 0x59e   : > { %11260 = vmatpush3.bf16.msra.mxu1 %v11259_v22  ;;  %11230 = vmatprep.subr.bf16.mxu0 %v11229_v2  ;;  %v11277_v22 = vpack.c.bf16 %v8251_v0, %v8250_v63  ;;  %v8235_v2 = vld [vmem:[#allocation14 + $0x268] sm:$0xff]  ;;  %v8155_v63 = vand.u32 2147483647, %v8149_v5  ;;  %v8781_v5 = vld [vmem:[#allocation17 + $0x58] sm:$0xff] }
 0x59f   : > { %11262 = vmatprep.subr.bf16.mxu1 %v11261_v11  ;;  %v8253_v11 = vld [vmem:[#allocation14 + $0x2f8] sm:$0xff]  ;;  %v11279_v13 = vpack.c.bf16 %v8235_v2, %v8234_v7  ;;  %v8807_v7 = vld [vmem:[#allocation17 + $0x128] sm:$0xff] }
 0x5a0   : > { %v8793_v2 = vld [vmem:[#allocation17 + $0xb8] sm:$0xff] }
 0x5a1   : > { %11232 = vmatpush3.bf16.msra.mxu0 %v11231_v21  ;;  %v8236_v21 = vld [vmem:[#allocation14 + $0x270] sm:$0xff] }
 0x5a2   : > { %11264 = vmatpush3.bf16.msra.mxu1 %v11263_v23  ;;  %11234 = vmatprep.subr.bf16.mxu0 %v11233_v27  ;;  %v11281_v23 = vpack.c.bf16 %v8253_v11, %v8252_v15  ;;  %v8237_v27 = vld [vmem:[#allocation14 + $0x278] sm:$0xff]  ;;  %v11327_v11 = vpack.c.bf16 %v8807_v7, %v8806_v18  ;;  %v8784_v7 = vld [vmem:[#allocation17 + $0x70] sm:$0xff] }
 0x5a3   : > { %11266 = vmatprep.subr.bf16.mxu1 %v11265_v31  ;;  %v8819_v31 = vld [vmem:[#allocation17 + $0x188] sm:$0xff]  ;;  %v11283_v32 = vpack.c.bf16 %v8237_v27, %v8236_v21  ;;  %v8809_v21 = vld [vmem:[#allocation17 + $0x138] sm:$0xff] }
 0x5a4   : > { %v8795_v27 = vld [vmem:[#allocation17 + $0xc8] sm:$0xff] }
 0x5a5   : > { %11236 = vmatpush3.bf16.msra.mxu0 %v11235_v35  ;;  %v8114_v35 = vld [vmem:[#allocation2 + $0x10] sm:$0xff] }
 0x5a6   : > { %11268 = vmatpush3.bf16.msra.mxu1 %v11267_v36  ;;  %11238 = vmatprep.subr.bf16.mxu0 %v11237_v38  ;;  %v11317_v36 = vpack.c.bf16 %v8819_v31, %v8818_v3  ;;  %v8802_v38 = vld [vmem:[#allocation17 + $0x100] sm:$0xff]  ;;  %v11331_v31 = vpack.c.bf16 %v8809_v21, %v8808_v26  ;;  %v8835_v21 = vld [vmem:[#allocation17 + $0x208] sm:$0xff] }
 0x5a7   : > { %11270 = vmatprep.subr.bf16.mxu1 %v11269_v47  ;;  %v8788_v47 = vld [vmem:[#allocation17 + $0x90] sm:$0xff] }
 0x5a8   : > { %v11289_v24 = vpack.c.bf16 %v8789_v49, %v8788_v47 }
 0x5a9   : > { %11240 = vmatpush3.bf16.msra.mxu0 %v11239_v51  ;;  %v14676_v51 = vmul.f32 %v14645_v44, %v8114_v35  ;;  %v11323_v44 = vpack.c.bf16 %v8805_v46, %v8804_v39  ;;  %v8811_v35 = vld [vmem:[#allocation17 + $0x148] sm:$0xff]  ;;  %v8830_v39 = vld [vmem:[#allocation17 + $0x1e0] sm:$0xff] }
 0x5aa   : > { %11272 = vmatpush3.bf16.msra.mxu1 %v11271_v52  ;;  %11242 = vmatprep.subr.bf16.mxu0 %v11241_v53  ;;  %v11319_v52 = vpack.c.bf16 %v8803_v41, %v8802_v38  ;;  %v8772_v53 = vld [vmem:[#allocation17 + $0x10] sm:$0xff]  ;;  %v8797_v38 = vld [vmem:[#allocation17 + $0xd8] sm:$0xff]  ;;  %v11335_v47 = vpack.c.bf16 %v8811_v35, %v8810_v34  ;;  %v8855_v34 = vld [vmem:[#allocation17 + $0x2a8] sm:$0xff] }
 0x5ab   : > { %11274 = vmatprep.subr.bf16.mxu1 %v11273_v57  ;;  %v8790_v57 = vld [vmem:[#allocation17 + $0xa0] sm:$0xff]  ;;  %v11291_v0 = vpack.c.bf16 %v8773_v54, %v8772_v53  ;;  %v8828_v41 = vld [vmem:[#allocation17 + $0x1d0] sm:$0xff]  ;;  %v8799_v54 = vld [vmem:[#allocation17 + $0xe8] sm:$0xff] }
 0x5ac   : > { %v11337_v45 = vpack.c.bf16 %v8829_v40, %v8828_v41  ;;  %v8798_v53 = vld [vmem:[#allocation17 + $0xe0] sm:$0xff]  ;;  %v8856_v35 = vld [vmem:[#allocation17 + $0x2b0] sm:$0xff] }
 0x5ad   : > { %11244 = vmatpush3.bf16.msra.mxu0 %v11243_v1  ;;  %v11293_v1 = vpack.c.bf16 %v8791_v58, %v8790_v57  ;;  %v11309_v58 = vpack.c.bf16 %v8799_v54, %v8798_v53  ;;  %v8840_v40 = vld [vmem:[#allocation17 + $0x230] sm:$0xff]  ;;  %v8861_v53 = vld [vmem:[#allocation17 + $0x2d8] sm:$0xff] }
 0x5ae   : > { %11276 = vmatpush3.bf16.msra.mxu1 %v11275_v4  ;;  %11246 = vmatprep.subr.bf16.mxu0 %v11245_v8  ;;  %v8774_v4 = vld [vmem:[#allocation17 + $0x20] sm:$0xff]  ;;  %v8775_v8 = vld [vmem:[#allocation17 + $0x28] sm:$0xff] }
 0x5af   : > { %11278 = vmatprep.subr.bf16.mxu1 %v11277_v22  ;;  %v8792_v22 = vld [vmem:[#allocation17 + $0xb0] sm:$0xff]  ;;  %v11295_v15 = vpack.c.bf16 %v8775_v8, %v8774_v4  ;;  %v8833_v4 = vld [vmem:[#allocation17 + $0x1f8] sm:$0xff] }
 0x5b1   : > { %11248 = vmatpush3.bf16.msra.mxu0 %v11247_v6  ;;  %v11297_v6 = vpack.c.bf16 %v8793_v2, %v8792_v22  ;;  %v8785_v22 = vld [vmem:[#allocation17 + $0x78] sm:$0xff]  ;;  %v8816_v2 = vld [vmem:[#allocation17 + $0x170] sm:$0xff] }
 0x5b2   : > { %11280 = vmatpush3.bf16.msra.mxu1 %v11279_v13  ;;  %11250 = vmatprep.subr.bf16.mxu0 %v11249_v25  ;;  %v8776_v13 = vld [vmem:[#allocation17 + $0x30] sm:$0xff]  ;;  %v8777_v25 = vld [vmem:[#allocation17 + $0x38] sm:$0xff] }
 0x5b3   : > { %11282 = vmatprep.subr.bf16.mxu1 %v11281_v23  ;;  %v8794_v23 = vld [vmem:[#allocation17 + $0xc0] sm:$0xff]  ;;  %v11299_v3 = vpack.c.bf16 %v8777_v25, %v8776_v13  ;;  %v11347_v13 = vpack.c.bf16 %v8817_v12, %v8816_v2  ;;  %v8146_v25 = vsub.f32 %v14659_v56, %v14636_v14  ;;  %v8837_v14 = vld [vmem:[#allocation17 + $0x218] sm:$0xff] }
 0x5b5   : > { %11252 = vmatpush3.bf16.msra.mxu0 %v11251_v37  ;;  %v11301_v37 = vpack.c.bf16 %v8795_v27, %v8794_v23  ;;  %v8148_v23 = vsub.f32 %v14676_v51, %v14639_v16  ;;  %v8852_v27 = vld [vmem:[#allocation17 + $0x290] sm:$0xff] }
 0x5b6   : > { %11284 = vmatpush3.bf16.msra.mxu1 %v11283_v32  ;;  %11286 = vmatprep.subr.bf16.mxu0 %v11285_v33  ;;  %v8778_v32 = vld [vmem:[#allocation17 + $0x40] sm:$0xff]  ;;  %v8779_v33 = vld [vmem:[#allocation17 + $0x48] sm:$0xff] }
 0x5b7   : > { %11318 = vmatprep.subr.bf16.mxu1 %v11317_v36  ;;  %v8796_v36 = vld [vmem:[#allocation17 + $0xd0] sm:$0xff]  ;;  %v11303_v42 = vpack.c.bf16 %v8779_v33, %v8778_v32  ;;  %v8154_v56 = vand.u32 2147483647, %v8148_v23  ;;  %v8854_v33 = vld [vmem:[#allocation17 + $0x2a0] sm:$0xff] }
 0x5b8   : > { %8695 = vmatmul.mubr.f32.vlgmr.msra.gmra.mrb[4].mxu0 %v14676_v51  ;;  %v11305_v49 = vpack.c.bf16 %v8797_v38, %v8796_v36  ;;  %v8836_v32 = vld [vmem:[#allocation17 + $0x210] sm:$0xff]  ;;  %v11357_v51 = vpack.c.bf16 %v8855_v34, %v8854_v33  ;;  %v8857_v36 = vld [vmem:[#allocation17 + $0x2b8] sm:$0xff]  ;;  %v11359_v38 = vpack.c.bf16 %v8839_v62, %v8838_v30 }
 0x5b9   : > { %8765 = vmatmul.mubr.f32.vlgmr.msra.gmra.mrb[4].mxu1 %v14679_v9  ;;  %11288 = vmatpush3.bf16.msra.mxu0 %v11287_v50  ;;  %v8780_v50 = vld [vmem:[#allocation17 + $0x50] sm:$0xff]  ;;  %v11355_v16 = vpack.c.bf16 %v8837_v14, %v8836_v32  ;;  %v11361_v41 = vpack.c.bf16 %v8857_v36, %v8856_v35 }
 0x5ba   : > { %8930 = vmatprep.mubr.f32.mxu0 %v8153_v10  ;;  %11320 = vmatpush3.bf16.msra.mxu1 %v11319_v52  ;;  %v8813_v52 = vld [vmem:[#allocation17 + $0x158] sm:$0xff]  ;;  %v11307_v46 = vpack.c.bf16 %v8781_v5, %v8780_v50  ;;  %v8782_v10 = vld [vmem:[#allocation17 + $0x60] sm:$0xff] }
 0x5bb   : > { %9000 = vmatprep.mubr.f32.mxu1 %v8155_v63  ;;  %11290 = vmatprep.subr.bf16.mxu0 %v11289_v24  ;;  %v8831_v24 = vld [vmem:[#allocation17 + $0x1e8] sm:$0xff]  ;;  %v11339_v57 = vpack.c.bf16 %v8813_v52, %v8812_v43  ;;  %v8842_v43 = vld [vmem:[#allocation17 + $0x240] sm:$0xff]  ;;  %v8860_v52 = vld [vmem:[#allocation17 + $0x2d0] sm:$0xff] }
 0x5bc   : > { %11322 = vmatprep.subr.bf16.mxu1 %v11321_v61  ;;  %v8783_v61 = vld [vmem:[#allocation17 + $0x68] sm:$0xff]  ;;  %v11341_v60 = vpack.c.bf16 %v8831_v24, %v8830_v39  ;;  %v11369_v39 = vpack.c.bf16 %v8861_v53, %v8860_v52  ;;  %v8844_v24 = vld [vmem:[#allocation17 + $0x250] sm:$0xff] }
 0x5bd   : > { %11292 = vmatpush3.bf16.msra.mxu0 %v11291_v0  ;;  %v8815_v63 = vld [vmem:[#allocation17 + $0x168] sm:$0xff]  ;;  %v8800_v0 = vld [vmem:[#allocation17 + $0xf0] sm:$0xff]  ;;  %v11311_v8 = vpack.c.bf16 %v8783_v61, %v8782_v10 }
 0x5be   : > { %11324 = vmatpush3.bf16.msra.mxu1 %v11323_v44  ;;  %11294 = vmatprep.subr.bf16.mxu0 %v11293_v1  ;;  %v8801_v44 = vld [vmem:[#allocation17 + $0xf8] sm:$0xff]  ;;  %v8832_v1 = vld [vmem:[#allocation17 + $0x1f0] sm:$0xff]  ;;  %v11343_v18 = vpack.c.bf16 %v8815_v63, %v8814_v59  ;;  %v8846_v59 = vld [vmem:[#allocation17 + $0x260] sm:$0xff] }
 0x5bf   : > { %11326 = vmatprep.subr.bf16.mxu1 %v11325_v20  ;;  %v11313_v20 = vpack.c.bf16 %v8801_v44, %v8800_v0  ;;  %v11345_v19 = vpack.c.bf16 %v8833_v4, %v8832_v1  ;;  %v8864_v63 = vld [vmem:[#allocation17 + $0x2f0] sm:$0xff]  ;;  %v8865_v0 = vld [vmem:[#allocation17 + $0x2f8] sm:$0xff] }
 0x5c0   : > { %v11377_v1 = vpack.c.bf16 %v8865_v0, %v8864_v63  ;;  %v8848_v4 = vld [vmem:[#allocation17 + $0x270] sm:$0xff] }
 0x5c1   : > { %11296 = vmatpush3.bf16.msra.mxu0 %v11295_v15  ;;  %v8850_v15 = vld [vmem:[#allocation17 + $0x280] sm:$0xff] }
 0x5c2   : > { %11328 = vmatpush3.bf16.msra.mxu1 %v11327_v11  ;;  %11298 = vmatprep.subr.bf16.mxu0 %v11297_v6  ;;  %v8851_v11 = vld [vmem:[#allocation17 + $0x288] sm:$0xff]  ;;  %v11315_v6 = vpack.c.bf16 %v8785_v22, %v8784_v7 }
 0x5c3   : > { %11330 = vmatprep.subr.bf16.mxu1 %v11329_v17  ;;  %v11349_v26 = vpack.c.bf16 %v8851_v11, %v8850_v15  ;;  %v8834_v17 = vld [vmem:[#allocation17 + $0x200] sm:$0xff] }
 0x5c5   : > { %11300 = vmatpush3.bf16.msra.mxu0 %v11299_v3  ;;  %v11351_v3 = vpack.c.bf16 %v8835_v21, %v8834_v17 }
 0x5c6   : > { %11332 = vmatpush3.bf16.msra.mxu1 %v11331_v31  ;;  %11302 = vmatprep.subr.bf16.mxu0 %v11301_v37  ;;  %v8152_v31 = vand.u32 2147483647, %v8146_v25  ;;  %v11353_v37 = vpack.c.bf16 %v8853_v28, %v8852_v27 }
 0x5c7   : > { %11334 = vmatprep.subr.bf16.mxu1 %v11333_v55  ;;  %v8157_v55 = vand.u32 2147483647, %v8151_v29 }
 0x5c9   : > { %11304 = vmatpush3.bf16.msra.mxu0 %v11303_v42  ;;  %v8841_v42 = vld [vmem:[#allocation17 + $0x238] sm:$0xff] }
 0x5ca   : > { %11336 = vmatpush3.bf16.msra.mxu1 %v11335_v47  ;;  %11306 = vmatprep.subr.bf16.mxu0 %v11305_v49  ;;  %v8858_v47 = vld [vmem:[#allocation17 + $0x2c0] sm:$0xff]  ;;  %v8859_v49 = vld [vmem:[#allocation17 + $0x2c8] sm:$0xff]  ;;  %v11363_v50 = vpack.c.bf16 %v8841_v42, %v8840_v40 }
 0x5cb   : > { %11338 = vmatprep.subr.bf16.mxu1 %v11337_v45  ;;  %v11365_v5 = vpack.c.bf16 %v8859_v49, %v8858_v47  ;;  %v8843_v45 = vld [vmem:[#allocation17 + $0x248] sm:$0xff] }
 0x5cc   : > { %v11367_v54 = vpack.c.bf16 %v8843_v45, %v8842_v43 }
 0x5cd   : > { %11308 = vmatpush3.bf16.msra.mxu0 %v11307_v46  ;;  %v8845_v46 = vld [vmem:[#allocation17 + $0x258] sm:$0xff] }
 0x5ce   : > { %11340 = vmatpush3.bf16.msra.mxu1 %v11339_v57  ;;  %11310 = vmatprep.subr.bf16.mxu0 %v11309_v58  ;;  %v8862_v57 = vld [vmem:[#allocation17 + $0x2e0] sm:$0xff]  ;;  %v8863_v58 = vld [vmem:[#allocation17 + $0x2e8] sm:$0xff]  ;;  %v11371_v10 = vpack.c.bf16 %v8845_v46, %v8844_v24 }
 0x5cf   : > { %11342 = vmatprep.subr.bf16.mxu1 %v11341_v60  ;;  %v11373_v61 = vpack.c.bf16 %v8863_v58, %v8862_v57  ;;  %v8847_v60 = vld [vmem:[#allocation17 + $0x268] sm:$0xff] }
 0x5d0   : > { %v11375_v44 = vpack.c.bf16 %v8847_v60, %v8846_v59 }
 0x5d1   : > { %11312 = vmatpush3.bf16.msra.mxu0 %v11311_v8  ;;  %v8849_v8 = vld [vmem:[#allocation17 + $0x278] sm:$0xff] }
 0x5d2   : > { %11344 = vmatpush3.bf16.msra.mxu1 %v11343_v18  ;;  %11314 = vmatprep.subr.bf16.mxu0 %v11313_v20  ;;  %v11379_v18 = vpack.c.bf16 %v8849_v8, %v8848_v4  ;;  %v8150_v20 = vsub.f32 %v14679_v9, %v14656_v48 }
 0x5d3   : > { %11346 = vmatprep.subr.bf16.mxu1 %v11345_v19 }
 0x5d4   : > { %v8156_v7 = vand.u32 2147483647, %v8150_v20 }
 0x5d5   : > { %11316 = vmatpush3.bf16.msra.mxu0 %v11315_v6 }
 0x5d6   : > { %11348 = vmatpush3.bf16.msra.mxu1 %v11347_v13  ;;  %11350 = vmatprep.subr.bf16.mxu0 %v11349_v26 }
 0x5d8   : > { %8931 = vmatmul.mubr.f32.vlgmr.msra.gmra.mrb[6].mxu0 %v8152_v31 }
 0x5d9   : > { %9001 = vmatmul.mubr.f32.vlgmr.msra.gmra.mrb[6].mxu1 %v8154_v56  ;;  %11352 = vmatpush3.bf16.msra.mxu0 %v11351_v3 }
 0x5da   : > { %9070 = vmatprep.mubr.f32.mxu0 %v8157_v55  ;;  %11354 = vmatprep.subr.bf16.mxu0 %v11353_v37 }
 0x5dd   : > { %11356 = vmatpush3.bf16.msra.mxu0 %v11355_v16 }
 0x5de   : > { %11358 = vmatprep.subr.bf16.mxu0 %v11357_v51 }
 0x5e1   : > { %11360 = vmatpush3.bf16.msra.mxu0 %v11359_v38 }
 0x5e2   : > { %11362 = vmatprep.subr.bf16.mxu0 %v11361_v41  ;;  %v10773_v41 = vld [vmem:[#allocation18] ss:$0 sm:$0xff] }
 0x5e5   : > { %11364 = vmatpush3.bf16.msra.mxu0 %v11363_v50 }
 0x5e6   : > { %11366 = vmatprep.subr.bf16.mxu0 %v11365_v5 }
 0x5e9   : > { %11368 = vmatpush3.bf16.msra.mxu0 %v11367_v54 }
 0x5ea   : > { %11370 = vmatprep.subr.bf16.mxu0 %v11369_v39 }
 0x5ed   : > { %11372 = vmatpush3.bf16.msra.mxu0 %v11371_v10 }
 0x5ee   : > { %11374 = vmatprep.subr.bf16.mxu0 %v11373_v61 }
 0x5f1   : > { %11376 = vmatpush3.bf16.msra.mxu0 %v11375_v44 }
 0x5f2   : > { %11378 = vmatprep.subr.bf16.mxu0 %v11377_v1 }
 0x5f5   : > { %11380 = vmatpush3.bf16.msra.mxu0 %v11379_v18 }
 0x5f8   : > { %9071 = vmatmul.mubr.f32.vlgmr.msra.gmra.mrb[8].mxu0 %v8156_v7 }
 0x64b   : > { %v10810_v22 = vpop.f32.mrb[0].mxu0  ;;  %v10845_v2 = vpop.f32.mrb[0].mxu1 }
 0x64c   : > { %v10811_v19 = vpop.f32.mrb[1].mxu0  ;;  %v10846_v12 = vpop.f32.mrb[1].mxu1 }
 0x64d   : > { %v10812_v15 = vadd.f32 %v10811_v19, %v10810_v22  ;;  %v10847_v11 = vadd.f32 %v10846_v12, %v10845_v2 }
 0x64f   : > { %v8487_v6 = vadd.f32 %v10847_v11, %v10812_v15 }
 0x66b   : > { %v10880_v13 = vpop.f32.mrb[2].mxu0 }
 0x66c   : > { %v10915_v25 = vpop.f32.mrb[2].mxu1  ;;  %v10881_v26 = vpop.f32.mrb[3].mxu0 }
 0x66d   : > { %v10916_v17 = vpop.f32.mrb[3].mxu1  ;;  %v10882_v21 = vadd.f32 %v10881_v26, %v10880_v13 }
 0x66e   : > { %v10917_v23 = vadd.f32 %v10916_v17, %v10915_v25 }
 0x66f   : > { %v8557_v27 = vadd.f32 %v10882_v21, %v8487_v6 }
 0x671   : > { %v8627_v28 = vadd.f32 %v10917_v23, %v8557_v27 }
 0x68b   : > { %v10950_v29 = vpop.f32.mrb[4].mxu0 }
 0x68c   : > { %v10985_v48 = vpop.f32.mrb[4].mxu1  ;;  %v10951_v9 = vpop.f32.mrb[5].mxu0 }
 0x68d   : > { %v10952_v3 = vadd.f32 %v10951_v9, %v10950_v29  ;;  %v10986_v31 = vpop.f32.mrb[5].mxu1 }
 0x68e   : > { %v10987_v37 = vadd.f32 %v10986_v31, %v10985_v48 }
 0x68f   : > { %v8697_v32 = vadd.f32 %v10952_v3, %v8627_v28 }
 0x691   : > { %v8767_v14 = vadd.f32 %v10987_v37, %v8697_v32 }
 0x6ab   : > { %v11020_v56 = vpop.f32.mrb[6].mxu0 }
 0x6ac   : > { %v11055_v33 = vpop.f32.mrb[6].mxu1  ;;  %v11021_v34 = vpop.f32.mrb[7].mxu0 }
 0x6ad   : > { %v11022_v55 = vadd.f32 %v11021_v34, %v11020_v56  ;;  %v11056_v16 = vpop.f32.mrb[7].mxu1 }
 0x6ae   : > { %v11057_v51 = vadd.f32 %v11056_v16, %v11055_v33 }
 0x6b0   : > { %v9003_v30 = vadd.f32 %v11057_v51, %v11022_v55 }
 0x6cb   : > { %v11090_v62 = vpop.f32.mrb[8].mxu0 }
 0x6cc   : > { %v11091_v35 = vpop.f32.mrb[9].mxu0 }
 0x6cd   : > { %v11092_v36 = vadd.f32 %v11091_v35, %v11090_v62 }
 0x6cf   : > { %v9073_v38 = vadd.f32 %v11092_v36, %v9003_v30 }
 0x6d1   : > { %v9076_v40 = vadd.f32 %v9073_v38, %v8767_v14 }
 0x6d3   : > { %v9084_v42 = vadd.f32 %v10773_v41, %v9076_v40 }
 0x6d5   : > { %9085 = vst [vmem:[%s572_s28] sm:$0xff] %v9084_v42 }
 0x6d6 PF: > { %s14828_s8 = sld [smem:[#allocation39_spill]]  ;;  %s14830_s19 = sld [smem:[#allocation44_spill]] }
 0x6d7   : > { %s14831_s22 = sld [smem:[#allocation49_spill]]  ;;  %s9100_s26 = sshll.u32 %s572_s28, 4  ;;  %s9101_s26 = int_to_ptr.vmem [resolvable:$true] %s9100_s26 }
 0x6d8   : > { %s9087_s27 = scalar_lea.sflag [#allocation8], %s570_s9  ;;  %s12890_s21 = scalar_lea.vmem %s9101_s26, 128 }
 0x6d9   : > { %p12891_p4 = scmp.ne.s32.totalorder %s9101_s26, %s12890_s21  ;;  %s13058_s18 = smov [#allocation20]  }
 0x6da   : > { %s12894_s29 = sshll.u32 %s13058_s18, 4  ;;  %s12895_s29 = int_to_ptr.vmem [resolvable:$false] %s12894_s29 }
 0x6db   : > { %s12896_s23 = scalar_lea.vmem %s12895_s29, 256  ;;  %p12897_p5 = scmp.lt.s32.totalorder %s9101_s26, %s12895_s29 }
 0x6dc   : > { %s10775_s11 = sshll.u32 %s14828_s8, 7  ;;  %p14832_p7 = scmp.ne.s32.totalorder %s14830_s19, 0 }
 0x6dd   : > { %s14697_s20 = scalar_lea.hbm %s14831_s22, %s10775_s11  ;;  %p12898_p13 = scmp.lt.s32.totalorder %s12896_s23, %s12890_s21 }
 0x6de   : > { %p12892_p12 = pnand %p12891_p4, %p14832_p7 }
 0x6df   : > { %p12899_p9 = por %p12898_p13, %p12897_p5 }
 0x6e0   : > { %p12893_p10 = pneg %p12892_p12 }
 0x6e2   : > { %p12900_p0 = pnand %p12899_p9, %p12893_p10 }
 0x6e4   : > { %12903 = shalt.err (!%p12900_p0)
}
 0x6e5   : > { %s12904_s9 = scalar_lea.hbm %s14697_s20, 128  ;;  %s12908_s17 = scalar_lea.hbm %s14831_s22, 256 }
 0x6e6   : > { %p12905_p1 = scmp.ne.s32.totalorder %s14697_s20, %s12904_s9  ;;  %p12909_p3 = scmp.lt.u32.totalorder %s14697_s20, %s14831_s22 }
 0x6e7   : > { %p12910_p11 = scmp.lt.u32.totalorder %s12908_s17, %s12904_s9  ;;  %p12912_p4 = scmp.lt.u32.totalorder %s12904_s9, %s14697_s20 }
 0x6e8   : > { %p12906_p2 = pnand %p12905_p1, %p14832_p7 }
 0x6e9   : > { %p12911_p6 = por %p12910_p11, %p12909_p3 }
 0x6ea   : > { %p12907_p8 = pneg %p12906_p2 }
 0x6eb   : > { %p12913_p12 = por %p12912_p4, %p12911_p6 }
 0x6ed   : > { %p12914_p10 = pnand %p12913_p12, %p12907_p8 }
 0x6ef   : > { %12917 = shalt.err (!%p12914_p10)
}
 0x6f0   : > { %11426 = dma.vmem_to_hbm [thread:$0]  (%p14832_p7), %s9101_s26, 128, %s14697_s20, %s9087_s27  }
 0x6f1 PF: > { %s14833_s30 = sld [smem:[#allocation34_spill]]  ;;  %s14834_s11 = sld [smem:[#allocation47_spill]] }
 0x6f2   : > { %p11453_p5 = scmp.ge.s32.totalorder %s13032_s15, 2 }
 0x6f7   : > { %s9112_s25 = sand.u32 1, %s14833_s30   ;;  %p14835_p13 = scmp.ne.s32.totalorder %s14834_s11, 0 }
 0x6f8   : > { %s9113_s16 = scalar_lea.sflag [#allocation8], %s9112_s25 }
 0x6f9   : > { %p11442_p9 = pnand %p11453_p5, %p14835_p13 }
 0x6fb   : > { %12987 = dma.done.wait (!%p11442_p9), %s9113_s16, 128  }
 0x6fc   : > { %12989 = vsyncadd (!%p11442_p9), %s9113_s16, 4294967168  ;;  %s32_s15 = sadd.s32 1, %s13032_s15   ;;  %s14836_s27 = sld [smem:[#allocation35_spill]] }
 0x6fd   : > { %p29_p0 = scmp.ge.s32.totalorder %s32_s15, 6   ;;  %s14837_s28 = sld [smem:[#allocation36_spill]] }
 0x6fe   : > { %s14838_s29 = sld [smem:[#allocation45_spill]]  ;;  %s14839_s30 = sld [smem:[#allocation37_spill]] }
 0x6ff   : > { %s14840_s19 = sld [smem:[#allocation46_spill]]  ;;  %s14841_s20 = sld [smem:[#allocation41_spill]] }
 0x700   : > { %s14842_s26 = sld [smem:[#allocation42_spill]]  ;;  %s14843_s9 = smov %s13012_s10 }
 0x701   : > { %s14845_s11 = smov %s13024_s13  ;;  %s14846_s12 = smov %s13028_s14 }
 0x702   :  { %31 = sbr.rel (!%p29_p0) target bundleno = 17 (0x11), region = 196 }
 0x705   : > { %s14844_s10 = smov %s14840_s19  ;;  %s14847_s13 = smov %s14841_s20 }
 0x706   : > { %s14848_s14 = smov %s14842_s26 }
 0x709   :  { %9118 = vsyncpa [#allocation7], 1 }
 0x70a   :  { %9120 = vsyncpa [#allocation7 + $0x1], 1 }
 0x70b   :  { %9121 = vsyncpa [#allocation10], 1 }
 0x70c   :  { %9123 = vsyncpa [#allocation10 + $0x1], 1 }
 0x70d   :  { %9124 = vsyncpa [#allocation13], 1 }
 0x70e   :  { %9126 = vsyncpa [#allocation13 + $0x1], 1 }
 0x70f   :  { %9127 = vsyncpa [#allocation16], 1 }
 0x710   :  { %9128 = vsyncpa [#allocation19], 1 }
 0x711   :  { %9129 = vsyncpa [#allocation8], 1 }
 0x712   :  { %9131 = vsyncpa [#allocation8 + $0x1], 1 }

</bundles_post_ra>
